<compile_context>
chip_gen: v6e
topology: v6e:2x2x1
jax: 0.10.0
libtpu: 0.0.40
codegen_flags: <defaults>
</compile_context>

<pallas_src>
import functools

import jax
import jax.numpy as jnp
import numpy as np
from jax.experimental import pallas as pl
from jax.experimental.pallas import tpu as pltpu


def _vmem_limit_bytes():
    """Generation-aware scoped-VMEM limit (safe fallback = v7x 64 MiB/TC)."""
    cap = None
    try:
        info = pltpu.get_tpu_info()
        cap = int(getattr(info, "vmem_capacity_bytes", 0)) or None
    except Exception:
        cap = None
    if cap is None:
        cap = 64 * 1024 * 1024
    # Leave headroom for double-buffer pairs, resident weights, Mosaic scratch.
    return min(int(cap * 0.7), 96 * 1024 * 1024)


def _pick_tile_h(n, h, w, cin, cout, budget_bytes):
    """Largest divisor of H whose working set fits; prefer an even grid."""

    def legal(th):
        # Out block is (1, th*w, cout); its second-to-last dim must be a
        # multiple of 8 unless it spans the full H*W extent.
        return th == h or (th * w) % 8 == 0

    def fits(th):
        blk_in = th * (w + 2) * cin * 2            # bf16 center block
        blk_halo = 2 * (w + 2) * cin * 2           # bf16 halo rows
        blk_out = th * w * cout * 4                # f32 output block
        tmp = 2 * th * w * cin * 2 + 2 * th * w * cout * 4   # tap LHS/results in flight
        wts = 9 * cin * cout * 2 + cout * 4
        return 2 * (blk_in + blk_halo + blk_out) + tmp + 2 * wts <= budget_bytes

    divisors = [t for t in range(1, h + 1) if h % t == 0 and legal(t)]
    fitting = [t for t in divisors if fits(t)]
    if not fitting:
        return min(divisors)                       # h itself is always legal
    even = [t for t in fitting if (n * (h // t)) % 2 == 0]
    return max(even) if even else max(fitting)


def _zero_conv3x3_kernel(x_ref, halo_ref, w_ref, b_ref, o_ref):
    # x_ref:    (1, TH, W+2, Cin)   bf16  center rows (W halo baked in via pad)
    # halo_ref: (1, 2,  W+2, Cin)   bf16  [row above tile, row below tile]
    # w_ref:    (3, 3, Cin, Cout)   bf16  (kh, kw, cin, cout)
    # b_ref:    (1, Cout)           f32
    # o_ref:    (1, TH*W, Cout)     f32   flat-M output block (also accumulator)
    th = x_ref.shape[1]
    wp2 = x_ref.shape[2]
    wo = wp2 - 2

    x = x_ref[0]                    # (TH, W+2, Cin)

    def taps(rows, dh):
        # sum over dw of rows[:, dw:dw+W, :] @ w[dh, dw]  ->  (R*W, Cout) f32.
        # Per-tap K = Cin (no im2col patch); back-to-back dots accumulate.
        r = rows.shape[0]
        c = rows.shape[2]
        acc = None
        for dw in range(3):
            # NOTE: this reshape is layout-free only when W % 8 == 0 (true for
            # Glow's power-of-two spatial sizes); it is correct regardless.
            lhs = rows[:, dw:dw + wo, :].reshape(r * wo, c)
            part = jnp.dot(lhs, w_ref[dh, dw], preferred_element_type=jnp.float32)
            acc = part if acc is None else acc + part
        return acc

    # dh = 1 (center row) covers every output row; add bias once here.
    o_ref[0] = (taps(x, 1) + b_ref[...]).astype(o_ref.dtype)

    # dh = 0 (row above): output row 0 uses the top halo row, rows 1..TH-1 use
    # in-tile rows 0..TH-2.  Row-range adds on the f32 output block.
    o_ref[0, :wo, :] += taps(halo_ref[0, 0:1], 0)
    if th > 1:
        o_ref[0, wo:, :] += taps(x[:th - 1], 0)
        o_ref[0, :(th - 1) * wo, :] += taps(x[1:], 2)
    # dh = 2 (row below): output row TH-1 uses the bottom halo row.
    o_ref[0, (th - 1) * wo:, :] += taps(halo_ref[0, 1:2], 2)


def prepare_zero_conv_params(weight_oihw, bias):
    """Hoistable parameter prep: OIHW f32 -> (3,3,Cin,Cout) bf16 + (1,Cout) f32."""
    w4 = jnp.transpose(weight_oihw, (2, 3, 1, 0)).astype(jnp.bfloat16)
    b2 = jnp.asarray(bias, jnp.float32).reshape(1, -1)
    return w4, b2


@functools.partial(jax.jit, static_argnames=("tile_h",))
def _zero_conv2d_prepared(x_nchw, w4, b2, *, tile_h=None):
    n, cin, h, w = x_nchw.shape
    cout = w4.shape[3]

    # NHWC inside the kernel; bf16 operands halve activation HBM traffic.
    x = jnp.transpose(x_nchw, (0, 2, 3, 1)).astype(jnp.bfloat16)    # (N,H,W,Cin)
    x_w = jnp.pad(x, ((0, 0), (0, 0), (1, 1), (0, 0)))              # (N,H,W+2,Cin)

    vmem_limit = _vmem_limit_bytes()
    if tile_h is None:
        tile_h = _pick_tile_h(n, h, w, cin, cout, budget_bytes=vmem_limit // 2)
    if h % tile_h:
        raise ValueError(f"tile_h={tile_h} must divide H={h}")
    n_h = h // tile_h

    # Halo rows (row above / below each H-tile), zeros at the image border.
    # Tiny (2 rows per tile) separate input so the main input keeps plain
    # non-overlapping Blocked specs (auto double-buffered).
    zrow = jnp.zeros((n, 1, w + 2, cin), jnp.bfloat16)
    above = jnp.concatenate([zrow, x_w[:, tile_h - 1:h - 1:tile_h]], axis=1)
    below = jnp.concatenate([x_w[:, tile_h:h:tile_h], zrow], axis=1)
    halo = jnp.stack([above, below], axis=2).reshape(n, n_h * 2, w + 2, cin)

    out_flat = pl.pallas_call(
        _zero_conv3x3_kernel,
        out_shape=jax.ShapeDtypeStruct((n, h * w, cout), jnp.float32),
        grid_spec=pltpu.PrefetchScalarGridSpec(
            num_scalar_prefetch=0,
            grid=(n, n_h),
            in_specs=[
                pl.BlockSpec((1, tile_h, w + 2, cin), lambda i, j: (i, j, 0, 0)),
                pl.BlockSpec((1, 2, w + 2, cin), lambda i, j: (i, j, 0, 0)),
                pl.BlockSpec((3, 3, cin, cout), lambda i, j: (0, 0, 0, 0)),  # resident
                pl.BlockSpec((1, cout), lambda i, j: (0, 0)),                # resident
            ],
            out_specs=pl.BlockSpec((1, tile_h * w, cout), lambda i, j: (i, j, 0)),
        ),
        compiler_params=pltpu.CompilerParams(
            dimension_semantics=("parallel", "parallel"),
            vmem_limit_bytes=vmem_limit,
        ),
    )(x_w, halo, w4, b2)

    out = out_flat.reshape(n, h, w, cout)
    return jnp.transpose(out, (0, 3, 1, 2)).astype(x_nchw.dtype)


def zero_conv2d_forward(x_nchw, weight_oihw, bias, *, tile_h=None):
    """ZeroConv2d forward: 3x3 conv, stride 1, padding 1 (PyTorch NCHW I/O)."""
    w4, b2 = prepare_zero_conv_params(weight_oihw, bias)
    return _zero_conv2d_prepared(x_nchw, w4, b2, tile_h=tile_h)


if __name__ == "__main__":
    N, Cin, Cout, H, W = 2, 4, 8, 16, 16
    key = jax.random.PRNGKey(0)
    x = jax.random.normal(key, (N, Cin, H, W), dtype=jnp.float32)

    # --- Parameters exactly as ZeroConv2d.__init__: zero weight, zero bias. ---
    w_zero = jnp.zeros((Cout, Cin, 3, 3), jnp.float32)
    b_zero = jnp.zeros((Cout,), jnp.float32)
    out = jax.block_until_ready(zero_conv2d_forward(x, w_zero, b_zero))
    assert out.shape == (N, Cout, H, W)
    assert np.allclose(np.asarray(out), 0.0)

    # --- Sanity check of the conv math with non-zero params vs XLA conv.    ---
    # Reference uses the same bf16-rounded operands with f32 accumulation.
    kw, kb = jax.random.split(jax.random.PRNGKey(1))
    w_rand = jax.random.normal(kw, (Cout, Cin, 3, 3), jnp.float32) * 0.1
    b_rand = jax.random.normal(kb, (Cout,), jnp.float32) * 0.1
    ref = jax.lax.conv_general_dilated(
        x.astype(jnp.bfloat16), w_rand.astype(jnp.bfloat16),
        window_strides=(1, 1), padding=((1, 1), (1, 1)),
        dimension_numbers=("NCHW", "OIHW", "NCHW"),
        preferred_element_type=jnp.float32,
    ) + b_rand[None, :, None, None]

    out_auto = jax.block_until_ready(zero_conv2d_forward(x, w_rand, b_rand))
    np.testing.assert_allclose(np.asarray(out_auto), np.asarray(ref),
                               rtol=2e-2, atol=2e-2)

    # Explicit multi-tile run to exercise the H-tiling + halo path (nH = 4).
    out_tiled = jax.block_until_ready(
        zero_conv2d_forward(x, w_rand, b_rand, tile_h=4))
    np.testing.assert_allclose(np.asarray(out_tiled), np.asarray(ref),
                               rtol=2e-2, atol=2e-2)

    print("KERNEL_OK")
</pallas_src>

<mosaic_0001>
module attributes {stable_mosaic.version = 11 : i64} {
  func.func @_zero_conv3x3_kernel(%arg0: i32, %arg1: i32, %arg2: memref<1x16x18x4xbf16, #tpu.memory_space<vmem>>, %arg3: memref<1x2x18x4xbf16, #tpu.memory_space<vmem>>, %arg4: memref<3x3x4x8xbf16, #tpu.memory_space<vmem>>, %arg5: memref<1x8xf32, #tpu.memory_space<vmem>>, %arg6: memref<1x256x8xf32, #tpu.memory_space<vmem>>) attributes {dimension_semantics = [#tpu.dimension_semantics<parallel>, #tpu.dimension_semantics<parallel>], iteration_bounds = array<i64: 2, 1>, scalar_prefetch = 0 : i64, scratch_operands = 0 : i64, tpu.core_type = #tpu.core_type<tc>, window_params = [{transform_indices = @transform_0, window_bounds = array<i64: 1, 16, 18, 4>}, {transform_indices = @transform_1, window_bounds = array<i64: 1, 2, 18, 4>}, {pipeline_mode = #tpu.pipeline_mode<synchronous>, transform_indices = @transform_2, window_bounds = array<i64: 3, 3, 4, 8>}, {pipeline_mode = #tpu.pipeline_mode<synchronous>, transform_indices = @transform_3, window_bounds = array<i64: 1, 8>}, {transform_indices = @transform_4, window_bounds = array<i64: 1, 256, 8>}]} {
    %c0 = arith.constant 0 : index
    %c0_0 = arith.constant 0 : index
    %c0_1 = arith.constant 0 : index
    %c0_2 = arith.constant 0 : index
    %0 = vector.load %arg2[%c0, %c0_0, %c0_1, %c0_2] : memref<1x16x18x4xbf16, #tpu.memory_space<vmem>>, vector<1x16x18x4xbf16>
    %1 = vector.shape_cast %0 : vector<1x16x18x4xbf16> to vector<16x18x4xbf16>
    %2 = vector.extract_strided_slice %1 {offsets = [0, 0, 0], sizes = [16, 16, 4], strides = [1, 1, 1]} : vector<16x18x4xbf16> to vector<16x16x4xbf16>
    %3 = vector.shape_cast %2 : vector<16x16x4xbf16> to vector<256x4xbf16>
    %c1 = arith.constant 1 : index
    %c0_3 = arith.constant 0 : index
    %c0_4 = arith.constant 0 : index
    %c0_5 = arith.constant 0 : index
    %4 = vector.load %arg4[%c1, %c0_3, %c0_4, %c0_5] : memref<3x3x4x8xbf16, #tpu.memory_space<vmem>>, vector<1x1x4x8xbf16>
    %5 = vector.shape_cast %4 : vector<1x1x4x8xbf16> to vector<4x8xbf16>
    %cst = arith.constant dense<0.000000e+00> : vector<256x8xf32>
    %6 = tpu.matmul %3, %5, %cst {dimension_numbers = #tpu.dot_dimension_numbers<[1], [0], [0], [1], [0, 0, 1, 1], [], []>} : vector<256x4xbf16>, vector<4x8xbf16>, vector<256x8xf32> -> vector<256x8xf32>
    %7 = vector.extract_strided_slice %1 {offsets = [0, 1, 0], sizes = [16, 16, 4], strides = [1, 1, 1]} : vector<16x18x4xbf16> to vector<16x16x4xbf16>
    %8 = vector.shape_cast %7 : vector<16x16x4xbf16> to vector<256x4xbf16>
    %c1_6 = arith.constant 1 : index
    %c1_7 = arith.constant 1 : index
    %c0_8 = arith.constant 0 : index
    %c0_9 = arith.constant 0 : index
    %9 = vector.load %arg4[%c1_6, %c1_7, %c0_8, %c0_9] : memref<3x3x4x8xbf16, #tpu.memory_space<vmem>>, vector<1x1x4x8xbf16>
    %10 = vector.shape_cast %9 : vector<1x1x4x8xbf16> to vector<4x8xbf16>
    %cst_10 = arith.constant dense<0.000000e+00> : vector<256x8xf32>
    %11 = tpu.matmul %8, %10, %cst_10 {dimension_numbers = #tpu.dot_dimension_numbers<[1], [0], [0], [1], [0, 0, 1, 1], [], []>} : vector<256x4xbf16>, vector<4x8xbf16>, vector<256x8xf32> -> vector<256x8xf32>
    %12 = arith.addf %6, %11 : vector<256x8xf32>
    %13 = vector.extract_strided_slice %1 {offsets = [0, 2, 0], sizes = [16, 16, 4], strides = [1, 1, 1]} : vector<16x18x4xbf16> to vector<16x16x4xbf16>
    %14 = vector.shape_cast %13 : vector<16x16x4xbf16> to vector<256x4xbf16>
    %c1_11 = arith.constant 1 : index
    %c2 = arith.constant 2 : index
    %c0_12 = arith.constant 0 : index
    %c0_13 = arith.constant 0 : index
    %15 = vector.load %arg4[%c1_11, %c2, %c0_12, %c0_13] : memref<3x3x4x8xbf16, #tpu.memory_space<vmem>>, vector<1x1x4x8xbf16>
    %16 = vector.shape_cast %15 : vector<1x1x4x8xbf16> to vector<4x8xbf16>
    %cst_14 = arith.constant dense<0.000000e+00> : vector<256x8xf32>
    %17 = tpu.matmul %14, %16, %cst_14 {dimension_numbers = #tpu.dot_dimension_numbers<[1], [0], [0], [1], [0, 0, 1, 1], [], []>} : vector<256x4xbf16>, vector<4x8xbf16>, vector<256x8xf32> -> vector<256x8xf32>
    %18 = arith.addf %12, %17 : vector<256x8xf32>
    %c0_15 = arith.constant 0 : index
    %c0_16 = arith.constant 0 : index
    %19 = vector.load %arg5[%c0_15, %c0_16] : memref<1x8xf32, #tpu.memory_space<vmem>>, vector<1x8xf32>
    %20 = vector.broadcast %19 : vector<1x8xf32> to vector<256x8xf32>
    %21 = arith.addf %18, %20 : vector<256x8xf32>
    %c0_17 = arith.constant 0 : index
    %c0_18 = arith.constant 0 : index
    %c0_19 = arith.constant 0 : index
    %22 = vector.load %arg6[%c0_17, %c0_18, %c0_19] : memref<1x256x8xf32, #tpu.memory_space<vmem>>, vector<1x256x8xf32>
    %23 = vector.shape_cast %22 : vector<1x256x8xf32> to vector<256x8xf32>
    %24 = vector.shape_cast %21 : vector<256x8xf32> to vector<1x256x8xf32>
    tpu.vector_store %arg6[%c0_17, %c0_18, %c0_19], %24 {strides = array<i32>} : memref<1x256x8xf32, #tpu.memory_space<vmem>>, vector<1x256x8xf32>,
    %c0_20 = arith.constant 0 : index
    %c0_21 = arith.constant 0 : index
    %c0_22 = arith.constant 0 : index
    %25 = vector.load %arg6[%c0_20, %c0_21, %c0_22] : memref<1x256x8xf32, #tpu.memory_space<vmem>>, vector<1x16x8xf32>
    %26 = vector.shape_cast %25 : vector<1x16x8xf32> to vector<16x8xf32>
    %c0_23 = arith.constant 0 : index
    %c0_24 = arith.constant 0 : index
    %c0_25 = arith.constant 0 : index
    %c0_26 = arith.constant 0 : index
    %27 = vector.load %arg3[%c0_23, %c0_24, %c0_25, %c0_26] : memref<1x2x18x4xbf16, #tpu.memory_space<vmem>>, vector<1x1x18x4xbf16>
    %28 = vector.shape_cast %27 : vector<1x1x18x4xbf16> to vector<1x18x4xbf16>
    %29 = vector.extract_strided_slice %28 {offsets = [0, 0, 0], sizes = [1, 16, 4], strides = [1, 1, 1]} : vector<1x18x4xbf16> to vector<1x16x4xbf16>
    %30 = vector.shape_cast %29 : vector<1x16x4xbf16> to vector<16x4xbf16>
    %c0_27 = arith.constant 0 : index
    %c0_28 = arith.constant 0 : index
    %c0_29 = arith.constant 0 : index
    %c0_30 = arith.constant 0 : index
    %31 = vector.load %arg4[%c0_27, %c0_28, %c0_29, %c0_30] : memref<3x3x4x8xbf16, #tpu.memory_space<vmem>>, vector<1x1x4x8xbf16>
    %32 = vector.shape_cast %31 : vector<1x1x4x8xbf16> to vector<4x8xbf16>
    %cst_31 = arith.constant dense<0.000000e+00> : vector<16x8xf32>
    %33 = tpu.matmul %30, %32, %cst_31 {dimension_numbers = #tpu.dot_dimension_numbers<[1], [0], [0], [1], [0, 0, 1, 1], [], []>} : vector<16x4xbf16>, vector<4x8xbf16>, vector<16x8xf32> -> vector<16x8xf32>
    %34 = vector.extract_strided_slice %28 {offsets = [0, 1, 0], sizes = [1, 16, 4], strides = [1, 1, 1]} : vector<1x18x4xbf16> to vector<1x16x4xbf16>
    %35 = vector.shape_cast %34 : vector<1x16x4xbf16> to vector<16x4xbf16>
    %c0_32 = arith.constant 0 : index
    %c1_33 = arith.constant 1 : index
    %c0_34 = arith.constant 0 : index
    %c0_35 = arith.constant 0 : index
    %36 = vector.load %arg4[%c0_32, %c1_33, %c0_34, %c0_35] : memref<3x3x4x8xbf16, #tpu.memory_space<vmem>>, vector<1x1x4x8xbf16>
    %37 = vector.shape_cast %36 : vector<1x1x4x8xbf16> to vector<4x8xbf16>
    %cst_36 = arith.constant dense<0.000000e+00> : vector<16x8xf32>
    %38 = tpu.matmul %35, %37, %cst_36 {dimension_numbers = #tpu.dot_dimension_numbers<[1], [0], [0], [1], [0, 0, 1, 1], [], []>} : vector<16x4xbf16>, vector<4x8xbf16>, vector<16x8xf32> -> vector<16x8xf32>
    %39 = arith.addf %33, %38 : vector<16x8xf32>
    %40 = vector.extract_strided_slice %28 {offsets = [0, 2, 0], sizes = [1, 16, 4], strides = [1, 1, 1]} : vector<1x18x4xbf16> to vector<1x16x4xbf16>
    %41 = vector.shape_cast %40 : vector<1x16x4xbf16> to vector<16x4xbf16>
    %c0_37 = arith.constant 0 : index
    %c2_38 = arith.constant 2 : index
    %c0_39 = arith.constant 0 : index
    %c0_40 = arith.constant 0 : index
    %42 = vector.load %arg4[%c0_37, %c2_38, %c0_39, %c0_40] : memref<3x3x4x8xbf16, #tpu.memory_space<vmem>>, vector<1x1x4x8xbf16>
    %43 = vector.shape_cast %42 : vector<1x1x4x8xbf16> to vector<4x8xbf16>
    %cst_41 = arith.constant dense<0.000000e+00> : vector<16x8xf32>
    %44 = tpu.matmul %41, %43, %cst_41 {dimension_numbers = #tpu.dot_dimension_numbers<[1], [0], [0], [1], [0, 0, 1, 1], [], []>} : vector<16x4xbf16>, vector<4x8xbf16>, vector<16x8xf32> -> vector<16x8xf32>
    %45 = arith.addf %39, %44 : vector<16x8xf32>
    %46 = arith.addf %26, %45 : vector<16x8xf32>
    %c0_42 = arith.constant 0 : index
    %c0_43 = arith.constant 0 : index
    %c0_44 = arith.constant 0 : index
    %47 = vector.load %arg6[%c0_42, %c0_43, %c0_44] : memref<1x256x8xf32, #tpu.memory_space<vmem>>, vector<1x16x8xf32>
    %48 = vector.shape_cast %47 : vector<1x16x8xf32> to vector<16x8xf32>
    %49 = vector.shape_cast %46 : vector<16x8xf32> to vector<1x16x8xf32>
    tpu.vector_store %arg6[%c0_42, %c0_43, %c0_44], %49 {strides = array<i32>} : memref<1x256x8xf32, #tpu.memory_space<vmem>>, vector<1x16x8xf32>,
    %c0_45 = arith.constant 0 : index
    %c16 = arith.constant 16 : index
    %c0_46 = arith.constant 0 : index
    %50 = vector.load %arg6[%c0_45, %c16, %c0_46] : memref<1x256x8xf32, #tpu.memory_space<vmem>>, vector<1x240x8xf32>
    %51 = vector.shape_cast %50 : vector<1x240x8xf32> to vector<240x8xf32>
    %52 = vector.extract_strided_slice %1 {offsets = [0, 0, 0], sizes = [15, 18, 4], strides = [1, 1, 1]} : vector<16x18x4xbf16> to vector<15x18x4xbf16>
    %53 = vector.extract_strided_slice %52 {offsets = [0, 0, 0], sizes = [15, 16, 4], strides = [1, 1, 1]} : vector<15x18x4xbf16> to vector<15x16x4xbf16>
    %54 = vector.shape_cast %53 : vector<15x16x4xbf16> to vector<240x4xbf16>
    %c0_47 = arith.constant 0 : index
    %c0_48 = arith.constant 0 : index
    %c0_49 = arith.constant 0 : index
    %c0_50 = arith.constant 0 : index
    %55 = vector.load %arg4[%c0_47, %c0_48, %c0_49, %c0_50] : memref<3x3x4x8xbf16, #tpu.memory_space<vmem>>, vector<1x1x4x8xbf16>
    %56 = vector.shape_cast %55 : vector<1x1x4x8xbf16> to vector<4x8xbf16>
    %cst_51 = arith.constant dense<0.000000e+00> : vector<240x8xf32>
    %57 = tpu.matmul %54, %56, %cst_51 {dimension_numbers = #tpu.dot_dimension_numbers<[1], [0], [0], [1], [0, 0, 1, 1], [], []>} : vector<240x4xbf16>, vector<4x8xbf16>, vector<240x8xf32> -> vector<240x8xf32>
    %58 = vector.extract_strided_slice %52 {offsets = [0, 1, 0], sizes = [15, 16, 4], strides = [1, 1, 1]} : vector<15x18x4xbf16> to vector<15x16x4xbf16>
    %59 = vector.shape_cast %58 : vector<15x16x4xbf16> to vector<240x4xbf16>
    %c0_52 = arith.constant 0 : index
    %c1_53 = arith.constant 1 : index
    %c0_54 = arith.constant 0 : index
    %c0_55 = arith.constant 0 : index
    %60 = vector.load %arg4[%c0_52, %c1_53, %c0_54, %c0_55] : memref<3x3x4x8xbf16, #tpu.memory_space<vmem>>, vector<1x1x4x8xbf16>
    %61 = vector.shape_cast %60 : vector<1x1x4x8xbf16> to vector<4x8xbf16>
    %cst_56 = arith.constant dense<0.000000e+00> : vector<240x8xf32>
    %62 = tpu.matmul %59, %61, %cst_56 {dimension_numbers = #tpu.dot_dimension_numbers<[1], [0], [0], [1], [0, 0, 1, 1], [], []>} : vector<240x4xbf16>, vector<4x8xbf16>, vector<240x8xf32> -> vector<240x8xf32>
    %63 = arith.addf %57, %62 : vector<240x8xf32>
    %64 = vector.extract_strided_slice %52 {offsets = [0, 2, 0], sizes = [15, 16, 4], strides = [1, 1, 1]} : vector<15x18x4xbf16> to vector<15x16x4xbf16>
    %65 = vector.shape_cast %64 : vector<15x16x4xbf16> to vector<240x4xbf16>
    %c0_57 = arith.constant 0 : index
    %c2_58 = arith.constant 2 : index
    %c0_59 = arith.constant 0 : index
    %c0_60 = arith.constant 0 : index
    %66 = vector.load %arg4[%c0_57, %c2_58, %c0_59, %c0_60] : memref<3x3x4x8xbf16, #tpu.memory_space<vmem>>, vector<1x1x4x8xbf16>
    %67 = vector.shape_cast %66 : vector<1x1x4x8xbf16> to vector<4x8xbf16>
    %cst_61 = arith.constant dense<0.000000e+00> : vector<240x8xf32>
    %68 = tpu.matmul %65, %67, %cst_61 {dimension_numbers = #tpu.dot_dimension_numbers<[1], [0], [0], [1], [0, 0, 1, 1], [], []>} : vector<240x4xbf16>, vector<4x8xbf16>, vector<240x8xf32> -> vector<240x8xf32>
    %69 = arith.addf %63, %68 : vector<240x8xf32>
    %70 = arith.addf %51, %69 : vector<240x8xf32>
    %c0_62 = arith.constant 0 : index
    %c16_63 = arith.constant 16 : index
    %c0_64 = arith.constant 0 : index
    %71 = vector.load %arg6[%c0_62, %c16_63, %c0_64] : memref<1x256x8xf32, #tpu.memory_space<vmem>>, vector<1x240x8xf32>
    %72 = vector.shape_cast %71 : vector<1x240x8xf32> to vector<240x8xf32>
    %73 = vector.shape_cast %70 : vector<240x8xf32> to vector<1x240x8xf32>
    tpu.vector_store %arg6[%c0_62, %c16_63, %c0_64], %73 {strides = array<i32>} : memref<1x256x8xf32, #tpu.memory_space<vmem>>, vector<1x240x8xf32>,
    %c0_65 = arith.constant 0 : index
    %c0_66 = arith.constant 0 : index
    %c0_67 = arith.constant 0 : index
    %74 = vector.load %arg6[%c0_65, %c0_66, %c0_67] : memref<1x256x8xf32, #tpu.memory_space<vmem>>, vector<1x240x8xf32>
    %75 = vector.shape_cast %74 : vector<1x240x8xf32> to vector<240x8xf32>
    %76 = vector.extract_strided_slice %1 {offsets = [1, 0, 0], sizes = [15, 18, 4], strides = [1, 1, 1]} : vector<16x18x4xbf16> to vector<15x18x4xbf16>
    %77 = vector.extract_strided_slice %76 {offsets = [0, 0, 0], sizes = [15, 16, 4], strides = [1, 1, 1]} : vector<15x18x4xbf16> to vector<15x16x4xbf16>
    %78 = vector.shape_cast %77 : vector<15x16x4xbf16> to vector<240x4xbf16>
    %c2_68 = arith.constant 2 : index
    %c0_69 = arith.constant 0 : index
    %c0_70 = arith.constant 0 : index
    %c0_71 = arith.constant 0 : index
    %79 = vector.load %arg4[%c2_68, %c0_69, %c0_70, %c0_71] : memref<3x3x4x8xbf16, #tpu.memory_space<vmem>>, vector<1x1x4x8xbf16>
    %80 = vector.shape_cast %79 : vector<1x1x4x8xbf16> to vector<4x8xbf16>
    %cst_72 = arith.constant dense<0.000000e+00> : vector<240x8xf32>
    %81 = tpu.matmul %78, %80, %cst_72 {dimension_numbers = #tpu.dot_dimension_numbers<[1], [0], [0], [1], [0, 0, 1, 1], [], []>} : vector<240x4xbf16>, vector<4x8xbf16>, vector<240x8xf32> -> vector<240x8xf32>
    %82 = vector.extract_strided_slice %76 {offsets = [0, 1, 0], sizes = [15, 16, 4], strides = [1, 1, 1]} : vector<15x18x4xbf16> to vector<15x16x4xbf16>
    %83 = vector.shape_cast %82 : vector<15x16x4xbf16> to vector<240x4xbf16>
    %c2_73 = arith.constant 2 : index
    %c1_74 = arith.constant 1 : index
    %c0_75 = arith.constant 0 : index
    %c0_76 = arith.constant 0 : index
    %84 = vector.load %arg4[%c2_73, %c1_74, %c0_75, %c0_76] : memref<3x3x4x8xbf16, #tpu.memory_space<vmem>>, vector<1x1x4x8xbf16>
    %85 = vector.shape_cast %84 : vector<1x1x4x8xbf16> to vector<4x8xbf16>
    %cst_77 = arith.constant dense<0.000000e+00> : vector<240x8xf32>
    %86 = tpu.matmul %83, %85, %cst_77 {dimension_numbers = #tpu.dot_dimension_numbers<[1], [0], [0], [1], [0, 0, 1, 1], [], []>} : vector<240x4xbf16>, vector<4x8xbf16>, vector<240x8xf32> -> vector<240x8xf32>
    %87 = arith.addf %81, %86 : vector<240x8xf32>
    %88 = vector.extract_strided_slice %76 {offsets = [0, 2, 0], sizes = [15, 16, 4], strides = [1, 1, 1]} : vector<15x18x4xbf16> to vector<15x16x4xbf16>
    %89 = vector.shape_cast %88 : vector<15x16x4xbf16> to vector<240x4xbf16>
    %c2_78 = arith.constant 2 : index
    %c2_79 = arith.constant 2 : index
    %c0_80 = arith.constant 0 : index
    %c0_81 = arith.constant 0 : index
    %90 = vector.load %arg4[%c2_78, %c2_79, %c0_80, %c0_81] : memref<3x3x4x8xbf16, #tpu.memory_space<vmem>>, vector<1x1x4x8xbf16>
    %91 = vector.shape_cast %90 : vector<1x1x4x8xbf16> to vector<4x8xbf16>
    %cst_82 = arith.constant dense<0.000000e+00> : vector<240x8xf32>
    %92 = tpu.matmul %89, %91, %cst_82 {dimension_numbers = #tpu.dot_dimension_numbers<[1], [0], [0], [1], [0, 0, 1, 1], [], []>} : vector<240x4xbf16>, vector<4x8xbf16>, vector<240x8xf32> -> vector<240x8xf32>
    %93 = arith.addf %87, %92 : vector<240x8xf32>
    %94 = arith.addf %75, %93 : vector<240x8xf32>
    %c0_83 = arith.constant 0 : index
    %c0_84 = arith.constant 0 : index
    %c0_85 = arith.constant 0 : index
    %95 = vector.load %arg6[%c0_83, %c0_84, %c0_85] : memref<1x256x8xf32, #tpu.memory_space<vmem>>, vector<1x240x8xf32>
    %96 = vector.shape_cast %95 : vector<1x240x8xf32> to vector<240x8xf32>
    %97 = vector.shape_cast %94 : vector<240x8xf32> to vector<1x240x8xf32>
    tpu.vector_store %arg6[%c0_83, %c0_84, %c0_85], %97 {strides = array<i32>} : memref<1x256x8xf32, #tpu.memory_space<vmem>>, vector<1x240x8xf32>,
    %c0_86 = arith.constant 0 : index
    %c240 = arith.constant 240 : index
    %c0_87 = arith.constant 0 : index
    %98 = vector.load %arg6[%c0_86, %c240, %c0_87] : memref<1x256x8xf32, #tpu.memory_space<vmem>>, vector<1x16x8xf32>
    %99 = vector.shape_cast %98 : vector<1x16x8xf32> to vector<16x8xf32>
    %c0_88 = arith.constant 0 : index
    %c1_89 = arith.constant 1 : index
    %c0_90 = arith.constant 0 : index
    %c0_91 = arith.constant 0 : index
    %100 = vector.load %arg3[%c0_88, %c1_89, %c0_90, %c0_91] : memref<1x2x18x4xbf16, #tpu.memory_space<vmem>>, vector<1x1x18x4xbf16>
    %101 = vector.shape_cast %100 : vector<1x1x18x4xbf16> to vector<1x18x4xbf16>
    %102 = vector.extract_strided_slice %101 {offsets = [0, 0, 0], sizes = [1, 16, 4], strides = [1, 1, 1]} : vector<1x18x4xbf16> to vector<1x16x4xbf16>
    %103 = vector.shape_cast %102 : vector<1x16x4xbf16> to vector<16x4xbf16>
    %c2_92 = arith.constant 2 : index
    %c0_93 = arith.constant 0 : index
    %c0_94 = arith.constant 0 : index
    %c0_95 = arith.constant 0 : index
    %104 = vector.load %arg4[%c2_92, %c0_93, %c0_94, %c0_95] : memref<3x3x4x8xbf16, #tpu.memory_space<vmem>>, vector<1x1x4x8xbf16>
    %105 = vector.shape_cast %104 : vector<1x1x4x8xbf16> to vector<4x8xbf16>
    %cst_96 = arith.constant dense<0.000000e+00> : vector<16x8xf32>
    %106 = tpu.matmul %103, %105, %cst_96 {dimension_numbers = #tpu.dot_dimension_numbers<[1], [0], [0], [1], [0, 0, 1, 1], [], []>} : vector<16x4xbf16>, vector<4x8xbf16>, vector<16x8xf32> -> vector<16x8xf32>
    %107 = vector.extract_strided_slice %101 {offsets = [0, 1, 0], sizes = [1, 16, 4], strides = [1, 1, 1]} : vector<1x18x4xbf16> to vector<1x16x4xbf16>
    %108 = vector.shape_cast %107 : vector<1x16x4xbf16> to vector<16x4xbf16>
    %c2_97 = arith.constant 2 : index
    %c1_98 = arith.constant 1 : index
    %c0_99 = arith.constant 0 : index
    %c0_100 = arith.constant 0 : index
    %109 = vector.load %arg4[%c2_97, %c1_98, %c0_99, %c0_100] : memref<3x3x4x8xbf16, #tpu.memory_space<vmem>>, vector<1x1x4x8xbf16>
    %110 = vector.shape_cast %109 : vector<1x1x4x8xbf16> to vector<4x8xbf16>
    %cst_101 = arith.constant dense<0.000000e+00> : vector<16x8xf32>
    %111 = tpu.matmul %108, %110, %cst_101 {dimension_numbers = #tpu.dot_dimension_numbers<[1], [0], [0], [1], [0, 0, 1, 1], [], []>} : vector<16x4xbf16>, vector<4x8xbf16>, vector<16x8xf32> -> vector<16x8xf32>
    %112 = arith.addf %106, %111 : vector<16x8xf32>
    %113 = vector.extract_strided_slice %101 {offsets = [0, 2, 0], sizes = [1, 16, 4], strides = [1, 1, 1]} : vector<1x18x4xbf16> to vector<1x16x4xbf16>
    %114 = vector.shape_cast %113 : vector<1x16x4xbf16> to vector<16x4xbf16>
    %c2_102 = arith.constant 2 : index
    %c2_103 = arith.constant 2 : index
    %c0_104 = arith.constant 0 : index
    %c0_105 = arith.constant 0 : index
    %115 = vector.load %arg4[%c2_102, %c2_103, %c0_104, %c0_105] : memref<3x3x4x8xbf16, #tpu.memory_space<vmem>>, vector<1x1x4x8xbf16>
    %116 = vector.shape_cast %115 : vector<1x1x4x8xbf16> to vector<4x8xbf16>
    %cst_106 = arith.constant dense<0.000000e+00> : vector<16x8xf32>
    %117 = tpu.matmul %114, %116, %cst_106 {dimension_numbers = #tpu.dot_dimension_numbers<[1], [0], [0], [1], [0, 0, 1, 1], [], []>} : vector<16x4xbf16>, vector<4x8xbf16>, vector<16x8xf32> -> vector<16x8xf32>
    %118 = arith.addf %112, %117 : vector<16x8xf32>
    %119 = arith.addf %99, %118 : vector<16x8xf32>
    %c0_107 = arith.constant 0 : index
    %c240_108 = arith.constant 240 : index
    %c0_109 = arith.constant 0 : index
    %120 = vector.load %arg6[%c0_107, %c240_108, %c0_109] : memref<1x256x8xf32, #tpu.memory_space<vmem>>, vector<1x16x8xf32>
    %121 = vector.shape_cast %120 : vector<1x16x8xf32> to vector<16x8xf32>
    %122 = vector.shape_cast %119 : vector<16x8xf32> to vector<1x16x8xf32>
    tpu.vector_store %arg6[%c0_107, %c240_108, %c0_109], %122 {strides = array<i32>} : memref<1x256x8xf32, #tpu.memory_space<vmem>>, vector<1x16x8xf32>,
    return
  }
  func.func @transform_0(%arg0: i32, %arg1: i32) -> (i32, i32, i32, i32) {
    %c0_i32 = arith.constant 0 : i32
    %c0_i32_0 = arith.constant 0 : i32
    %c0_i32_1 = arith.constant 0 : i32
    return %arg0, %arg1, %c0_i32, %c0_i32_0 : i32, i32, i32, i32
  }
  func.func @transform_1(%arg0: i32, %arg1: i32) -> (i32, i32, i32, i32) {
    %c0_i32 = arith.constant 0 : i32
    %c0_i32_0 = arith.constant 0 : i32
    %c0_i32_1 = arith.constant 0 : i32
    return %arg0, %arg1, %c0_i32, %c0_i32_0 : i32, i32, i32, i32
  }
  func.func @transform_2(%arg0: i32, %arg1: i32) -> (i32, i32, i32, i32) {
    %c0_i32 = arith.constant 0 : i32
    %c0_i32_0 = arith.constant 0 : i32
    %c0_i32_1 = arith.constant 0 : i32
    %c0_i32_2 = arith.constant 0 : i32
    %c0_i32_3 = arith.constant 0 : i32
    return %c0_i32, %c0_i32_0, %c0_i32_1, %c0_i32_2 : i32, i32, i32, i32
  }
  func.func @transform_3(%arg0: i32, %arg1: i32) -> (i32, i32) {
    %c0_i32 = arith.constant 0 : i32
    %c0_i32_0 = arith.constant 0 : i32
    %c0_i32_1 = arith.constant 0 : i32
    return %c0_i32, %c0_i32_0 : i32, i32
  }
  func.func @transform_4(%arg0: i32, %arg1: i32) -> (i32, i32, i32) {
    %c0_i32 = arith.constant 0 : i32
    %c0_i32_0 = arith.constant 0 : i32
    return %arg0, %arg1, %c0_i32 : i32, i32, i32
  }
}

</mosaic_0001>

<bundles_post_ra>
// kernel: _zero_conv2d_prepared.1
= control target key start
LH: loop header
LB: loop body
LE: loop exit
PB: predicated region body
PF: predicated region fallthrough
CT: control target
= control target key end

     0   :  { %s4443_s15 = smov 0   ;;  %s4445_s16 = smov 0   ;;  %s6388_s0 = inlined_call_operand.vmem [shape: bf16[2,16,18,4], index: 0, kind: input, shape index: {}]   ;;  %s6389_s1 = inlined_call_operand.vmem [shape: bf16[2,2,18,4], index: 1, kind: input, shape index: {}]   ;;  %s6390_s2 = inlined_call_operand.vmem [shape: bf16[3,3,4,8], index: 2, kind: input, shape index: {}]   ;;  %s6391_s3 = inlined_call_operand.vmem [shape: f32[1,8], index: 3, kind: input, shape index: {}]   ;;  %s6392_s4 = inlined_call_operand.vmem [shape: f32[2,256,8], index: 4, kind: output, shape index: {}]  }
   0x1   :  { %s4447_s17 = smov 0  }
   0x2 LB: > { %s26_s18 = sadd.s32 1, %s4410_s16  ;;  %p3429_p0 = scmp.ge.s32.totalorder %s4414_s17, 1  ;;  %s4414_s17 = sphi %s4447_s17, %s14_s17   ;;  %s4410_s16 = sphi %s4445_s16, %s6620_s16   ;;  %s4406_s15 = sphi %s4443_s15, %s6619_s15  }
   0x3   : > { %p28_p1 = scmp.ge.s32.totalorder %s26_s18, 2  ;;  %p202_p2 = scmp.lt.s32.totalorder %s4414_s17, 3 }
   0x5   : > { %s6622_s18 = smov (%p28_p1, %s26_s18), 0  ;;  %p203_p3 = pnand %p3429_p0, %p202_p2 }
   0x7   : > { %206 = sbr.rel (%p203_p3) target bundleno = 723 (0x2d3), region = 36 }
   0xc   : > { %v3435_v0 = vld [vmem:[%s6390_s2 + $0x8] sm:$0x3]  ;;  %vm816_vm0 = vcmask 1041408   ;;  %p248_p4 = scmp.lt.s32.totalorder %s4406_s15, 1  ;;  %v3434_v2 = vld [vmem:[%s6390_s2 + $0x6] sm:$0x3] }
   0xd   : > { %4337 = vmatprep.subr.msk.bf16.mxu0 %vm816_vm0, %v3435_v0  ;;  %4338 = vmatprep.subr.msk.bf16.mxu1 %vm816_vm0, %v3435_v0  ;;  %v818_v1 = vsel %vm816_vm0, %v3435_v0, 0  ;;  %v3516_v3 = vld [vmem:[%s6390_s2 + $0xa] sm:$0x3]  ;;  %vm330_vm1 = vsmask.f32 3328  ;;  %v4484_v4 = vsel %vm816_vm0, %v3434_v2, 0 }
   0xe   : > { %3826 = vmatpush3.bf16.msra.mxu0 %v818_v1  ;;  %4336 = vmatpush3.bf16.msra.mxu1 %v818_v1  ;;  %s6624_s15 = smov (!%p248_p4, %s4406_s15), 1  ;;  %vm331_vm2 = vsmask.f32 7440  ;;  %vm767_vm3 = vcmask 31744   ;;  %v4508_v16 = vsel %vm816_vm0, %v3516_v3, 0  ;;  %vm1289_vm5 = vcmask 1042432  }
   0xf   : > { %4339 = vmatprep.subr.msk.bf16.mxu1 %vm816_vm0, %v3434_v2  ;;  %4340 = vmatprep.subr.msk.bf16.mxu0 %vm816_vm0, %v3516_v3  ;;  %s4341_s25 = smul.u32 192, %s6624_s15  ;;  %v3550_v21 = vld [vmem:[%s6390_s2 + $0x2] sm:$0x3]  ;;  %vm4525_vm4 = vmor %vm330_vm1, %vm331_vm2  ;;  %vm1290_vm6 = vcmask 1046532   ;;  %vm4417_vm8 = vmmov 0   ;;  %vm1894_vm10 = vcmask 1046528  }
  0x10   : > { %v4530_v36 = vsel %vm816_vm0, %v3550_v21, 0  ;;  %s4342_s5 = smul.u32 24, %s6624_s15  ;;  %vm4928_vm7 = vmor %vm1289_vm5, %vm1290_vm6  ;;  %vm1786_vm9 = vsmask.f32 7424  ;;  %s3665_s29 = sshll.u32 %s6624_s15, 8  ;;  %vm1737_vm11 = vcmask 64512  }
  0x11   : > { %s4481_s28 = scalar_lea.vmem %s6388_s0, %s4341_s25  ;;  %s5491_s7 = scalar_lea.vmem %s6392_s4, %s3665_s29 }
  0x12   : > { %v4487_v5 = vld [vmem:[%s4481_s28] sm:$0xf]  ;;  %v4490_v6 = vld [vmem:[%s4481_s28 + $0x4] sm:$0xf]  ;;  %v4493_v7 = vld [vmem:[%s4481_s28 + $0x8] sm:$0x1]  ;;  %s4686_s8 = scalar_lea.vmem %s6389_s1, %s4342_s5 }
  0x13   : > { %v334_v8 = vshrl.u32 %v4487_v5, 16  ;;  %v337_v9 = vshll.u32 %v4487_v5, 16  ;;  %v343_v10 = vshll.u32 %v4490_v6, 16  ;;  %v347_v11 = vshrl.u32 %v4490_v6, 16  ;;  %v4500_v12 = vld [vmem:[%s4481_s28 + $0xa8] sm:$0xf] }
  0x14   : > { %v353_v13 = vshll.u32 %v4493_v7, 16  ;;  %v4504_v14 = vld [vmem:[%s4481_s28 + $0xac] sm:$0xf]  ;;  %v324_v15 = vld [vmem:[%s4481_s28 + $0xb0] sm:$0x1]  ;;  %v670_v23 = vshrl.u32 %v4500_v12, 16  ;;  %v4562_v0 = vcombine.low %v4487_v5, %v4490_v6 }
  0x15   : > { %v336_v17 = vrot.slane %v334_v8, 4  ;;  %v339_v18 = vrot.slane %v337_v9, 5  ;;  %v345_v19 = vrot.slane %v343_v10, 5  ;;  %v349_v20 = vrot.slane %v347_v11, 4  ;;  %v4518_v30 = vld [vmem:[%s4481_s28 + $0xc] sm:$0xf] }
  0x16   : > { %v355_v22 = vrot.slane %v353_v13, 5  ;;  %v673_v24 = vshll.u32 %v4500_v12, 16  ;;  %v679_v25 = vshll.u32 %v4504_v14, 16  ;;  %v683_v28 = vshrl.u32 %v4504_v14, 16  ;;  %v4521_v31 = vld [vmem:[%s4481_s28 + $0x10] sm:$0xf] }
  0x17   : > { %v340_v26 = vor.u32 %v339_v18, %v336_v17  ;;  %v350_v27 = vor.u32 %v349_v20, %v345_v19  ;;  %v689_v29 = vshll.u32 %v324_v15, 16  ;;  %v672_v33 = vrot.slane %v670_v23, 4  ;;  %v4533_v42 = vld [vmem:[%s4481_s28 + $0x14] sm:$0x1]  ;;  %v4550_v59 = vld [vmem:[%s4481_s28 + $0xb8] sm:$0xf] }
  0x18   : > { %v675_v34 = vrot.slane %v673_v24, 5  ;;  %v681_v35 = vrot.slane %v679_v25, 5  ;;  %v685_v39 = vrot.slane %v683_v28, 4  ;;  %v358_v43 = vshrl.u32 %v4518_v30, 16  ;;  %v4546_v54 = vld [vmem:[%s4481_s28 + $0xb4] sm:$0xf] }
  0x19   : > { %v341_v37 = vrot.slane %v340_v26, 4  ;;  %v351_v38 = vrot.slane %v350_v27, 4  ;;  %v691_v40 = vrot.slane %v689_v29, 5  ;;  %v361_v44 = vshll.u32 %v4518_v30, 16  ;;  %v4558_v63 = vld [vmem:[%s4481_s28 + $0xbc] sm:$0x1] }
  0x1a   : > { %v676_v41 = vor.u32 %v675_v34, %v672_v33  ;;  %v367_v45 = vshll.u32 %v4521_v31, 16  ;;  %v686_v48 = vor.u32 %v685_v39, %v681_v35  ;;  %v371_v49 = vshrl.u32 %v4521_v31, 16  ;;  %6472 = vst [vmem:[#allocation3_spill] sm:$0xff] %v4558_v63  ;;  %6473 = vst [vmem:[#allocation4_spill] sm:$0xff] %v4562_v0  ;;  %v4568_v9 = vld [vmem:[%s4481_s28 + $0x18] sm:$0xf] }
  0x1b   : > { %v346_v46 = vsel %vm4525_vm4, %v341_v37, %v345_v19  ;;  %v356_v47 = vsel %vm4525_vm4, %v351_v38, %v355_v22  ;;  %v360_v52 = vrot.slane %v358_v43, 4  ;;  %v363_v53 = vrot.slane %v361_v44, 5  ;;  %v4577_v21 = vld [vmem:[%s4481_s28 + $0x1c] sm:$0xf]  ;;  %v4584_v25 = vld [vmem:[%s4481_s28 + $0x20] sm:$0x1] }
  0x1c   : > { %v4543_v50 = vcombine.low %v346_v46, %v356_v47  ;;  %v677_v51 = vrot.slane %v676_v41, 4  ;;  %v687_v55 = vrot.slane %v686_v48, 4  ;;  %v369_v56 = vrot.slane %v367_v45, 5  ;;  %v4591_v34 = vld [vmem:[%s4481_s28 + $0x24] sm:$0xf] }
  0x1d   : > { %v373_v57 = vrot.slane %v371_v49, 4  ;;  %v377_v58 = vshll.u32 %v4533_v42, 16  ;;  %v364_v61 = vor.u32 %v363_v53, %v360_v52  ;;  %v694_v8 = vshrl.u32 %v4546_v54, 16  ;;  %v4599_v45 = vld [vmem:[%s4481_s28 + $0x28] sm:$0xf] }
  0x1e   : > { %6471 = vst [vmem:[#allocation2_spill] sm:$0xff] %v4543_v50  ;;  %3827 = vmatprep.mubr.msk.bf16.mxu0 %vm767_vm3, %v4543_v50  ;;  %v682_v60 = vsel %vm4525_vm4, %v677_v51, %v681_v35  ;;  %v692_v1 = vsel %vm4525_vm4, %v687_v55, %v691_v40  ;;  %v697_v13 = vshll.u32 %v4546_v54, 16  ;;  %v703_v15 = vshll.u32 %v4550_v59, 16  ;;  %v4738_v62 = vld [vmem:[%s4481_s28 + $0x60] sm:$0xf] }
  0x1f   : > { %v374_v2 = vor.u32 %v373_v57, %v369_v56  ;;  %v379_v3 = vrot.slane %v377_v58, 5  ;;  %v4570_v10 = vcombine.low %v682_v60, %v692_v1  ;;  %v365_v11 = vrot.slane %v364_v61, 4 }
  0x20   : > { %v696_v18 = vrot.slane %v694_v8, 4  ;;  %v707_v19 = vshrl.u32 %v4550_v59, 16  ;;  %v713_v20 = vshll.u32 %v4558_v63, 16  ;;  %v699_v23 = vrot.slane %v697_v13, 5  ;;  %v4850_v63 = vld [vmem:[%s4481_s28 + $0x90] sm:$0xf] }
  0x21   : > { %6474 = vst [vmem:[#allocation5_spill] sm:$0xff] %v4570_v10  ;;  %v375_v17 = vrot.slane %v374_v2, 4  ;;  %3855 = vmatprep.mubr.msk.bf16.mxu1 %vm767_vm3, %v4570_v10  ;;  %v370_v22 = vsel %vm4525_vm4, %v365_v11, %v369_v56  ;;  %v705_v24 = vrot.slane %v703_v15, 5  ;;  %v382_v26 = vshrl.u32 %v4568_v9, 16  ;;  %v4607_v56 = vld [vmem:[%s4481_s28 + $0x2c] sm:$0x1] }
  0x22   : > { %v709_v28 = vrot.slane %v707_v19, 4  ;;  %v715_v29 = vrot.slane %v713_v20, 5  ;;  %v385_v33 = vshll.u32 %v4568_v9, 16  ;;  %v700_v37 = vor.u32 %v699_v23, %v696_v18  ;;  %v4617_v11 = vld [vmem:[%s4481_s28 + $0x30] sm:$0xf] }
  0x23   : > { %v380_v27 = vsel %vm4525_vm4, %v375_v17, %v379_v3  ;;  %v384_v38 = vrot.slane %v382_v26, 4  ;;  %v391_v39 = vshll.u32 %v4577_v21, 16  ;;  %v395_v43 = vshrl.u32 %v4577_v21, 16  ;;  %v4623_v19 = vld [vmem:[%s4481_s28 + $0x34] sm:$0xf] }
  0x24   : > { %v4593_v35 = vcombine.low %v370_v22, %v380_v27  ;;  %v710_v40 = vor.u32 %v709_v28, %v705_v24  ;;  %v387_v41 = vrot.slane %v385_v33, 5  ;;  %v401_v44 = vshll.u32 %v4584_v25, 16  ;;  %v4634_v28 = vld [vmem:[%s4481_s28 + $0x38] sm:$0x1]  ;;  %v4773_v10 = vld [vmem:[%s4481_s28 + $0x70] sm:$0xf] }
  0x25   : > { %v701_v46 = vrot.slane %v700_v37, 4  ;;  %v393_v47 = vrot.slane %v391_v39, 5  ;;  %v406_v48 = vshrl.u32 %v4591_v34, 16  ;;  %v409_v49 = vshll.u32 %v4591_v34, 16 }
  0x26   : > { %6475 = vst [vmem:[#allocation6_spill] sm:$0xff] %v4593_v35  ;;  %3828 = vmatmul.mubr.msk.bf16.vlgmr.msra.gmra.mxu0 %vm767_vm3, %v4593_v35  ;;  %v711_v51 = vrot.slane %v710_v40, 4  ;;  %v388_v52 = vor.u32 %v387_v41, %v384_v38  ;;  %v397_v53 = vrot.slane %v395_v43, 4  ;;  %v403_v55 = vrot.slane %v401_v44, 5  ;;  %v4646_v41 = vld [vmem:[%s4481_s28 + $0x3c] sm:$0xf] }
  0x27   : > { %3894 = vmatpush3.bf16.msra.mxu0 %v4508_v16  ;;  %v706_v57 = vsel %vm4525_vm4, %v701_v46, %v705_v24  ;;  %v408_v58 = vrot.slane %v406_v48, 4  ;;  %v411_v60 = vrot.slane %v409_v49, 5  ;;  %v415_v61 = vshll.u32 %v4599_v45, 16 }
  0x28   : > { %v6393_v1 = vmov 0.0   ;;  %v716_v2 = vsel %vm4525_vm4, %v711_v51, %v715_v29  ;;  %v389_v16 = vrot.slane %v388_v52, 4  ;;  %v398_v3 = vor.u32 %v397_v53, %v393_v47 }
  0x29   : > { %4007 = vmatprep.subr.bf16.mxu0 %v6393_v1  ;;  %v419_v8 = vshrl.u32 %v4599_v45, 16  ;;  %v4619_v13 = vcombine.low %v706_v57, %v716_v2  ;;  %v412_v15 = vor.u32 %v411_v60, %v408_v58  ;;  %v417_v17 = vrot.slane %v415_v61, 5  ;;  %v4665_v57 = vld [vmem:[%s4481_s28 + $0x44] sm:$0x1] }
  0x2a   : > { %v425_v18 = vshll.u32 %v4607_v56, 16  ;;  %v394_v20 = vsel %vm4525_vm4, %v389_v16, %v393_v47  ;;  %v399_v22 = vrot.slane %v398_v3, 4  ;;  %v4629_v24 = vcombine.low %v4518_v30, %v4521_v31  ;;  %v4654_v47 = vld [vmem:[%s4481_s28 + $0x40] sm:$0xf] }
  0x2b   : > { %6476 = vst [vmem:[#allocation7_spill] sm:$0xff] %v4619_v13  ;;  %v421_v23 = vrot.slane %v419_v8, 4  ;;  %3856 = vmatmul.mubr.msk.bf16.vlgmr.msra.gmra.mxu1 %vm767_vm3, %v4619_v13  ;;  %v413_v26 = vrot.slane %v412_v15, 4  ;;  %v430_v29 = vshrl.u32 %v4617_v11, 16  ;;  %v433_v33 = vshll.u32 %v4617_v11, 16 }
  0x2c   : > { %6477 = vst [vmem:[#allocation8_spill] sm:$0xff] %v4629_v24  ;;  %v427_v27 = vrot.slane %v425_v18, 5  ;;  %3860 = vmatpush3.bf16.msra.mxu1 %v4484_v4  ;;  %v404_v37 = vsel %vm4525_vm4, %v399_v22, %v403_v55  ;;  %3861 = vmatprep.mubr.msk.bf16.mxu1 %vm767_vm3, %v4562_v0  ;;  %v439_v39 = vshll.u32 %v4623_v19, 16  ;;  %v443_v40 = vshrl.u32 %v4623_v19, 16  ;;  %v4673_v8 = vld [vmem:[%s4481_s28 + $0x48] sm:$0xf] }
  0x2d   : > { %v422_v38 = vor.u32 %v421_v23, %v417_v17  ;;  %v4648_v43 = vcombine.low %v394_v20, %v404_v37  ;;  %3927 = vmatprep.subr.bf16.mxu1 %v6393_v1  ;;  %v418_v4 = vsel %vm4525_vm4, %v413_v26, %v417_v17  ;;  %v432_v44 = vrot.slane %v430_v29, 4  ;;  %v4676_v15 = vld [vmem:[%s4481_s28 + $0x4c] sm:$0xf]  ;;  %v4681_v23 = vld [vmem:[%s4481_s28 + $0x50] sm:$0x1] }
  0x2e   : > { %v435_v46 = vrot.slane %v433_v33, 5  ;;  %v441_v49 = vrot.slane %v439_v39, 5  ;;  %v445_v51 = vrot.slane %v443_v40, 4  ;;  %v449_v52 = vshll.u32 %v4634_v28, 16 }
  0x2f   : > { %6478 = vst [vmem:[#allocation9_spill] sm:$0xff] %v4648_v43  ;;  %v423_v48 = vrot.slane %v422_v38, 4  ;;  %3831 = vmatprep.mubr.msk.bf16.mxu0 %vm767_vm3, %v4648_v43  ;;  %v4662_v55 = vcombine.low %v4568_v9, %v4577_v21  ;;  %v454_v58 = vshrl.u32 %v4646_v41, 16  ;;  %v457_v60 = vshll.u32 %v4646_v41, 16 }
  0x30   : > { %v436_v53 = vor.u32 %v435_v46, %v432_v44  ;;  %v446_v2 = vor.u32 %v445_v51, %v441_v49  ;;  %v451_v16 = vrot.slane %v449_v52, 5  ;;  %v463_v3 = vshll.u32 %v4654_v47, 16 }
  0x31   : > { %6479 = vst [vmem:[#allocation10_spill] sm:$0xff] %v4662_v55  ;;  %v428_v61 = vsel %vm4525_vm4, %v423_v48, %v427_v27  ;;  %v456_v20 = vrot.slane %v454_v58, 4  ;;  %v459_v22 = vrot.slane %v457_v60, 5  ;;  %v467_v29 = vshrl.u32 %v4654_v47, 16 }
  0x32   : > { %v4678_v17 = vcombine.low %v418_v4, %v428_v61  ;;  %v437_v18 = vrot.slane %v436_v53, 4  ;;  %v447_v26 = vrot.slane %v446_v2, 4  ;;  %v465_v27 = vrot.slane %v463_v3, 5  ;;  %v4720_v3 = vld [vmem:[%s4481_s28 + $0x5c] sm:$0x1] }
  0x33   : > { %v473_v33 = vshll.u32 %v4665_v57, 16  ;;  %3862 = vmatmul.mubr.msk.bf16.vlgmr.msra.gmra.mxu1 %vm767_vm3, %v4629_v24  ;;  %v460_v38 = vor.u32 %v459_v22, %v456_v20  ;;  %v4698_v39 = vcombine.low %v4591_v34, %v4599_v45  ;;  %v478_v40 = vshrl.u32 %v4673_v8, 16 }
  0x34   : > { %6480 = vst [vmem:[#allocation11_spill] sm:$0xff] %v4678_v17  ;;  %3832 = vmatmul.mubr.msk.bf16.gmra.mxu0 %vm767_vm3, %v4678_v17  ;;  %v442_v37 = vsel %vm4525_vm4, %v437_v18, %v441_v49  ;;  %3928 = vmatpush3.bf16.msra.mxu1 %v4530_v36  ;;  %v452_v4 = vsel %vm4525_vm4, %v447_v26, %v451_v16  ;;  %v469_v44 = vrot.slane %v467_v29, 4  ;;  %v481_v48 = vshll.u32 %v4673_v8, 16  ;;  %v4708_v49 = vld [vmem:[%s4481_s28 + $0x54] sm:$0xf] }
  0x35   : > { %6481 = vst [vmem:[#allocation12_spill] sm:$0xff] %v4698_v39  ;;  %3865 = vmatprep.mubr.msk.bf16.mxu1 %vm767_vm3, %v4662_v55  ;;  %v475_v46 = vrot.slane %v473_v33, 5  ;;  %v4710_v51 = vcombine.low %v442_v37, %v452_v4  ;;  %v461_v52 = vrot.slane %v460_v38, 4  ;;  %v480_v53 = vrot.slane %v478_v40, 4  ;;  %v4714_v36 = vld [vmem:[%s4481_s28 + $0x58] sm:$0xf]  ;;  %3933 = vmatprep.subr.bf16.mxu1 %v6393_v1 }
  0x36   : > { %v487_v58 = vshll.u32 %v4676_v15, 16  ;;  %v470_v60 = vor.u32 %v469_v44, %v465_v27  ;;  %v483_v61 = vrot.slane %v481_v48, 5  ;;  %v491_v2 = vshrl.u32 %v4676_v15, 16 }
  0x37   : > { %6482 = vst [vmem:[#allocation13_spill] sm:$0xff] %v4710_v51  ;;  %v497_v16 = vshll.u32 %v4681_v23, 16  ;;  %3835 = vmatprep.mubr.msk.bf16.mxu0 %vm767_vm3, %v4710_v51  ;;  %v466_v18 = vsel %vm4525_vm4, %v461_v52, %v465_v27  ;;  %v4728_v22 = vcombine.low %v4617_v11, %v4623_v19  ;;  %v502_v26 = vshrl.u32 %v4708_v49, 16  ;;  %v4821_v51 = vld [vmem:[%s4481_s28 + $0x84] sm:$0xf] }
  0x38   : > { %v489_v20 = vrot.slane %v487_v58, 5  ;;  %v471_v29 = vrot.slane %v470_v60, 4  ;;  %v484_v33 = vor.u32 %v483_v61, %v480_v53  ;;  %v493_v37 = vrot.slane %v491_v2, 4  ;;  %v4741_v53 = vld [vmem:[%s4481_s28 + $0x64] sm:$0xf] }
  0x39   : > { %6483 = vst [vmem:[#allocation14_spill] sm:$0xff] %v4728_v22  ;;  %v499_v38 = vrot.slane %v497_v16, 5  ;;  %v504_v40 = vrot.slane %v502_v26, 4  ;;  %v505_v4 = vshll.u32 %v4708_v49, 16  ;;  %v511_v44 = vshll.u32 %v4714_v36, 16 }
  0x3a   : > { %v515_v27 = vshrl.u32 %v4714_v36, 16  ;;  %v476_v48 = vsel %vm4525_vm4, %v471_v29, %v475_v46  ;;  %v485_v52 = vrot.slane %v484_v33, 4  ;;  %v494_v58 = vor.u32 %v493_v37, %v489_v20  ;;  %v4748_v26 = vld [vmem:[%s4481_s28 + $0x68] sm:$0x1] }
  0x3b   : > { %v521_v1 = vshll.u32 %v4720_v3, 16  ;;  %v4743_v60 = vcombine.low %v466_v18, %v476_v48  ;;  %3866 = vmatmul.mubr.msk.bf16.gmra.mxu1 %vm767_vm3, %v4698_v39  ;;  %v507_v61 = vrot.slane %v505_v4, 5  ;;  %v513_v2 = vrot.slane %v511_v44, 5 }
  0x3c   : > { %v517_v16 = vrot.slane %v515_v27, 4  ;;  %v490_v46 = vsel %vm4525_vm4, %v485_v52, %v489_v20  ;;  %v495_v29 = vrot.slane %v494_v58, 4  ;;  %3869 = vmatprep.mubr.msk.bf16.mxu1 %vm767_vm3, %v4728_v22  ;;  %v4756_v18 = vcombine.low %v4646_v41, %v4654_v47  ;;  %v4768_v58 = vld [vmem:[%s4481_s28 + $0x6c] sm:$0xf] }
  0x3d   : > { %6484 = vst [vmem:[#allocation15_spill] sm:$0xff] %v4743_v60  ;;  %v523_v33 = vrot.slane %v521_v1, 5  ;;  %3836 = vmatmul.mubr.msk.bf16.gmra.mxu0 %vm767_vm3, %v4743_v60  ;;  %v508_v37 = vor.u32 %v507_v61, %v504_v40  ;;  %v526_v44 = vshrl.u32 %v4738_v62, 16  ;;  %v529_v20 = vshll.u32 %v4738_v62, 16  ;;  %6486 = vst [vmem:[#allocation17_spill] sm:$0xff] %v4768_v58 }
  0x3e   : > { %6485 = vst [vmem:[#allocation16_spill] sm:$0xff] %v4756_v18  ;;  %v518_v4 = vor.u32 %v517_v16, %v513_v2  ;;  %v500_v27 = vsel %vm4525_vm4, %v495_v29, %v499_v38  ;;  %v535_v1 = vshll.u32 %v4741_v53, 16  ;;  %v539_v48 = vshrl.u32 %v4741_v53, 16  ;;  %v4776_v29 = vld [vmem:[%s4481_s28 + $0x74] sm:$0x1] }
  0x3f   : > { %v545_v52 = vshll.u32 %v4748_v26, 16  ;;  %v4770_v13 = vcombine.low %v490_v46, %v500_v27  ;;  %v509_v40 = vrot.slane %v508_v37, 4  ;;  %v528_v16 = vrot.slane %v526_v44, 4  ;;  %6488 = vst [vmem:[#allocation19_spill] sm:$0xff] %v4776_v29 }
  0x40   : > { %v519_v61 = vrot.slane %v518_v4, 4  ;;  %v531_v22 = vrot.slane %v529_v20, 5  ;;  %v537_v39 = vrot.slane %v535_v1, 5  ;;  %v541_v55 = vrot.slane %v539_v48, 4  ;;  %v4793_v48 = vld [vmem:[%s4481_s28 + $0x78] sm:$0xf] }
  0x41   : > { %6487 = vst [vmem:[#allocation18_spill] sm:$0xff] %v4770_v13  ;;  %v547_v38 = vrot.slane %v545_v52, 5  ;;  %3839 = vmatprep.mubr.msk.bf16.mxu0 %vm767_vm3, %v4770_v13  ;;  %v514_v60 = vsel %vm4525_vm4, %v509_v40, %v513_v2  ;;  %v4786_v37 = vcombine.low %v4673_v8, %v4676_v15  ;;  %v550_v4 = vshrl.u32 %v4768_v58, 16 }
  0x42   : > { %v524_v46 = vsel %vm4525_vm4, %v519_v61, %v523_v33  ;;  %v532_v20 = vor.u32 %v531_v22, %v528_v16  ;;  %v542_v27 = vor.u32 %v541_v55, %v537_v39  ;;  %v553_v1 = vshll.u32 %v4768_v58, 16  ;;  %v4807_v16 = vld [vmem:[%s4481_s28 + $0x7c] sm:$0xf] }
  0x43   : > { %6489 = vst [vmem:[#allocation20_spill] sm:$0xff] %v4786_v37  ;;  %v4789_v44 = vcombine.low %v514_v60, %v524_v46  ;;  %3870 = vmatmul.mubr.msk.bf16.gmra.mxu1 %vm767_vm3, %v4756_v18  ;;  %v552_v2 = vrot.slane %v550_v4, 4  ;;  %v559_v33 = vshll.u32 %v4773_v10, 16  ;;  %v563_v52 = vshrl.u32 %v4773_v10, 16 }
  0x44   : > { %v569_v40 = vshll.u32 %v4776_v29, 16  ;;  %v533_v61 = vrot.slane %v532_v20, 4  ;;  %v543_v60 = vrot.slane %v542_v27, 4  ;;  %3873 = vmatprep.mubr.msk.bf16.mxu1 %vm767_vm3, %v4786_v37  ;;  %v555_v55 = vrot.slane %v553_v1, 5  ;;  %v4812_v20 = vld [vmem:[%s4481_s28 + $0x80] sm:$0x1] }
  0x45   : > { %6490 = vst [vmem:[#allocation21_spill] sm:$0xff] %v4789_v44  ;;  %v4804_v22 = vcombine.low %v4708_v49, %v4714_v36  ;;  %3840 = vmatmul.mubr.msk.bf16.gmra.mxu0 %vm767_vm3, %v4789_v44  ;;  %v561_v46 = vrot.slane %v559_v33, 5  ;;  %v565_v4 = vrot.slane %v563_v52, 4  ;;  %6492 = vst [vmem:[#allocation23_spill] sm:$0xff] %v4812_v20  ;;  %v574_v27 = vshrl.u32 %v4793_v48, 16 }
  0x46   : > { %v571_v18 = vrot.slane %v569_v40, 5  ;;  %v538_v1 = vsel %vm4525_vm4, %v533_v61, %v537_v39  ;;  %v548_v37 = vsel %vm4525_vm4, %v543_v60, %v547_v38  ;;  %v556_v13 = vor.u32 %v555_v55, %v552_v2  ;;  %v4829_v61 = vld [vmem:[%s4481_s28 + $0x88] sm:$0xf] }
  0x47   : > { %6491 = vst [vmem:[#allocation22_spill] sm:$0xff] %v4804_v22  ;;  %v577_v24 = vshll.u32 %v4793_v48, 16  ;;  %v4823_v44 = vcombine.low %v538_v1, %v548_v37  ;;  %v566_v33 = vor.u32 %v565_v4, %v561_v46  ;;  %v576_v52 = vrot.slane %v574_v27, 4  ;;  %v4841_v27 = vld [vmem:[%s4481_s28 + $0x8c] sm:$0x1] }
  0x48   : > { %v583_v40 = vshll.u32 %v4807_v16, 16  ;;  %v557_v0 = vrot.slane %v556_v13, 4  ;;  %v587_v43 = vshrl.u32 %v4807_v16, 16  ;;  %v593_v39 = vshll.u32 %v4812_v20, 16  ;;  %6495 = vst [vmem:[#allocation26_spill] sm:$0xff] %v4841_v27 }
  0x49   : > { %6493 = vst [vmem:[#allocation24_spill] sm:$0xff] %v4823_v44  ;;  %v579_v17 = vrot.slane %v577_v24, 5  ;;  %3843 = vmatprep.mubr.msk.bf16.mxu0 %vm767_vm3, %v4823_v44  ;;  %v567_v38 = vrot.slane %v566_v33, 4  ;;  %v4835_v2 = vcombine.low %v4738_v62, %v4741_v53  ;;  %v598_v60 = vshrl.u32 %v4821_v51, 16 }
  0x4a   : > { %v585_v37 = vrot.slane %v583_v40, 5  ;;  %v562_v13 = vsel %vm4525_vm4, %v557_v0, %v561_v46  ;;  %v589_v55 = vrot.slane %v587_v43, 4  ;;  %v595_v4 = vrot.slane %v593_v39, 5  ;;  %v4858_v46 = vld [vmem:[%s4481_s28 + $0x94] sm:$0xf] }
  0x4b   : > { %6494 = vst [vmem:[#allocation25_spill] sm:$0xff] %v4835_v2  ;;  %v580_v24 = vor.u32 %v579_v17, %v576_v52  ;;  %v572_v1 = vsel %vm4525_vm4, %v567_v38, %v571_v18  ;;  %3874 = vmatmul.mubr.msk.bf16.gmra.mxu1 %vm767_vm3, %v4804_v22  ;;  %v600_v33 = vrot.slane %v598_v60, 4  ;;  %v601_v40 = vshll.u32 %v4821_v51, 16 }
  0x4c   : > { %v607_v44 = vshll.u32 %v4829_v61, 16  ;;  %v4852_v0 = vcombine.low %v562_v13, %v572_v1  ;;  %v590_v43 = vor.u32 %v589_v55, %v585_v37  ;;  %3877 = vmatprep.mubr.msk.bf16.mxu1 %vm767_vm3, %v4835_v2  ;;  %v611_v18 = vshrl.u32 %v4829_v61, 16  ;;  %v4871_v2 = vld [vmem:[%s4481_s28 + $0x98] sm:$0x1] }
  0x4d   : > { %v581_v17 = vrot.slane %v580_v24, 4  ;;  %v603_v52 = vrot.slane %v601_v40, 5  ;;  %v617_v38 = vshll.u32 %v4841_v27, 16  ;;  %v4863_v60 = vcombine.low %v4768_v58, %v4773_v10  ;;  %6498 = vst [vmem:[#allocation29_spill] sm:$0xff] %v4871_v2 }
  0x4e   : > { %6496 = vst [vmem:[#allocation27_spill] sm:$0xff] %v4852_v0  ;;  %v609_v39 = vrot.slane %v607_v44, 5  ;;  %3844 = vmatmul.mubr.msk.bf16.gmra.mxu0 %vm767_vm3, %v4852_v0  ;;  %v591_v24 = vrot.slane %v590_v43, 4  ;;  %v613_v55 = vrot.slane %v611_v18, 4  ;;  %v622_v44 = vshrl.u32 %v4850_v63, 16 }
  0x4f   : > { %6497 = vst [vmem:[#allocation28_spill] sm:$0xff] %v4863_v60  ;;  %v586_v13 = vsel %vm4525_vm4, %v581_v17, %v585_v37  ;;  %v604_v1 = vor.u32 %v603_v52, %v600_v33  ;;  %v619_v40 = vrot.slane %v617_v38, 5  ;;  %v625_v22 = vshll.u32 %v4850_v63, 16  ;;  %v4879_v17 = vld [vmem:[%s4481_s28 + $0x9c] sm:$0xf] }
  0x50   : > { %v631_v35 = vshll.u32 %v4858_v46, 16  ;;  %v596_v50 = vsel %vm4525_vm4, %v591_v24, %v595_v4  ;;  %v614_v0 = vor.u32 %v613_v55, %v609_v39  ;;  %v624_v27 = vrot.slane %v622_v44, 4  ;;  %v4884_v38 = vld [vmem:[%s4481_s28 + $0xa0] sm:$0xf] }
  0x51   : > { %v635_v37 = vshrl.u32 %v4858_v46, 16  ;;  %v4881_v43 = vcombine.low %v586_v13, %v596_v50  ;;  %v605_v33 = vrot.slane %v604_v1, 4  ;;  %v627_v18 = vrot.slane %v625_v22, 5  ;;  %v4898_v22 = vld [vmem:[%s4481_s28 + $0xa4] sm:$0x1] }
  0x52   : > { %v633_v52 = vrot.slane %v631_v35, 5  ;;  %v615_v20 = vrot.slane %v614_v0, 4  ;;  %v641_v58 = vshll.u32 %v4871_v2, 16  ;;  %v4889_v4 = vcombine.low %v4793_v48, %v4807_v16 }
  0x53   : > { %6499 = vst [vmem:[#allocation30_spill] sm:$0xff] %v4881_v43  ;;  %v637_v29 = vrot.slane %v635_v37, 4  ;;  %3847 = vmatprep.mubr.msk.bf16.mxu0 %vm767_vm3, %v4881_v43  ;;  %v610_v50 = vsel %vm4525_vm4, %v605_v33, %v609_v39  ;;  %3878 = vmatmul.mubr.msk.bf16.gmra.mxu1 %vm767_vm3, %v4863_v60  ;;  %v628_v35 = vor.u32 %v627_v18, %v624_v27  ;;  %v646_v0 = vshrl.u32 %v4879_v17, 16 }
  0x54   : > { %6500 = vst [vmem:[#allocation31_spill] sm:$0xff] %v4889_v4  ;;  %v649_v13 = vshll.u32 %v4879_v17, 16  ;;  %v620_v24 = vsel %vm4525_vm4, %v615_v20, %v619_v40  ;;  %v643_v44 = vrot.slane %v641_v58, 5  ;;  %3881 = vmatprep.mubr.msk.bf16.mxu1 %vm767_vm3, %v4889_v4  ;;  %v655_v39 = vshll.u32 %v4884_v38, 16 }
  0x55   : > { %v638_v55 = vor.u32 %v637_v29, %v633_v52  ;;  %v4907_v1 = vcombine.low %v610_v50, %v620_v24  ;;  %v629_v37 = vrot.slane %v628_v35, 4  ;;  %v648_v27 = vrot.slane %v646_v0, 4 }
  0x56   : > { %v651_v33 = vrot.slane %v649_v13, 5  ;;  %v657_v60 = vrot.slane %v655_v39, 5  ;;  %v659_v43 = vshrl.u32 %v4884_v38, 16  ;;  %v665_v2 = vshll.u32 %v4898_v22, 16 }
  0x57   : > { %6501 = vst [vmem:[#allocation32_spill] sm:$0xff] %v4907_v1  ;;  %v639_v18 = vrot.slane %v638_v55, 4  ;;  %v1304_v20 = vrot.slane %v4533_v42, 5  ;;  %3848 = vmatmul.mubr.msk.bf16.gmra.mxu0 %vm767_vm3, %v4907_v1  ;;  %v634_v58 = vsel %vm4525_vm4, %v629_v37, %v633_v52  ;;  %v4918_v40 = vcombine.low %v4821_v51, %v4829_v61  ;;  %v3605_v42 = vld [vmem:[%s6390_s2 + $0xe] sm:$0x3] }
  0x58   : > { %v652_v29 = vor.u32 %v651_v33, %v648_v27  ;;  %v661_v35 = vrot.slane %v659_v43, 4  ;;  %v4924_v0 = vcombine.low %v4850_v63, %v4858_v46  ;;  %v3500_v52 = vrot.slane %v4487_v5, 9 }
  0x59   : > { %6502 = vst [vmem:[#allocation33_spill] sm:$0xff] %v4918_v40  ;;  %v644_v50 = vsel %vm4525_vm4, %v639_v18, %v643_v44  ;;  %v1297_v13 = vrot.slane %v4493_v7, 5  ;;  %v1294_v44 = vrot.slane %v4490_v6, 5  ;;  %v667_v39 = vrot.slane %v665_v2, 5 }
  0x5a   : > { %6503 = vst [vmem:[#allocation34_spill] sm:$0xff] %v4924_v0  ;;  %v4934_v24 = vcombine.low %v634_v58, %v644_v50  ;;  %v653_v55 = vrot.slane %v652_v29, 4  ;;  %v662_v43 = vor.u32 %v661_v35, %v657_v60  ;;  %v3501_v37 = vrot.slane %v4518_v30, 9 }
  0x5b   : > { %v6507_v27 = vrot.slane %v4521_v31, 5  ;;  %3882 = vmatmul.mubr.msk.bf16.gmra.mxu1 %vm767_vm3, %v4918_v40  ;;  %v1295_v7 = vsel %vm4928_vm7, %v3500_v52, %v1294_v44  ;;  %v1296_v6 = vrot.slane %v1294_v44, 4  ;;  %v1308_v58 = vrot.slane %v4577_v21, 5 }
  0x5c   : > { %6506 = vst [vmem:[#allocation35_spill] sm:$0xff] %v4934_v24  ;;  %3851 = vmatprep.mubr.msk.bf16.mxu0 %vm767_vm3, %v4934_v24  ;;  %v658_v5 = vsel %vm4525_vm4, %v653_v55, %v657_v60  ;;  %v663_v18 = vrot.slane %v662_v43, 4  ;;  %3885 = vmatprep.mubr.msk.bf16.mxu1 %vm767_vm3, %v4924_v0  ;;  %v4961_v50 = vcombine.low %v4879_v17, %v4884_v38  ;;  %v3502_v31 = vrot.slane %v4568_v9, 9  ;;  %v4981_v9 = vld [vmem:[%s4686_s8] sm:$0xff]  }
  0x5d   : > { %v1303_v33 = vrot.slane %v6507_v27, 4  ;;  %v6508_v30 = vmov %v6507_v27  ;;  %v1298_v29 = vsel %vm4928_vm7, %v1296_v6, %v1297_v13  ;;  %v1310_v44 = vrot.slane %v1308_v58, 4 }
  0x5e   : > { %v1302_v2 = vsel %vm4928_vm7, %v3501_v37, %v6508_v30  ;;  %6509 = vst [vmem:[#allocation36_spill] sm:$0xff] %v4961_v50  ;;  %v668_v52 = vsel %vm4525_vm4, %v663_v18, %v667_v39  ;;  %v4968_v55 = vcombine.low %v1295_v7, %v1298_v29  ;;  %v3503_v13 = vrot.slane %v4591_v34, 9  ;;  %v5011_v7 = vld [vmem:[%s4686_s8 + $0x8] ss:$0 sps:$4 sm:$0x11]  }
  0x5f   : > { %v1305_v60 = vsel %vm4928_vm7, %v1303_v33, %v1304_v20  ;;  %v1311_v20 = vrot.slane %v4584_v25, 5  ;;  %v4971_v21 = vcombine.low %v658_v5, %v668_v52  ;;  %v1315_v43 = vrot.slane %v4599_v45, 5 }
  0x60   : > { %v4963_v35 = vcombine.low %v1302_v2, %v1305_v60  ;;  %v1318_v37 = vrot.slane %v4607_v56, 5  ;;  %v4978_v27 = vcombine.low %v4500_v12, %v4504_v14  ;;  %v3505_v34 = vrot.slane %v4646_v41, 9  ;;  %v1981_v12 = vld [vmem:[%s6390_s2] sm:$0x3] }
  0x61   : > { %6511 = vst [vmem:[#allocation38_spill] sm:$0xff] %v4971_v21  ;;  %3852 = vmatmul.mubr.msk.bf16.gmra.mxu0 %vm767_vm3, %v4971_v21  ;;  %v1316_v32 = vsel %vm4928_vm7, %v3503_v13, %v1315_v43  ;;  %v1317_v25 = vrot.slane %v1315_v43, 4  ;;  %v1329_v14 = vrot.slane %v4654_v47, 5  ;;  %v1332_v45 = vrot.slane %v4665_v57, 5 }
  0x62   : > { %6510 = vst [vmem:[#allocation37_spill] sm:$0xff] %v4963_v35  ;;  %6512 = vst [vmem:[#allocation39_spill] sm:$0xff] %v4978_v27  ;;  %3895 = vmatprep.mubr.msk.bf16.mxu0 %vm767_vm3, %v4968_v55  ;;  %v1309_v56 = vsel %vm4928_vm7, %v3502_v31, %v1308_v58  ;;  %v1312_v41 = vsel %vm4928_vm7, %v1310_v44, %v1311_v20  ;;  %v1322_v33 = vrot.slane %v4623_v19, 5  ;;  %v1790_v6 = vshll.u32 %v4981_v9, 16 }
  0x63   : > { %3886 = vmatmul.mubr.msk.bf16.gmra.mxu1 %vm767_vm3, %v4961_v50  ;;  %v1319_v39 = vsel %vm4928_vm7, %v1317_v25, %v1318_v37  ;;  %v1330_v57 = vsel %vm4928_vm7, %v3505_v34, %v1329_v14  ;;  %v1331_v5 = vrot.slane %v1329_v14, 4  ;;  %v2140_v18 = vsel %vm816_vm0, %v1981_v12, 0 }
  0x64   : > { %3889 = vmatprep.mubr.msk.bf16.mxu1 %vm767_vm3, %v4978_v27  ;;  %v5006_v47 = vcombine.low %v1316_v32, %v1319_v39  ;;  %v5017_v30 = vcombine.low %v4546_v54, %v4550_v59  ;;  %v3504_v19 = vrot.slane %v4617_v11, 9  ;;  %v5020_v2 = vcombine.low %v1309_v56, %v1312_v41 }
  0x65   : > { %v1325_v60 = vrot.slane %v4634_v28, 5  ;;  %v1333_v58 = vsel %vm4928_vm7, %v1331_v5, %v1332_v45  ;;  %v3507_v29 = vrot.slane %v4708_v49, 9  ;;  %v1324_v31 = vrot.slane %v1322_v33, 4 }
  0x66   : > { %6513 = vst [vmem:[#allocation40_spill] sm:$0xff] %v5006_v47  ;;  %6514 = vst [vmem:[#allocation41_spill] sm:$0xff] %v5017_v30  ;;  %v5026_v52 = vcombine.low %v1330_v57, %v1333_v58  ;;  %v1343_v44 = vrot.slane %v4714_v36, 5  ;;  %v1346_v20 = vrot.slane %v4720_v3, 5  ;;  %v1788_v13 = vshrl.u32 %v4981_v9, 16 }
  0x67   : > { %6515 = vst [vmem:[#allocation42_spill] sm:$0xff] %v5020_v2  ;;  %v1792_v43 = vrot.slane %v1790_v6, 1  ;;  %v1795_v11 = vshll.u32 %v5011_v7, 16  ;;  %v1323_v49 = vsel %vm4928_vm7, %v3504_v19, %v1322_v33  ;;  %v1326_v36 = vsel %vm4928_vm7, %v1324_v31, %v1325_v60 }
  0x68   : > { %6516 = vst [vmem:[#allocation43_spill] sm:$0xff] %v5026_v52  ;;  %v1344_v28 = vsel %vm4928_vm7, %v3507_v29, %v1343_v44  ;;  %v1345_v37 = vrot.slane %v1343_v44, 4  ;;  %v1336_v3 = vrot.slane %v4676_v15, 5  ;;  %v6517_v25 = vmov 0.0   ;;  %v1775_v15 = vld [vmem:[%s6390_s2] sm:$0x3] }
  0x69   : > { %3896 = vmatmul.mubr.msk.bf16.vlgmr.msra.gmra.mxu0 %vm767_vm3, %v4963_v35  ;;  %v1793_v34 = vor.u32 %v1792_v43, %v1788_v13  ;;  %v1797_v12 = vrot.slane %v1795_v11, 1  ;;  %v5052_v45 = vcombine.low %v1323_v49, %v1326_v36  ;;  %v3506_v56 = vrot.slane %v4673_v8, 9  ;;  %v6519_v13 = vld [vmem:[#allocation17_spill] sm:$0xff] }
  0x6a   : > { %4008 = vmatpush3.bf16.msra.mxu0 %v2140_v18  ;;  %3899 = vmatprep.mubr.msk.bf16.mxu0 %vm767_vm3, %v5020_v2  ;;  %v1347_v32 = vsel %vm4928_vm7, %v1345_v37, %v1346_v20  ;;  %v1338_v41 = vrot.slane %v1336_v3, 4  ;;  %v1339_v39 = vrot.slane %v4681_v23, 5  ;;  %v1849_v57 = vsel %vm816_vm0, %v1775_v15, 0  ;;  %v3555_v18 = vld [vmem:[%s6390_s2 + $0x4] sm:$0x3] }
  0x6b   : > { %3890 = vmatmul.mubr.msk.bf16.gmra.mxu1 %vm767_vm3, %v5017_v30  ;;  %4131 = vmatprep.subr.bf16.mxu0 %v6517_v25  ;;  %v5050_v14 = vcombine.low %v1344_v28, %v1347_v32  ;;  %6518 = vst [vmem:[#allocation44_spill] sm:$0xff] %v5052_v45  ;;  %v1798_v33 = vsel %vm1786_vm9, %v1793_v34, %v1797_v12  ;;  %v1350_v23 = vrot.slane %v4741_v53, 5  ;;  %v3508_v19 = vrot.slane %v4738_v62, 9  ;;  %v6520_v28 = vld [vmem:[#allocation19_spill] sm:$0xff] }
  0x6c   : > { %3929 = vmatprep.mubr.msk.bf16.mxu1 %vm4417_vm8, %v6517_v25  ;;  %v1337_v5 = vsel %vm4928_vm7, %v3506_v56, %v1336_v3  ;;  %v1340_v8 = vsel %vm4928_vm7, %v1338_v41, %v1339_v39  ;;  %v1353_v58 = vrot.slane %v4748_v26, 5  ;;  %v1902_v53 = vsel %vm816_vm0, %v3555_v18, 0  ;;  %v3604_v30 = vld [vmem:[%s6390_s2 + $0xc] sm:$0x3] }
  0x6d   : > { %v5074_v6 = vcombine.low %v1337_v5, %v1340_v8  ;;  %v1352_v60 = vrot.slane %v1350_v23, 4  ;;  %v1357_v29 = vrot.slane %v4773_v10, 5  ;;  %v1351_v31 = vsel %vm4928_vm7, %v3508_v19, %v1350_v23  ;;  %v6523_v5 = vld [vmem:[#allocation26_spill] sm:$0xff]  ;;  %v6524_v19 = vld [vmem:[#allocation29_spill] sm:$0xff] }
  0x6e   : > { %v1364_v26 = vrot.slane %v4807_v16, 5  ;;  %v1895_v44 = vrot.slane %v4981_v9, 1  ;;  %v1896_v20 = vrot.slane %v5011_v7, 1  ;;  %v3509_v43 = vrot.slane %v6519_v13, 9  ;;  %v3557_v16 = vld [vmem:[%s6390_s2 + $0x2] sm:$0x3] }
  0x6f   : > { %v1354_v62 = vsel %vm4928_vm7, %v1352_v60, %v1353_v58  ;;  %v1359_v11 = vrot.slane %v1357_v29, 4  ;;  %v1360_v37 = vrot.slane %v6520_v28, 5  ;;  %v3510_v49 = vrot.slane %v4793_v48, 9  ;;  %v4390_v28 = vld [vmem:[%s4481_s28 + $0xb0] sm:$0x1] }
  0x70   : > { %v5099_v10 = vcombine.low %v1351_v31, %v1354_v62  ;;  %v1366_v36 = vrot.slane %v1364_v26, 4  ;;  %v1897_v7 = vsel %vm1894_vm10, %v1895_v44, %v1896_v20  ;;  %v1984_v32 = vsel %vm816_vm0, %v3557_v16, 0  ;;  %v4391_v16 = vld [vmem:[%s4481_s28 + $0xa8] sm:$0xf] }
  0x71   : > { %3900 = vmatmul.mubr.msk.bf16.gmra.mxu0 %vm767_vm3, %v5006_v47  ;;  %v1358_v34 = vsel %vm4928_vm7, %v3509_v43, %v1357_v29  ;;  %v1361_v12 = vsel %vm4928_vm7, %v1359_v11, %v1360_v37  ;;  %v1371_v48 = vrot.slane %v4829_v61, 5  ;;  %v1365_v15 = vsel %vm4928_vm7, %v3510_v49, %v1364_v26  ;;  %v6525_v29 = vld [vmem:[#allocation2_spill] sm:$0xff]  ;;  %v4389_v26 = vld [vmem:[%s4481_s28 + $0xac] sm:$0xf] }
  0x72   : > { %3903 = vmatprep.mubr.msk.bf16.mxu0 %vm767_vm3, %v5052_v45  ;;  %v1378_v41 = vrot.slane %v4858_v46, 5  ;;  %v5127_v39 = vcombine.low %v1358_v34, %v1361_v12  ;;  %v3511_v61 = vrot.slane %v4821_v51, 9  ;;  %v1374_v8 = vrot.slane %v6523_v5, 5  ;;  %v3588_v46 = vld [vmem:[%s6390_s2 + $0x4] sm:$0x3]  ;;  %v6534_v5 = vld [vmem:[#allocation11_spill] sm:$0xff] }
  0x73   : > { %3930 = vmatmul.mubr.msk.bf16.vlgmr.msra.gmra.mxu1 %vm767_vm3, %v1798_v33  ;;  %v3512_v23 = vrot.slane %v4850_v63, 9  ;;  %v1381_v60 = vrot.slane %v6524_v19, 5  ;;  %v2297_v58 = vsel %vm816_vm0, %v3588_v46, 0  ;;  %v1385_v63 = vrot.slane %v4884_v38, 5  ;;  %v6535_v46 = vld [vmem:[#allocation4_spill] sm:$0xff]  ;;  %v6538_v19 = vld [vmem:[#allocation15_spill] sm:$0xff] }
  0x74   : > { %3934 = vmatpush3.bf16.msra.mxu1 %v1849_v57  ;;  %3935 = vmatprep.mubr.msk.bf16.mxu1 %vm4417_vm8, %v6517_v25  ;;  %v1373_v57 = vrot.slane %v1371_v48, 4  ;;  %v1380_v18 = vrot.slane %v1378_v41, 4  ;;  %v1372_v51 = vsel %vm4928_vm7, %v3511_v61, %v1371_v48  ;;  %v1392_v44 = vrot.slane %v4389_v26, 5  ;;  %v6547_v26 = vld [vmem:[#allocation20_spill] sm:$0xff] }
  0x75   : > { %3939 = vmatprep.subr.bf16.mxu1 %v6517_v25  ;;  %v1379_v31 = vsel %vm4928_vm7, %v3512_v23, %v1378_v41  ;;  %v3513_v13 = vrot.slane %v4879_v17, 9  ;;  %v1387_v43 = vrot.slane %v1385_v63, 4  ;;  %v1388_v11 = vrot.slane %v4898_v22, 5  ;;  %v6528_v22 = vld [vmem:[#allocation6_spill] sm:$0xff]  ;;  %v6536_v23 = vld [vmem:[#allocation13_spill] sm:$0xff] }
  0x76   : > { %v1382_v62 = vsel %vm4928_vm7, %v1380_v18, %v1381_v60  ;;  %v1395_v37 = vrot.slane %v4390_v28, 5  ;;  %v3514_v49 = vrot.slane %v4391_v16, 9  ;;  %v3515_v48 = vrot.slane %v4546_v54, 9  ;;  %v6537_v18 = vld [vmem:[#allocation8_spill] sm:$0xff]  ;;  %v6539_v60 = vld [vmem:[#allocation10_spill] sm:$0xff]  ;;  %v6550_v28 = vld [vmem:[#allocation25_spill] sm:$0xff] }
  0x77   : > { %v5161_v38 = vcombine.low %v1379_v31, %v1382_v62  ;;  %v1389_v17 = vsel %vm4928_vm7, %v1387_v43, %v1388_v11  ;;  %v6545_v31 = vld [vmem:[#allocation16_spill] sm:$0xff]  ;;  %v6546_v62 = vld [vmem:[#allocation27_spill] sm:$0xff] }
  0x79   : > { %3904 = vmatmul.mubr.msk.bf16.gmra.mxu0 %vm767_vm3, %v5026_v52 }
  0x7a   : > { %3907 = vmatprep.mubr.msk.bf16.mxu0 %vm767_vm3, %v5074_v6 }
  0x7b   : > { %3936 = vmatmul.mubr.msk.bf16.vlgmr.msra.gmra.mxu1 %vm767_vm3, %v4981_v9  ;;  %v6521_v9 = vld [vmem:[#allocation23_spill] sm:$0xff] }
  0x7c   : > { %3940 = vmatpush3.bf16.msra.mxu1 %v1902_v53  ;;  %3941 = vmatprep.mubr.msk.bf16.mxu1 %vm4417_vm8, %v6517_v25  ;;  %v1367_v3 = vrot.slane %v6521_v9, 5  ;;  %v1375_v53 = vsel %vm4928_vm7, %v1373_v57, %v1374_v8  ;;  %6527 = vst [vmem:[#allocation23_spill] sm:$0xff] %v5161_v38  ;;  %v1386_v9 = vsel %vm4928_vm7, %v3513_v13, %v1385_v63  ;;  %v6532_v57 = vld [vmem:[#allocation9_spill] sm:$0xff]  ;;  %v2577_v8 = vsel %vm816_vm0, %v3605_v42, 0  ;;  %v6543_v63 = vld [vmem:[#allocation14_spill] sm:$0xff] }
  0x7d   : > { %3945 = vmatprep.subr.bf16.mxu1 %v6517_v25  ;;  %v5158_v20 = vcombine.low %v1372_v51, %v1375_v53  ;;  %v5184_v34 = vcombine.low %v1386_v9, %v1389_v17  ;;  %v6541_v51 = vld [vmem:[#allocation12_spill] sm:$0xff]  ;;  %v6542_v53 = vld [vmem:[#allocation21_spill] sm:$0xff]  ;;  %v6549_v13 = vld [vmem:[#allocation22_spill] sm:$0xff] }
  0x7e   : > { %v1368_v56 = vsel %vm4928_vm7, %v1366_v36, %v1367_v3  ;;  %v1394_v36 = vrot.slane %v1392_v44, 4  ;;  %v1399_v3 = vrot.slane %v4550_v59, 5  ;;  %v6531_v59 = vld [vmem:[#allocation3_spill] sm:$0xff]  ;;  %v6554_v17 = vld [vmem:[#allocation28_spill] sm:$0xff] }
  0x7f   : > { %v5130_v33 = vcombine.low %v1365_v15, %v1368_v56  ;;  %6526 = vst [vmem:[#allocation19_spill] sm:$0xff] %v5158_v20  ;;  %6529 = vst [vmem:[#allocation26_spill] sm:$0xff] %v5184_v34  ;;  %v1402_v56 = vrot.slane %v6531_v59, 5 }
  0x80   : > { %v1401_v15 = vrot.slane %v1399_v3, 4  ;;  %v1400_v41 = vsel %vm4928_vm7, %v3515_v48, %v1399_v3 }
  0x81   : > { %3908 = vmatmul.mubr.msk.bf16.gmra.mxu0 %vm767_vm3, %v5050_v14  ;;  %6522 = vst [vmem:[#allocation17_spill] sm:$0xff] %v5130_v33 }
  0x82   : > { %3911 = vmatprep.mubr.msk.bf16.mxu0 %vm767_vm3, %v5099_v10  ;;  %v1403_v61 = vsel %vm4928_vm7, %v1401_v15, %v1402_v56 }
  0x83   : > { %3942 = vmatmul.mubr.msk.bf16.vlgmr.msra.gmra.mxu1 %vm767_vm3, %v1897_v7  ;;  %v1393_v7 = vsel %vm4928_vm7, %v3514_v49, %v1392_v44  ;;  %v5202_v54 = vcombine.low %v1400_v41, %v1403_v61  ;;  %v6548_v44 = vld [vmem:[#allocation30_spill] sm:$0xff] }
  0x84   : > { %3946 = vmatpush3.bf16.msra.mxu1 %v1984_v32  ;;  %3947 = vmatprep.mubr.msk.bf16.mxu1 %vm4417_vm8, %v6517_v25  ;;  %v1396_v32 = vsel %vm4928_vm7, %v1394_v36, %v1395_v37 }
  0x85   : > { %4069 = vmatprep.subr.bf16.mxu1 %v6517_v25  ;;  %v5186_v12 = vcombine.low %v1393_v7, %v1396_v32  ;;  %6533 = vst [vmem:[#allocation2_spill] sm:$0xff] %v5202_v54 }
  0x87   : > { %6530 = vst [vmem:[#allocation29_spill] sm:$0xff] %v5186_v12 }
  0x89   : > { %3912 = vmatmul.mubr.msk.bf16.gmra.mxu0 %vm767_vm3, %v5127_v39 }
  0x8a   : > { %3915 = vmatprep.mubr.msk.bf16.mxu0 %vm767_vm3, %v5130_v33 }
  0x8b   : > { %3948 = vmatmul.mubr.msk.bf16.vlgmr.msra.gmra.mxu1 %vm767_vm3, %v6525_v29  ;;  %v6544_v29 = vld [vmem:[#allocation24_spill] sm:$0xff] }
  0x8c   : > { %4070 = vmatpush3.bf16.msra.mxu1 %v2297_v58  ;;  %3951 = vmatprep.mubr.msk.bf16.mxu1 %vm4417_vm8, %v6517_v25  ;;  %v6540_v58 = vld [vmem:[#allocation18_spill] sm:$0xff] }
  0x8d   : > { %4193 = vmatprep.subr.bf16.mxu1 %v6517_v25 }
  0x91   : > { %3916 = vmatmul.mubr.msk.bf16.gmra.mxu0 %vm767_vm3, %v5158_v20 }
  0x92   : > { %3919 = vmatprep.mubr.msk.bf16.mxu0 %vm767_vm3, %v5161_v38 }
  0x93   : > { %3952 = vmatmul.mubr.msk.bf16.gmra.mxu1 %vm767_vm3, %v6528_v22 }
  0x94   : > { %3955 = vmatprep.mubr.msk.bf16.mxu1 %vm4417_vm8, %v6517_v25 }
  0x99   : > { %3920 = vmatmul.mubr.msk.bf16.gmra.mxu0 %vm767_vm3, %v5184_v34 }
  0x9a   : > { %3923 = vmatprep.mubr.msk.bf16.mxu0 %vm767_vm3, %v5186_v12 }
  0x9b   : > { %3956 = vmatmul.mubr.msk.bf16.gmra.mxu1 %vm767_vm3, %v6532_v57 }
  0x9c   : > { %3959 = vmatprep.mubr.msk.bf16.mxu1 %vm4417_vm8, %v6517_v25 }
  0xa1   : > { %3924 = vmatmul.mubr.msk.bf16.gmra.mxu0 %vm767_vm3, %v5202_v54 }
  0xa2   : > { %4009 = vmatprep.mubr.msk.bf16.mxu0 %vm4417_vm8, %v6517_v25 }
  0xa3   : > { %3960 = vmatmul.mubr.msk.bf16.gmra.mxu1 %vm767_vm3, %v6534_v5 }
  0xa4   : > { %3963 = vmatprep.mubr.msk.bf16.mxu1 %vm4417_vm8, %v6517_v25 }
  0xa9   : > { %4010 = vmatmul.mubr.msk.bf16.vlgmr.msra.gmra.mxu0 %vm767_vm3, %v6535_v46 }
  0xaa   : > { %4132 = vmatpush3.bf16.msra.mxu0 %v2577_v8  ;;  %4013 = vmatprep.mubr.msk.bf16.mxu0 %vm4417_vm8, %v6517_v25  ;;  %v6556_v8 = vld [vmem:[#allocation5_spill] sm:$0xff] }
  0xab   : > { %3964 = vmatmul.mubr.msk.bf16.gmra.mxu1 %vm767_vm3, %v6536_v23  ;;  %4255 = vmatprep.subr.bf16.mxu0 %v6517_v25 }
  0xac   : > { %3967 = vmatprep.mubr.msk.bf16.mxu1 %vm4417_vm8, %v6517_v25 }
  0xb1   : > { %4014 = vmatmul.mubr.msk.bf16.gmra.mxu0 %vm767_vm3, %v6537_v18 }
  0xb2   : > { %4017 = vmatprep.mubr.msk.bf16.mxu0 %vm4417_vm8, %v6517_v25 }
  0xb3   : > { %3968 = vmatmul.mubr.msk.bf16.gmra.mxu1 %vm767_vm3, %v6538_v19 }
  0xb4   : > { %3971 = vmatprep.mubr.msk.bf16.mxu1 %vm4417_vm8, %v6517_v25 }
  0xb9   : > { %4018 = vmatmul.mubr.msk.bf16.gmra.mxu0 %vm767_vm3, %v6539_v60 }
  0xba   : > { %4021 = vmatprep.mubr.msk.bf16.mxu0 %vm4417_vm8, %v6517_v25 }
  0xbb   : > { %3972 = vmatmul.mubr.msk.bf16.gmra.mxu1 %vm767_vm3, %v6540_v58 }
  0xbc   : > { %3975 = vmatprep.mubr.msk.bf16.mxu1 %vm4417_vm8, %v6517_v25 }
  0xc1   : > { %4022 = vmatmul.mubr.msk.bf16.gmra.mxu0 %vm767_vm3, %v6541_v51 }
  0xc2   : > { %4025 = vmatprep.mubr.msk.bf16.mxu0 %vm4417_vm8, %v6517_v25 }
  0xc3   : > { %3976 = vmatmul.mubr.msk.bf16.gmra.mxu1 %vm767_vm3, %v6542_v53 }
  0xc4   : > { %3979 = vmatprep.mubr.msk.bf16.mxu1 %vm4417_vm8, %v6517_v25 }
  0xc9   : > { %4026 = vmatmul.mubr.msk.bf16.gmra.mxu0 %vm767_vm3, %v6543_v63 }
  0xca   : > { %4029 = vmatprep.mubr.msk.bf16.mxu0 %vm4417_vm8, %v6517_v25 }
  0xcb   : > { %3980 = vmatmul.mubr.msk.bf16.gmra.mxu1 %vm767_vm3, %v6544_v29 }
  0xcc   : > { %3983 = vmatprep.mubr.msk.bf16.mxu1 %vm4417_vm8, %v6517_v25 }
  0xd1   : > { %4030 = vmatmul.mubr.msk.bf16.gmra.mxu0 %vm767_vm3, %v6545_v31 }
  0xd2   : > { %4033 = vmatprep.mubr.msk.bf16.mxu0 %vm4417_vm8, %v6517_v25 }
  0xd3   : > { %3984 = vmatmul.mubr.msk.bf16.gmra.mxu1 %vm767_vm3, %v6546_v62 }
  0xd4   : > { %3987 = vmatprep.mubr.msk.bf16.mxu1 %vm4417_vm8, %v6517_v25 }
  0xd9   : > { %4034 = vmatmul.mubr.msk.bf16.gmra.mxu0 %vm767_vm3, %v6547_v26  ;;  %v2733_v26 = vsel %vm816_vm0, %v3604_v30, 0 }
  0xda   : > { %4037 = vmatprep.mubr.msk.bf16.mxu0 %vm4417_vm8, %v6517_v25 }
  0xdb   : > { %3988 = vmatmul.mubr.msk.bf16.gmra.mxu1 %vm767_vm3, %v6548_v44 }
  0xdc   : > { %3991 = vmatprep.mubr.msk.bf16.mxu1 %vm4417_vm8, %v6517_v25 }
  0xe1   : > { %4038 = vmatmul.mubr.msk.bf16.gmra.mxu0 %vm767_vm3, %v6549_v13 }
  0xe2   : > { %4041 = vmatprep.mubr.msk.bf16.mxu0 %vm4417_vm8, %v6517_v25 }
  0xe3   : > { %3992 = vmatmul.mubr.msk.bf16.gmra.mxu1 %vm767_vm3, %v4907_v1 }
  0xe4   : > { %3995 = vmatprep.mubr.msk.bf16.mxu1 %vm4417_vm8, %v6517_v25 }
  0xe6   : > { %v5281_v43 = vpop.f32.mrf.mxu0 }
  0xe8   : > { %v5283_v11 = vpop.f32.mrf.mxu0 }
  0xe9   : > { %4042 = vmatmul.mubr.msk.bf16.gmra.mxu0 %vm767_vm3, %v6550_v28 }
  0xea   : > { %4045 = vmatprep.mubr.msk.bf16.mxu0 %vm4417_vm8, %v6517_v25  ;;  %v5293_v16 = vpop.f32.mrf.mxu0 }
  0xeb   : > { %v5289_v37 = vpop.f32.mrf.mxu1  ;;  %3996 = vmatmul.mubr.msk.bf16.gmra.mxu1 %vm767_vm3, %v4934_v24 }
  0xec   : > { %6551 = vst [vmem:[#allocation6_spill] sm:$0xff] %v5289_v37  ;;  %3999 = vmatprep.mubr.msk.bf16.mxu1 %vm4417_vm8, %v6517_v25  ;;  %v5301_v9 = vpop.f32.mrf.mxu0  ;;  %v3636_v37 = vld [vmem:[%s6390_s2 + $0x10] sm:$0x3] }
  0xed   : > { %v5297_v49 = vpop.f32.mrf.mxu1  ;;  %v2891_v29 = vsel %vm816_vm0, %v3636_v37, 0 }
  0xee   : > { %6552 = vst [vmem:[#allocation3_spill] sm:$0xff] %v5297_v49 }
  0xef   : > { %v5299_v36 = vpop.f32.mrf.mxu1 }
  0xf0   : > { %6553 = vst [vmem:[#allocation9_spill] sm:$0xff] %v5299_v36 }
  0xf1   : > { %4046 = vmatmul.mubr.msk.bf16.gmra.mxu0 %vm767_vm3, %v6554_v17  ;;  %v5305_v3 = vpop.f32.mrf.mxu1 }
  0xf2   : > { %6555 = vst [vmem:[#allocation11_spill] sm:$0xff] %v5305_v3  ;;  %4049 = vmatprep.mubr.msk.bf16.mxu0 %vm4417_vm8, %v6517_v25 }
  0xf3   : > { %v5311_v32 = vpop.f32.mrf.mxu1  ;;  %4000 = vmatmul.mubr.msk.bf16.gmra.mxu1 %vm767_vm3, %v4971_v21 }
  0xf4   : > { %v5309_v7 = vpop.f32.mrf.mxu0  ;;  %4003 = vmatprep.mubr.msk.bf16.mxu1 %vm4417_vm8, %v6517_v25 }
  0xf5   : > { %v5319_v15 = vpop.f32.mrf.mxu1 }
  0xf6   : > { %v5317_v48 = vpop.f32.mrf.mxu0 }
  0xf7   : > { %v5323_v56 = vpop.f32.mrf.mxu1 }
  0xf8   : > { %v5321_v59 = vpop.f32.mrf.mxu0 }
  0xf9   : > { %4050 = vmatmul.mubr.msk.bf16.gmra.mxu0 %vm767_vm3, %v4889_v4  ;;  %v5329_v61 = vpop.f32.mrf.mxu1 }
  0xfa   : > { %v5327_v41 = vpop.f32.mrf.mxu0  ;;  %4053 = vmatprep.mubr.msk.bf16.mxu0 %vm4417_vm8, %v6517_v25 }
  0xfb   : > { %v5333_v42 = vpop.f32.mrf.mxu1  ;;  %4004 = vmatmul.mubr.msk.bf16.gmra.mxu1 %vm767_vm3, %v6556_v8 }
  0xfc   : > { %4071 = vmatprep.mubr.msk.bf16.mxu1 %vm4417_vm8, %v6517_v25 }
  0xfd   : > { %v5339_v46 = vpop.f32.mrf.mxu0  ;;  %v5341_v54 = vpop.f32.mrf.mxu1 }
  0xff   : > { %v5346_v4 = vpop.f32.mrf.mxu0  ;;  %v5348_v17 = vpop.f32.mrf.mxu1 }
 0x101   : > { %4054 = vmatmul.mubr.msk.bf16.gmra.mxu0 %vm767_vm3, %v4918_v40  ;;  %v5352_v28 = vpop.f32.mrf.mxu0  ;;  %v5354_v13 = vpop.f32.mrf.mxu1 }
 0x102   : > { %4057 = vmatprep.mubr.msk.bf16.mxu0 %vm4417_vm8, %v6517_v25 }
 0x103   : > { %v5359_v31 = vpop.f32.mrf.mxu0  ;;  %v5361_v63 = vpop.f32.mrf.mxu1  ;;  %4072 = vmatmul.mubr.msk.bf16.vlgmr.msra.gmra.mxu1 %vm767_vm3, %v4968_v55 }
 0x104   : > { %4194 = vmatpush3.bf16.msra.mxu1 %v2733_v26  ;;  %4075 = vmatprep.mubr.msk.bf16.mxu1 %vm4417_vm8, %v6517_v25 }
 0x105   : > { %v5367_v40 = vpop.f32.mrf.mxu0  ;;  %v5369_v51 = vpop.f32.mrf.mxu1  ;;  %4317 = vmatprep.subr.bf16.mxu1 %v6517_v25 }
 0x107   : > { %v5372_v30 = vpop.f32.mrf.mxu0  ;;  %v5374_v8 = vpop.f32.mrf.mxu1 }
 0x109   : > { %4058 = vmatmul.mubr.msk.bf16.gmra.mxu0 %vm767_vm3, %v4924_v0  ;;  %v5378_v60 = vpop.f32.mrf.mxu0  ;;  %v5380_v55 = vpop.f32.mrf.mxu1 }
 0x10a   : > { %4061 = vmatprep.mubr.msk.bf16.mxu0 %vm4417_vm8, %v6517_v25 }
 0x10b   : > { %v5384_v26 = vpop.f32.mrf.mxu0  ;;  %v5386_v21 = vpop.f32.mrf.mxu1  ;;  %4076 = vmatmul.mubr.msk.bf16.gmra.mxu1 %vm767_vm3, %v4963_v35 }
 0x10c   : > { %4079 = vmatprep.mubr.msk.bf16.mxu1 %vm4417_vm8, %v6517_v25 }
 0x10d   : > { %v5392_v18 = vpop.f32.mrf.mxu1 }
 0x10e   : > { %v5394_v0 = vpop.f32.mrf.mxu0 }
 0x10f   : > { %v5396_v24 = vpop.f32.mrf.mxu1 }
 0x110   : > { %v5398_v12 = vpop.f32.mrf.mxu0 }
 0x111   : > { %4062 = vmatmul.mubr.msk.bf16.gmra.mxu0 %vm767_vm3, %v4961_v50  ;;  %v5402_v1 = vpop.f32.mrf.mxu1 }
 0x112   : > { %v5404_v34 = vpop.f32.mrf.mxu0  ;;  %4065 = vmatprep.mubr.msk.bf16.mxu0 %vm4417_vm8, %v6517_v25 }
 0x113   : > { %v5408_v35 = vpop.f32.mrf.mxu1  ;;  %4080 = vmatmul.mubr.msk.bf16.gmra.mxu1 %vm767_vm3, %v5020_v2 }
 0x114   : > { %v5412_v44 = vpop.f32.mrf.mxu0  ;;  %4083 = vmatprep.mubr.msk.bf16.mxu1 %vm4417_vm8, %v6517_v25 }
 0x115   : > { %v5416_v3 = vpop.f32.mrf.mxu1 }
 0x117   : > { %v5418_v50 = vpop.f32.mrf.mxu0  ;;  %v5420_v36 = vpop.f32.mrf.mxu1 }
 0x119   : > { %4066 = vmatmul.mubr.msk.bf16.gmra.mxu0 %vm767_vm3, %v4978_v27  ;;  %v5424_v38 = vpop.f32.mrf.mxu0  ;;  %v5426_v49 = vpop.f32.mrf.mxu1 }
 0x11a   : > { %6557 = vst [vmem:[#allocation4_spill] sm:$0xff] %v5424_v38  ;;  %4133 = vmatprep.mubr.msk.bf16.mxu0 %vm4417_vm8, %v6517_v25 }
 0x11b   : > { %v5430_v2 = vpop.f32.mrf.mxu0  ;;  %v5432_v62 = vpop.f32.mrf.mxu1  ;;  %4084 = vmatmul.mubr.msk.bf16.gmra.mxu1 %vm767_vm3, %v5006_v47 }
 0x11c   : > { %6558 = vst [vmem:[#allocation13_spill] sm:$0xff] %v5430_v2  ;;  %4087 = vmatprep.mubr.msk.bf16.mxu1 %vm4417_vm8, %v6517_v25 }
 0x11d   : > { %v5441_v27 = vpop.f32.mrf.mxu0  ;;  %v5443_v20 = vpop.f32.mrf.mxu1 }
 0x11e   : > { %6559 = vst [vmem:[#allocation15_spill] sm:$0xff] %v5441_v27 }
 0x11f   : > { %v5446_v2 = vpop.f32.mrf.mxu1 }
 0x121   : > { %v5448_v33 = vpop.f32.mrf.mxu0  ;;  %4134 = vmatmul.mubr.msk.bf16.vlgmr.msra.gmra.mxu0 %vm767_vm3, %v6528_v22  ;;  %v5452_v47 = vpop.f32.mrf.mxu1 }
 0x122   : > { %6560 = vst [vmem:[#allocation18_spill] sm:$0xff] %v5448_v33  ;;  %6561 = vst [vmem:[#allocation21_spill] sm:$0xff] %v5452_v47  ;;  %4256 = vmatpush3.bf16.msra.mxu0 %v2891_v29  ;;  %4137 = vmatprep.mubr.msk.bf16.mxu0 %vm4417_vm8, %v6517_v25 }
 0x123   : > { %v5456_v38 = vpop.f32.mrf.mxu0  ;;  %v5458_v27 = vpop.f32.mrf.mxu1  ;;  %4088 = vmatmul.mubr.msk.bf16.gmra.mxu1 %vm767_vm3, %v5052_v45  ;;  %v5478_v45 = vld [vmem:[%s6391_s3] ss:$0 sm:$0xff] }
 0x124   : > { %6562 = vst [vmem:[#allocation45_spill] sm:$0xff] %v5456_v38  ;;  %4091 = vmatprep.mubr.msk.bf16.mxu1 %vm4417_vm8, %v6517_v25  ;;  %v1155_v38 = vadd.f32 %v5311_v32, %v5281_v43 }
 0x125   : > { %v5464_v37 = vpop.f32.mrf.mxu0  ;;  %v5466_v33 = vpop.f32.mrf.mxu1 }
 0x126   : > { %6563 = vst [vmem:[#allocation46_spill] sm:$0xff] %v5464_v37  ;;  %6564 = vst [vmem:[#allocation47_spill] sm:$0xff] %v5466_v33 }
 0x127   : > { %v5468_v22 = vpop.f32.mrf.mxu0  ;;  %v5470_v29 = vpop.f32.mrf.mxu1 }
 0x128   : > { %6565 = vst [vmem:[#allocation48_spill] sm:$0xff] %v5468_v22  ;;  %6566 = vst [vmem:[#allocation49_spill] sm:$0xff] %v5470_v29  ;;  %v1147_v22 = vadd.f32 %v5319_v15, %v5283_v11 }
 0x129   : > { %v3897_v47 = vpop.f32.mrf.mxu0  ;;  %4138 = vmatmul.mubr.msk.bf16.gmra.mxu0 %vm767_vm3, %v6532_v57  ;;  %v5482_v37 = vpop.f32.mrf.mxu1 }
 0x12a   : > { %6567 = vst [vmem:[#allocation50_spill] sm:$0xff] %v5482_v37  ;;  %v1668_v33 = vadd.f32 %v3897_v47, %v1155_v38  ;;  %4141 = vmatprep.mubr.msk.bf16.mxu0 %vm4417_vm8, %v6517_v25  ;;  %v1158_v47 = vadd.f32 %v5323_v56, %v5293_v16  ;;  %v1150_v37 = vadd.f32 %v5329_v61, %v5301_v9 }
 0x12b   : > { %v1539_v43 = vpop.f32.mrf.mxu0  ;;  %v5493_v32 = vpop.f32.mrf.mxu1  ;;  %4092 = vmatmul.mubr.msk.bf16.gmra.mxu1 %vm767_vm3, %v5026_v52  ;;  %v1163_v61 = vadd.f32 %v5341_v54, %v5317_v48 }
 0x12c   : > { %6568 = vst [vmem:[#allocation51_spill] sm:$0xff] %v5493_v32  ;;  %v1707_v38 = vadd.f32 %v5478_v45, %v1668_v33  ;;  %v1666_v57 = vadd.f32 %v1539_v43, %v1147_v22  ;;  %4095 = vmatprep.mubr.msk.bf16.mxu1 %vm4417_vm8, %v6517_v25  ;;  %v1171_v33 = vadd.f32 %v5333_v42, %v5309_v7 }
 0x12d   : > { %v3898_v11 = vpop.f32.mrf.mxu0  ;;  %v5502_v15 = vpop.f32.mrf.mxu1 }
 0x12e   : > { %1740 = vst.msk [vmem:[%s5491_s7 + $0x10] sm:$0xff] %vm1737_vm11, %v1707_v38  ;;  %v1705_v52 = vadd.f32 %v5478_v45, %v1666_v57  ;;  %v1669_v32 = vadd.f32 %v3898_v11, %v1158_v47  ;;  %v1166_v47 = vadd.f32 %v5354_v13, %v5327_v41  ;;  %v1187_v11 = vadd.f32 %v5361_v63, %v5339_v46 }
 0x12f   : > { %v1542_v29 = vpop.f32.mrf.mxu0  ;;  %v5509_v16 = vpop.f32.mrf.mxu1  ;;  %v1179_v41 = vadd.f32 %v5369_v51, %v5346_v4 }
 0x130   : > { %1738 = vst.msk [vmem:[%s5491_s7] sm:$0xff] %vm1737_vm11, %v1705_v52  ;;  %v1708_v56 = vadd.f32 %v5478_v45, %v1669_v32  ;;  %v1667_v22 = vadd.f32 %v1542_v29, %v1150_v37 }
 0x131   : > { %v3901_v43 = vpop.f32.mrf.mxu0  ;;  %4142 = vmatmul.mubr.msk.bf16.gmra.mxu0 %vm767_vm3, %v6534_v5  ;;  %v5518_v9 = vpop.f32.mrf.mxu1  ;;  %v1174_v5 = vadd.f32 %v5348_v17, %v5321_v59 }
 0x132   : > { %1741 = vst.msk [vmem:[%s5491_s7 + $0x18] sm:$0xff] %vm1737_vm11, %v1708_v56  ;;  %v1706_v7 = vadd.f32 %v5478_v45, %v1667_v22  ;;  %v1672_v42 = vadd.f32 %v3901_v43, %v1171_v33  ;;  %4145 = vmatprep.mubr.msk.bf16.mxu0 %vm4417_vm8, %v6517_v25 }
 0x133   : > { %v1555_v52 = vpop.f32.mrf.mxu0  ;;  %v1839_v37 = vpop.f32.mrf.mxu1  ;;  %4096 = vmatmul.mubr.msk.bf16.gmra.mxu1 %vm767_vm3, %v5074_v6 }
 0x134   : > { %1739 = vst.msk [vmem:[%s5491_s7 + $0x8] sm:$0xff] %vm1737_vm11, %v1706_v7  ;;  %v1711_v54 = vadd.f32 %v5478_v45, %v1672_v42  ;;  %v1670_v48 = vadd.f32 %v1555_v52, %v1163_v61  ;;  %4099 = vmatprep.mubr.msk.bf16.mxu1 %vm4417_vm8, %v6517_v25  ;;  %v1182_v52 = vadd.f32 %v5380_v55, %v5359_v31 }
 0x135   : > { %v3902_v29 = vpop.f32.mrf.mxu0  ;;  %v3931_v32 = vpop.f32.mrf.mxu1  ;;  %v1195_v55 = vadd.f32 %v5392_v18, %v5372_v30 }
 0x136   : > { %1744 = vst.msk [vmem:[%s5491_s7 + $0x30] sm:$0xff] %vm1737_vm11, %v1711_v54  ;;  %v1709_v38 = vadd.f32 %v5478_v45, %v1670_v48  ;;  %v1673_v57 = vadd.f32 %v3902_v29, %v1174_v5  ;;  %v1203_v48 = vadd.f32 %v5386_v21, %v5367_v40 }
 0x137   : > { %v1558_v17 = vpop.f32.mrf.mxu0  ;;  %v1842_v59 = vpop.f32.mrf.mxu1 }
 0x138   : > { %1742 = vst.msk [vmem:[%s5491_s7 + $0x20] sm:$0xff] %vm1737_vm11, %v1709_v38  ;;  %v1712_v33 = vadd.f32 %v5478_v45, %v1673_v57  ;;  %v1671_v56 = vadd.f32 %v1558_v17, %v1166_v47 }
 0x139   : > { %v3905_v22 = vpop.f32.mrf.mxu0  ;;  %4146 = vmatmul.mubr.msk.bf16.gmra.mxu0 %vm767_vm3, %v6536_v23  ;;  %v3932_v13 = vpop.f32.mrf.mxu1  ;;  %v1190_v23 = vadd.f32 %v5374_v8, %v5352_v28 }
 0x13a   : > { %1745 = vst.msk [vmem:[%s5491_s7 + $0x38] sm:$0xff] %vm1737_vm11, %v1712_v33  ;;  %v1710_v43 = vadd.f32 %v5478_v45, %v1671_v56  ;;  %v1676_v63 = vadd.f32 %v3905_v22, %v1187_v11  ;;  %4149 = vmatprep.mubr.msk.bf16.mxu0 %vm4417_vm8, %v6517_v25  ;;  %v1770_v56 = vld [vmem:[%s5491_s7] sm:$0xff] }
 0x13b   : > { %v1571_v46 = vpop.f32.mrf.mxu0  ;;  %v1885_v61 = vpop.f32.mrf.mxu1  ;;  %4100 = vmatmul.mubr.msk.bf16.gmra.mxu1 %vm767_vm3, %v5050_v14 }
 0x13c   : > { %1743 = vst.msk [vmem:[%s5491_s7 + $0x28] sm:$0xff] %vm1737_vm11, %v1710_v43  ;;  %v1715_v4 = vadd.f32 %v5478_v45, %v1676_v63  ;;  %v1674_v51 = vadd.f32 %v1571_v46, %v1179_v41  ;;  %4103 = vmatprep.mubr.msk.bf16.mxu1 %vm4417_vm8, %v6517_v25  ;;  %v1886_v21 = vadd.f32 %v1885_v61, %v1839_v37 }
 0x13d   : > { %v3906_v7 = vpop.f32.mrf.mxu0  ;;  %v3937_v42 = vpop.f32.mrf.mxu1  ;;  %v1198_v37 = vadd.f32 %v5402_v1, %v5384_v26  ;;  %v1219_v46 = vadd.f32 %v5408_v35, %v5394_v0 }
 0x13e   : > { %1748 = vst.msk [vmem:[%s5491_s7 + $0x50] sm:$0xff] %vm1737_vm11, %v1715_v4  ;;  %v1713_v5 = vadd.f32 %v5478_v45, %v1674_v51  ;;  %v1677_v54 = vadd.f32 %v3906_v7, %v1190_v23  ;;  %v1211_v51 = vadd.f32 %v5416_v3, %v5398_v12  ;;  %v1222_v12 = vadd.f32 %v5420_v36, %v5404_v34 }
 0x13f   : > { %v1574_v28 = vpop.f32.mrf.mxu0  ;;  %v1888_v8 = vpop.f32.mrf.mxu1 }
 0x140   : > { %1746 = vst.msk [vmem:[%s5491_s7 + $0x40] sm:$0xff] %vm1737_vm11, %v1713_v5  ;;  %v1716_v29 = vadd.f32 %v5478_v45, %v1677_v54  ;;  %v1675_v32 = vadd.f32 %v1574_v28, %v1182_v52  ;;  %v1889_v13 = vadd.f32 %v1888_v8, %v1842_v59  ;;  %v1771_v59 = vld [vmem:[%s5491_s7 + $0x8] sm:$0xff]  ;;  %v1214_v28 = vadd.f32 %v5426_v49, %v5412_v44  ;;  %v6569_v49 = vld [vmem:[#allocation4_spill] sm:$0xff] }
 0x141   : > { %v3909_v47 = vpop.f32.mrf.mxu0  ;;  %4150 = vmatmul.mubr.msk.bf16.gmra.mxu0 %vm767_vm3, %v6538_v19  ;;  %v3938_v31 = vpop.f32.mrf.mxu1  ;;  %v1206_v19 = vadd.f32 %v5396_v24, %v5378_v60 }
 0x142   : > { %1749 = vst.msk [vmem:[%s5491_s7 + $0x58] sm:$0xff] %vm1737_vm11, %v1716_v29  ;;  %v1714_v38 = vadd.f32 %v5478_v45, %v1675_v32  ;;  %v1680_v40 = vadd.f32 %v3909_v47, %v1203_v48  ;;  %4153 = vmatprep.mubr.msk.bf16.mxu0 %vm4417_vm8, %v6517_v25  ;;  %v1235_v29 = vadd.f32 %v5432_v62, %v5418_v50 }
 0x143   : > { %v1587_v57 = vpop.f32.mrf.mxu0  ;;  %v1938_v17 = vpop.f32.mrf.mxu1  ;;  %4104 = vmatmul.mubr.msk.bf16.gmra.mxu1 %vm767_vm3, %v5099_v10 }
 0x144   : > { %1747 = vst.msk [vmem:[%s5491_s7 + $0x48] sm:$0xff] %vm1737_vm11, %v1714_v38  ;;  %v1719_v18 = vadd.f32 %v5478_v45, %v1680_v40  ;;  %v1678_v30 = vadd.f32 %v1587_v57, %v1195_v55  ;;  %v1945_v11 = vadd.f32 %v1938_v17, %v1886_v21  ;;  %4107 = vmatprep.mubr.msk.bf16.mxu1 %vm4417_vm8, %v6517_v25  ;;  %v6570_v21 = vld [vmem:[#allocation17_spill] sm:$0xff] }
 0x145   : > { %v3910_v33 = vpop.f32.mrf.mxu0  ;;  %v3943_v22 = vpop.f32.mrf.mxu1  ;;  %v1227_v55 = vadd.f32 %v5443_v20, %v6569_v49 }
 0x146   : > { %1752 = vst.msk [vmem:[%s5491_s7 + $0x70] sm:$0xff] %vm1737_vm11, %v1719_v18  ;;  %v1717_v24 = vadd.f32 %v5478_v45, %v1678_v30  ;;  %v1681_v60 = vadd.f32 %v3910_v33, %v1206_v19  ;;  %v1947_v41 = vadd.f32 %v1945_v11, %v1770_v56  ;;  %v6572_v30 = vld [vmem:[#allocation15_spill] sm:$0xff]  ;;  %v6573_v11 = vld [vmem:[#allocation21_spill] sm:$0xff] }
 0x147   : > { %v1590_v43 = vpop.f32.mrf.mxu0  ;;  %v1941_v63 = vpop.f32.mrf.mxu1 }
 0x148   : > { %1750 = vst.msk [vmem:[%s5491_s7 + $0x60] sm:$0xff] %vm1737_vm11, %v1717_v24  ;;  %v1720_v1 = vadd.f32 %v5478_v45, %v1681_v60  ;;  %v1679_v26 = vadd.f32 %v1590_v43, %v1198_v37  ;;  %1949 = vst.msk [vmem:[%s5491_s7] sm:$0xff] %vm1737_vm11, %v1947_v41  ;;  %v1946_v61 = vadd.f32 %v1941_v63, %v1889_v13  ;;  %v6574_v24 = vld [vmem:[#allocation18_spill] sm:$0xff]  ;;  %v6575_v63 = vld [vmem:[#allocation24_spill] sm:$0xff] }
 0x149   : > { %v3913_v23 = vpop.f32.mrf.mxu0  ;;  %4154 = vmatmul.mubr.msk.bf16.gmra.mxu0 %vm767_vm3, %v6540_v58  ;;  %v3944_v4 = vpop.f32.mrf.mxu1  ;;  %v1230_v37 = vadd.f32 %v6573_v11, %v6572_v30  ;;  %v1251_v60 = vadd.f32 %v5458_v27, %v6574_v24  ;;  %v6588_v30 = vld [vmem:[#allocation9_spill] sm:$0xff] }
 0x14a   : > { %1753 = vst.msk [vmem:[%s5491_s7 + $0x78] sm:$0xff] %vm1737_vm11, %v1720_v1  ;;  %v1718_v0 = vadd.f32 %v5478_v45, %v1679_v26  ;;  %v1684_v35 = vadd.f32 %v3913_v23, %v1219_v46  ;;  %v1948_v7 = vadd.f32 %v1946_v61, %v1771_v59  ;;  %4157 = vmatprep.mubr.msk.bf16.mxu0 %vm4417_vm8, %v6517_v25  ;;  %v6576_v1 = vld [vmem:[#allocation45_spill] sm:$0xff]  ;;  %v6577_v26 = vld [vmem:[#allocation47_spill] sm:$0xff] }
 0x14b   : > { %v1603_v42 = vpop.f32.mrf.mxu0  ;;  %v5615_v52 = vpop.f32.mrf.mxu1  ;;  %4108 = vmatmul.mubr.msk.bf16.gmra.mxu1 %vm767_vm3, %v5127_v39  ;;  %v1243_v61 = vadd.f32 %v6577_v26, %v6576_v1  ;;  %v1270_v11 = vadd.f32 %v5509_v16, %v6588_v30  ;;  %v6590_v1 = vld [vmem:[#allocation30_spill] sm:$0xff] }
 0x14c   : > { %1751 = vst.msk [vmem:[%s5491_s7 + $0x68] sm:$0xff] %vm1737_vm11, %v1718_v0  ;;  %v1723_v58 = vadd.f32 %v5478_v45, %v1684_v35  ;;  %v1682_v3 = vadd.f32 %v1603_v42, %v1211_v51  ;;  %1950 = vst.msk [vmem:[%s5491_s7 + $0x8] sm:$0xff] %vm1737_vm11, %v1948_v7  ;;  %4111 = vmatprep.mubr.msk.bf16.mxu1 %vm4417_vm8, %v6517_v25  ;;  %v6578_v51 = vld [vmem:[#allocation19_spill] sm:$0xff]  ;;  %v6579_v0 = vld [vmem:[#allocation46_spill] sm:$0xff] }
 0x14d   : > { %v3914_v5 = vpop.f32.mrf.mxu0  ;;  %v3949_v54 = vpop.f32.mrf.mxu1  ;;  %v6580_v35 = vld [vmem:[#allocation49_spill] sm:$0xff]  ;;  %v6596_v30 = vld [vmem:[#allocation38_spill] sm:$0xff] }
 0x14e   : > { %1756 = vst.msk [vmem:[%s5491_s7 + $0x90] sm:$0xff] %vm1737_vm11, %v1723_v58  ;;  %v1721_v34 = vadd.f32 %v5478_v45, %v1682_v3  ;;  %v1685_v36 = vadd.f32 %v3914_v5, %v1222_v12  ;;  %v1254_v7 = vadd.f32 %v6580_v35, %v6579_v0  ;;  %v6581_v5 = vld [vmem:[#allocation48_spill] sm:$0xff]  ;;  %v6582_v54 = vld [vmem:[#allocation50_spill] sm:$0xff] }
 0x14f   : > { %v1606_v8 = vpop.f32.mrf.mxu0  ;;  %v5633_v48 = vpop.f32.mrf.mxu1 }
 0x150   : > { %1754 = vst.msk [vmem:[%s5491_s7 + $0x80] sm:$0xff] %vm1737_vm11, %v1721_v34  ;;  %v1724_v32 = vadd.f32 %v5478_v45, %v1685_v36  ;;  %v1683_v47 = vadd.f32 %v1606_v8, %v1214_v28  ;;  %v1246_v28 = vadd.f32 %v6582_v54, %v6581_v5 }
 0x151   : > { %v3917_v31 = vpop.f32.mrf.mxu0  ;;  %4158 = vmatmul.mubr.msk.bf16.gmra.mxu0 %vm767_vm3, %v6542_v53  ;;  %v3950_v44 = vpop.f32.mrf.mxu1  ;;  %v6571_v53 = vld [vmem:[#allocation13_spill] sm:$0xff] }
 0x152   : > { %1757 = vst.msk [vmem:[%s5491_s7 + $0x98] sm:$0xff] %vm1737_vm11, %v1724_v32  ;;  %v1722_v38 = vadd.f32 %v5478_v45, %v1683_v47  ;;  %v1688_v50 = vadd.f32 %v3917_v31, %v1235_v29  ;;  %4161 = vmatprep.mubr.msk.bf16.mxu0 %vm4417_vm8, %v6517_v25  ;;  %v1238_v57 = vadd.f32 %v5446_v2, %v6571_v53  ;;  %v6583_v32 = vld [vmem:[#allocation6_spill] sm:$0xff]  ;;  %v6584_v47 = vld [vmem:[#allocation51_spill] sm:$0xff] }
 0x153   : > { %v1619_v62 = vpop.f32.mrf.mxu0  ;;  %v5649_v40 = vpop.f32.mrf.mxu1  ;;  %4112 = vmatmul.mubr.msk.bf16.gmra.mxu1 %vm767_vm3, %v6570_v21  ;;  %v1267_v31 = vadd.f32 %v6584_v47, %v6583_v32 }
 0x154   : > { %1755 = vst.msk [vmem:[%s5491_s7 + $0x88] sm:$0xff] %vm1737_vm11, %v1722_v38  ;;  %v1727_v20 = vadd.f32 %v5478_v45, %v1688_v50  ;;  %v1686_v17 = vadd.f32 %v1619_v62, %v1227_v55  ;;  %4115 = vmatprep.mubr.msk.bf16.mxu1 %vm4417_vm8, %v6517_v25  ;;  %v6585_v38 = vld [vmem:[#allocation27_spill] sm:$0xff] }
 0x155   : > { %v3918_v19 = vpop.f32.mrf.mxu0  ;;  %v3953_v18 = vpop.f32.mrf.mxu1  ;;  %v6586_v62 = vld [vmem:[#allocation3_spill] sm:$0xff] }
 0x156   : > { %1760 = vst.msk [vmem:[%s5491_s7 + $0xb0] sm:$0xff] %vm1737_vm11, %v1727_v20  ;;  %v1725_v33 = vadd.f32 %v5478_v45, %v1686_v17  ;;  %v1689_v56 = vadd.f32 %v3918_v19, %v1238_v57  ;;  %v1259_v53 = vadd.f32 %v5502_v15, %v6586_v62  ;;  %v6587_v18 = vld [vmem:[#allocation23_spill] sm:$0xff] }
 0x157   : > { %v1622_v2 = vpop.f32.mrf.mxu0  ;;  %v5665_v22 = vpop.f32.mrf.mxu1 }
 0x158   : > { %1758 = vst.msk [vmem:[%s5491_s7 + $0xa0] sm:$0xff] %vm1737_vm11, %v1725_v33  ;;  %v1728_v13 = vadd.f32 %v5478_v45, %v1689_v56  ;;  %v1687_v41 = vadd.f32 %v1622_v2, %v1230_v37  ;;  %v6589_v2 = vld [vmem:[#allocation11_spill] sm:$0xff] }
 0x159   : > { %v3921_v43 = vpop.f32.mrf.mxu0  ;;  %4162 = vmatmul.mubr.msk.bf16.gmra.mxu0 %vm767_vm3, %v6575_v63  ;;  %v3954_v46 = vpop.f32.mrf.mxu1  ;;  %v1262_v24 = vadd.f32 %v5518_v9, %v6589_v2 }
 0x15a   : > { %1761 = vst.msk [vmem:[%s5491_s7 + $0xb8] sm:$0xff] %vm1737_vm11, %v1728_v13  ;;  %v1726_v23 = vadd.f32 %v5478_v45, %v1687_v41  ;;  %v1692_v27 = vadd.f32 %v3921_v43, %v1251_v60  ;;  %4165 = vmatprep.mubr.msk.bf16.mxu0 %vm4417_vm8, %v6517_v25 }
 0x15b   : > { %v1635_v59 = vpop.f32.mrf.mxu0  ;;  %v5681_v4 = vpop.f32.mrf.mxu1  ;;  %4116 = vmatmul.mubr.msk.bf16.gmra.mxu1 %vm767_vm3, %v6578_v51 }
 0x15c   : > { %1759 = vst.msk [vmem:[%s5491_s7 + $0xa8] sm:$0xff] %vm1737_vm11, %v1726_v23  ;;  %v1731_v42 = vadd.f32 %v5478_v45, %v1692_v27  ;;  %v1690_v12 = vadd.f32 %v1635_v59, %v1243_v61  ;;  %4119 = vmatprep.mubr.msk.bf16.mxu1 %vm4417_vm8, %v6517_v25  ;;  %v6591_v59 = vld [vmem:[#allocation26_spill] sm:$0xff] }
 0x15d   : > { %v3922_v58 = vpop.f32.mrf.mxu0  ;;  %v3957_v3 = vpop.f32.mrf.mxu1 }
 0x15e   : > { %1764 = vst.msk [vmem:[%s5491_s7 + $0xd0] sm:$0xff] %vm1737_vm11, %v1731_v42  ;;  %v1729_v34 = vadd.f32 %v5478_v45, %v1690_v12  ;;  %v1693_v36 = vadd.f32 %v3922_v58, %v1254_v7  ;;  %v6592_v12 = vld [vmem:[#allocation32_spill] sm:$0xff] }
 0x15f   : > { %v1638_v8 = vpop.f32.mrf.mxu0  ;;  %v5697_v29 = vpop.f32.mrf.mxu1 }
 0x160   : > { %1762 = vst.msk [vmem:[%s5491_s7 + $0xc0] sm:$0xff] %vm1737_vm11, %v1729_v34  ;;  %v1732_v44 = vadd.f32 %v5478_v45, %v1693_v36  ;;  %v1691_v49 = vadd.f32 %v1638_v8, %v1246_v28  ;;  %v6593_v28 = vld [vmem:[#allocation29_spill] sm:$0xff] }
 0x161   : > { %v3925_v55 = vpop.f32.mrf.mxu0  ;;  %4166 = vmatmul.mubr.msk.bf16.gmra.mxu0 %vm767_vm3, %v6585_v38  ;;  %v3958_v50 = vpop.f32.mrf.mxu1 }
 0x162   : > { %1765 = vst.msk [vmem:[%s5491_s7 + $0xd8] sm:$0xff] %vm1737_vm11, %v1732_v44  ;;  %v1730_v57 = vadd.f32 %v5478_v45, %v1691_v49  ;;  %v1696_v20 = vadd.f32 %v3925_v55, %v1267_v31  ;;  %4169 = vmatprep.mubr.msk.bf16.mxu0 %vm4417_vm8, %v6517_v25  ;;  %v6594_v31 = vld [vmem:[#allocation35_spill] sm:$0xff]  ;;  %v6595_v50 = vld [vmem:[#allocation8_spill] sm:$0xff] }
 0x163   : > { %v1651_v17 = vpop.f32.mrf.mxu0  ;;  %v5713_v19 = vpop.f32.mrf.mxu1  ;;  %4120 = vmatmul.mubr.msk.bf16.gmra.mxu1 %vm767_vm3, %v6587_v18 }
 0x164   : > { %1763 = vst.msk [vmem:[%s5491_s7 + $0xc8] sm:$0xff] %vm1737_vm11, %v1730_v57  ;;  %v1735_v15 = vadd.f32 %v5478_v45, %v1696_v20  ;;  %v1694_v37 = vadd.f32 %v1651_v17, %v1259_v53  ;;  %4123 = vmatprep.mubr.msk.bf16.mxu1 %vm4417_vm8, %v6517_v25 }
 0x165   : > { %v3926_v33 = vpop.f32.mrf.mxu0  ;;  %v3961_v56 = vpop.f32.mrf.mxu1 }
 0x166   : > { %1768 = vst.msk [vmem:[%s5491_s7 + $0xf0] sm:$0xff] %vm1737_vm11, %v1735_v15  ;;  %v1733_v60 = vadd.f32 %v5478_v45, %v1694_v37  ;;  %v1697_v13 = vadd.f32 %v3926_v33, %v1270_v11  ;;  %v6597_v56 = vld [vmem:[#allocation10_spill] sm:$0xff] }
 0x167   : > { %v1654_v16 = vpop.f32.mrf.mxu0  ;;  %v5729_v41 = vpop.f32.mrf.mxu1 }
 0x168   : > { %1766 = vst.msk [vmem:[%s5491_s7 + $0xe0] sm:$0xff] %vm1737_vm11, %v1733_v60  ;;  %v1736_v43 = vadd.f32 %v5478_v45, %v1697_v13  ;;  %v1695_v63 = vadd.f32 %v1654_v16, %v1262_v24  ;;  %v6598_v16 = vld [vmem:[#allocation5_spill] sm:$0xff] }
 0x169   : > { %v2176_v46 = vpop.f32.mrf.mxu0  ;;  %4170 = vmatmul.mubr.msk.bf16.gmra.mxu0 %vm767_vm3, %v6590_v1  ;;  %v3962_v26 = vpop.f32.mrf.mxu1 }
 0x16a   : > { %1769 = vst.msk [vmem:[%s5491_s7 + $0xf8] sm:$0xff] %vm1737_vm11, %v1736_v43  ;;  %v1734_v9 = vadd.f32 %v5478_v45, %v1695_v63  ;;  %v5740_v61 = vadd.f32 %v2176_v46, %v5615_v52  ;;  %4173 = vmatprep.mubr.msk.bf16.mxu0 %vm4417_vm8, %v6517_v25  ;;  %v6599_v26 = vld [vmem:[#allocation12_spill] sm:$0xff] }
 0x16b   : > { %v4011_v23 = vpop.f32.mrf.mxu0  ;;  %v2052_v27 = vpop.f32.mrf.mxu1  ;;  %4124 = vmatmul.mubr.msk.bf16.gmra.mxu1 %vm767_vm3, %v6591_v59 }
 0x16c   : > { %1767 = vst.msk [vmem:[%s5491_s7 + $0xe8] sm:$0xff] %vm1737_vm11, %v1734_v9  ;;  %4127 = vmatprep.mubr.msk.bf16.mxu1 %vm4417_vm8, %v6517_v25 }
 0x16d   : > { %v2179_v0 = vpop.f32.mrf.mxu0  ;;  %v3965_v35 = vpop.f32.mrf.mxu1 }
 0x16e   : > { %v5751_v45 = vadd.f32 %v2179_v0, %v5633_v48 }
 0x16f   : > { %v4012_v52 = vpop.f32.mrf.mxu0  ;;  %v2055_v7 = vpop.f32.mrf.mxu1 }
 0x171   : > { %v2184_v42 = vpop.f32.mrf.mxu0  ;;  %4174 = vmatmul.mubr.msk.bf16.gmra.mxu0 %vm767_vm3, %v6592_v12  ;;  %v3966_v58 = vpop.f32.mrf.mxu1 }
 0x172   : > { %v5756_v3 = vadd.f32 %v2184_v42, %v5649_v40  ;;  %4177 = vmatprep.mubr.msk.bf16.mxu0 %vm4417_vm8, %v6517_v25  ;;  %v3656_v40 = vld [vmem:[%s6390_s2 + $0xe] sm:$0x3] }
 0x173   : > { %v4015_v5 = vpop.f32.mrf.mxu0  ;;  %v2060_v54 = vpop.f32.mrf.mxu1  ;;  %4128 = vmatmul.mubr.msk.bf16.gmra.mxu1 %vm767_vm3, %v6593_v28  ;;  %v3168_v49 = vsel %vm816_vm0, %v3656_v40, 0 }
 0x174   : > { %4195 = vmatprep.mubr.msk.bf16.mxu1 %vm4417_vm8, %v6517_v25 }
 0x175   : > { %v2187_v48 = vpop.f32.mrf.mxu0  ;;  %v3969_v34 = vpop.f32.mrf.mxu1 }
 0x176   : > { %v5765_v36 = vadd.f32 %v2187_v48, %v5665_v22  ;;  %v6601_v48 = vld [vmem:[#allocation14_spill] sm:$0xff] }
 0x177   : > { %v4016_v8 = vpop.f32.mrf.mxu0  ;;  %v2063_v32 = vpop.f32.mrf.mxu1 }
 0x179   : > { %v2192_v47 = vpop.f32.mrf.mxu0  ;;  %4178 = vmatmul.mubr.msk.bf16.gmra.mxu0 %vm767_vm3, %v6594_v31  ;;  %v3970_v44 = vpop.f32.mrf.mxu1 }
 0x17a   : > { %v5774_v55 = vadd.f32 %v2192_v47, %v5681_v4  ;;  %4181 = vmatprep.mubr.msk.bf16.mxu0 %vm4417_vm8, %v6517_v25 }
 0x17b   : > { %v4019_v22 = vpop.f32.mrf.mxu0  ;;  %v2068_v38 = vpop.f32.mrf.mxu1  ;;  %4196 = vmatmul.mubr.msk.bf16.vlgmr.msra.gmra.mxu1 %vm767_vm3, %v6595_v50 }
 0x17c   : > { %4318 = vmatpush3.bf16.msra.mxu1 %v3168_v49  ;;  %4199 = vmatprep.mubr.msk.bf16.mxu1 %vm4417_vm8, %v6517_v25 }
 0x17d   : > { %v2195_v62 = vpop.f32.mrf.mxu0  ;;  %v3973_v53 = vpop.f32.mrf.mxu1  ;;  %4323 = vmatprep.subr.bf16.mxu1 %v6517_v25 }
 0x17e   : > { %v5784_v57 = vadd.f32 %v2195_v62, %v5697_v29  ;;  %v6603_v62 = vld [vmem:[#allocation16_spill] sm:$0xff] }
 0x17f   : > { %v4020_v4 = vpop.f32.mrf.mxu0  ;;  %v2071_v20 = vpop.f32.mrf.mxu1 }
 0x181   : > { %v2200_v17 = vpop.f32.mrf.mxu0  ;;  %4182 = vmatmul.mubr.msk.bf16.gmra.mxu0 %vm767_vm3, %v6596_v30  ;;  %v3974_v11 = vpop.f32.mrf.mxu1 }
 0x182   : > { %v5789_v15 = vadd.f32 %v2200_v17, %v5713_v19  ;;  %4185 = vmatprep.mubr.msk.bf16.mxu0 %vm4417_vm8, %v6517_v25 }
 0x183   : > { %v4023_v37 = vpop.f32.mrf.mxu0  ;;  %v2076_v33 = vpop.f32.mrf.mxu1  ;;  %4200 = vmatmul.mubr.msk.bf16.gmra.mxu1 %vm767_vm3, %v6597_v56 }
 0x184   : > { %4203 = vmatprep.mubr.msk.bf16.mxu1 %vm4417_vm8, %v6517_v25 }
 0x185   : > { %v2203_v29 = vpop.f32.mrf.mxu0  ;;  %v3977_v2 = vpop.f32.mrf.mxu1 }
 0x186   : > { %v5798_v24 = vadd.f32 %v2203_v29, %v5729_v41 }
 0x187   : > { %v4024_v60 = vpop.f32.mrf.mxu0  ;;  %v2079_v13 = vpop.f32.mrf.mxu1 }
 0x188   : > { %v6605_v60 = vld [vmem:[#allocation20_spill] sm:$0xff] }
 0x189   : > { %v2208_v19 = vpop.f32.mrf.mxu0  ;;  %4186 = vmatmul.mubr.msk.bf16.gmra.mxu0 %vm767_vm3, %v6598_v16  ;;  %v3978_v43 = vpop.f32.mrf.mxu1 }
 0x18a   : > { %v5802_v63 = vadd.f32 %v2208_v19, %v2052_v27  ;;  %4189 = vmatprep.mubr.msk.bf16.mxu0 %vm4417_vm8, %v6517_v25  ;;  %v6600_v27 = vld [vmem:[#allocation7_spill] sm:$0xff] }
 0x18b   : > { %v4027_v46 = vpop.f32.mrf.mxu0  ;;  %v2084_v1 = vpop.f32.mrf.mxu1  ;;  %4204 = vmatmul.mubr.msk.bf16.gmra.mxu1 %vm767_vm3, %v6599_v26 }
 0x18c   : > { %4207 = vmatprep.mubr.msk.bf16.mxu1 %vm4417_vm8, %v6517_v25 }
 0x18d   : > { %v2211_v41 = vpop.f32.mrf.mxu0  ;;  %v3981_v9 = vpop.f32.mrf.mxu1 }
 0x18e   : > { %v5810_v23 = vadd.f32 %v2211_v41, %v2055_v7 }
 0x18f   : > { %v4028_v0 = vpop.f32.mrf.mxu0  ;;  %v2087_v35 = vpop.f32.mrf.mxu1 }
 0x191   : > { %v2216_v52 = vpop.f32.mrf.mxu0  ;;  %4190 = vmatmul.mubr.msk.bf16.gmra.mxu0 %vm767_vm3, %v6600_v27  ;;  %v3982_v42 = vpop.f32.mrf.mxu1  ;;  %v6607_v27 = vld [vmem:[#allocation22_spill] sm:$0xff] }
 0x192   : > { %v5814_v12 = vadd.f32 %v2216_v52, %v2060_v54  ;;  %4257 = vmatprep.mubr.msk.bf16.mxu0 %vm4417_vm8, %v6517_v25  ;;  %v6602_v54 = vld [vmem:[#allocation37_spill] sm:$0xff] }
 0x193   : > { %v4031_v58 = vpop.f32.mrf.mxu0  ;;  %v2092_v5 = vpop.f32.mrf.mxu1  ;;  %4208 = vmatmul.mubr.msk.bf16.gmra.mxu1 %vm767_vm3, %v6601_v48 }
 0x194   : > { %4211 = vmatprep.mubr.msk.bf16.mxu1 %vm4417_vm8, %v6517_v25 }
 0x195   : > { %v2219_v7 = vpop.f32.mrf.mxu0  ;;  %v3985_v34 = vpop.f32.mrf.mxu1 }
 0x196   : > { %v5822_v40 = vadd.f32 %v2219_v7, %v2063_v32  ;;  %v6608_v34 = vld [vmem:[#allocation44_spill] sm:$0xff] }
 0x197   : > { %v4032_v8 = vpop.f32.mrf.mxu0  ;;  %v2095_v47 = vpop.f32.mrf.mxu1 }
 0x199   : > { %v2224_v31 = vpop.f32.mrf.mxu0  ;;  %4258 = vmatmul.mubr.msk.bf16.vlgmr.msra.gmra.mxu0 %vm767_vm3, %v6602_v54  ;;  %v3986_v44 = vpop.f32.mrf.mxu1 }
 0x19a   : > { %v5826_v49 = vadd.f32 %v2224_v31, %v2068_v38  ;;  %4261 = vmatprep.mubr.msk.bf16.mxu0 %vm4417_vm8, %v6517_v25  ;;  %v6604_v38 = vld [vmem:[#allocation42_spill] sm:$0xff] }
 0x19b   : > { %v4035_v22 = vpop.f32.mrf.mxu0  ;;  %v2100_v50 = vpop.f32.mrf.mxu1  ;;  %4212 = vmatmul.mubr.msk.bf16.gmra.mxu1 %vm767_vm3, %v6603_v62 }
 0x19c   : > { %4215 = vmatprep.mubr.msk.bf16.mxu1 %vm4417_vm8, %v6517_v25  ;;  %v6609_v22 = vld [vmem:[#allocation25_spill] sm:$0xff] }
 0x19d   : > { %v2227_v32 = vpop.f32.mrf.mxu0  ;;  %v3989_v53 = vpop.f32.mrf.mxu1 }
 0x19e   : > { %v5834_v4 = vadd.f32 %v2227_v32, %v2071_v20 }
 0x19f   : > { %v4036_v17 = vpop.f32.mrf.mxu0  ;;  %v2103_v30 = vpop.f32.mrf.mxu1 }
 0x1a1   : > { %v2232_v11 = vpop.f32.mrf.mxu0  ;;  %4262 = vmatmul.mubr.msk.bf16.gmra.mxu0 %vm767_vm3, %v6604_v38  ;;  %v3990_v37 = vpop.f32.mrf.mxu1 }
 0x1a2   : > { %v5838_v56 = vadd.f32 %v2232_v11, %v2076_v33  ;;  %4265 = vmatprep.mubr.msk.bf16.mxu0 %vm4417_vm8, %v6517_v25  ;;  %v6606_v33 = vld [vmem:[#allocation40_spill] sm:$0xff]  ;;  %v6610_v11 = vld [vmem:[#allocation43_spill] sm:$0xff] }
 0x1a3   : > { %v4039_v29 = vpop.f32.mrf.mxu0  ;;  %v2108_v2 = vpop.f32.mrf.mxu1  ;;  %4216 = vmatmul.mubr.msk.bf16.gmra.mxu1 %vm767_vm3, %v6605_v60 }
 0x1a4   : > { %4219 = vmatprep.mubr.msk.bf16.mxu1 %vm4417_vm8, %v6517_v25 }
 0x1a5   : > { %v2235_v20 = vpop.f32.mrf.mxu0  ;;  %v3993_v19 = vpop.f32.mrf.mxu1 }
 0x1a6   : > { %v5846_v16 = vadd.f32 %v2235_v20, %v2079_v13  ;;  %v6611_v20 = vld [vmem:[#allocation28_spill] sm:$0xff] }
 0x1a7   : > { %v4040_v43 = vpop.f32.mrf.mxu0  ;;  %v2111_v46 = vpop.f32.mrf.mxu1 }
 0x1a9   : > { %v2240_v26 = vpop.f32.mrf.mxu0  ;;  %4266 = vmatmul.mubr.msk.bf16.gmra.mxu0 %vm767_vm3, %v6606_v33  ;;  %v3994_v41 = vpop.f32.mrf.mxu1 }
 0x1aa   : > { %v5850_v9 = vadd.f32 %v2240_v26, %v2084_v1  ;;  %4269 = vmatprep.mubr.msk.bf16.mxu0 %vm4417_vm8, %v6517_v25 }
 0x1ab   : > { %v4043_v0 = vpop.f32.mrf.mxu0  ;;  %v2116_v52 = vpop.f32.mrf.mxu1  ;;  %4220 = vmatmul.mubr.msk.bf16.gmra.mxu1 %vm767_vm3, %v6607_v27 }
 0x1ac   : > { %4223 = vmatprep.mubr.msk.bf16.mxu1 %vm4417_vm8, %v6517_v25 }
 0x1ad   : > { %v2243_v13 = vpop.f32.mrf.mxu0  ;;  %v3997_v42 = vpop.f32.mrf.mxu1 }
 0x1ae   : > { %v5858_v58 = vadd.f32 %v2243_v13, %v2087_v35  ;;  %v6612_v42 = vld [vmem:[#allocation31_spill] sm:$0xff] }
 0x1af   : > { %v4044_v48 = vpop.f32.mrf.mxu0  ;;  %v5860_v7 = vpop.f32.mrf.mxu1 }
 0x1b1   : > { %v2248_v1 = vpop.f32.mrf.mxu0  ;;  %4270 = vmatmul.mubr.msk.bf16.gmra.mxu0 %vm767_vm3, %v6608_v34  ;;  %v3998_v8 = vpop.f32.mrf.mxu1 }
 0x1b2   : > { %v5864_v31 = vadd.f32 %v2248_v1, %v2092_v5  ;;  %4273 = vmatprep.mubr.msk.bf16.mxu0 %vm4417_vm8, %v6517_v25 }
 0x1b3   : > { %v4047_v54 = vpop.f32.mrf.mxu0  ;;  %v5868_v44 = vpop.f32.mrf.mxu1  ;;  %4224 = vmatmul.mubr.msk.bf16.gmra.mxu1 %vm767_vm3, %v6609_v22 }
 0x1b4   : > { %4227 = vmatprep.mubr.msk.bf16.mxu1 %vm4417_vm8, %v6517_v25 }
 0x1b5   : > { %v2251_v35 = vpop.f32.mrf.mxu0  ;;  %v4001_v62 = vpop.f32.mrf.mxu1 }
 0x1b6   : > { %v5874_v32 = vadd.f32 %v2251_v35, %v2095_v47 }
 0x1b7   : > { %v4048_v53 = vpop.f32.mrf.mxu0  ;;  %v5876_v17 = vpop.f32.mrf.mxu1 }
 0x1b9   : > { %v2256_v5 = vpop.f32.mrf.mxu0  ;;  %4274 = vmatmul.mubr.msk.bf16.gmra.mxu0 %vm767_vm3, %v6610_v11  ;;  %v4002_v38 = vpop.f32.mrf.mxu1 }
 0x1ba   : > { %v5880_v37 = vadd.f32 %v2256_v5, %v2100_v50  ;;  %4277 = vmatprep.mubr.msk.bf16.mxu0 %vm4417_vm8, %v6517_v25  ;;  %v6613_v38 = vld [vmem:[#allocation33_spill] sm:$0xff] }
 0x1bb   : > { %v4051_v29 = vpop.f32.mrf.mxu0  ;;  %v5884_v60 = vpop.f32.mrf.mxu1  ;;  %4228 = vmatmul.mubr.msk.bf16.gmra.mxu1 %vm767_vm3, %v6611_v20 }
 0x1bc   : > { %4231 = vmatprep.mubr.msk.bf16.mxu1 %vm4417_vm8, %v6517_v25 }
 0x1bd   : > { %v2259_v47 = vpop.f32.mrf.mxu0  ;;  %v4005_v19 = vpop.f32.mrf.mxu1 }
 0x1be   : > { %v5890_v43 = vadd.f32 %v2259_v47, %v2103_v30 }
 0x1bf   : > { %v4052_v26 = vpop.f32.mrf.mxu0  ;;  %v5892_v50 = vpop.f32.mrf.mxu1 }
 0x1c1   : > { %v2264_v33 = vpop.f32.mrf.mxu0  ;;  %4278 = vmatmul.mubr.msk.bf16.gmra.mxu0 %vm767_vm3, %v5074_v6  ;;  %v4006_v41 = vpop.f32.mrf.mxu1  ;;  %v1951_v6 = vld [vmem:[%s5491_s7 + $0x10] sm:$0xff] }
 0x1c2   : > { %v5896_v0 = vadd.f32 %v2264_v33, %v2108_v2  ;;  %4281 = vmatprep.mubr.msk.bf16.mxu0 %vm4417_vm8, %v6517_v25 }
 0x1c3   : > { %v4055_v27 = vpop.f32.mrf.mxu0  ;;  %v2333_v13 = vpop.f32.mrf.mxu1  ;;  %4232 = vmatmul.mubr.msk.bf16.gmra.mxu1 %vm767_vm3, %v6612_v42 }
 0x1c4   : > { %v2452_v30 = vadd.f32 %v2333_v13, %v5740_v61  ;;  %4235 = vmatprep.mubr.msk.bf16.mxu1 %vm4417_vm8, %v6517_v25  ;;  %v1952_v61 = vld [vmem:[%s5491_s7 + $0x18] sm:$0xff] }
 0x1c5   : > { %v2267_v48 = vpop.f32.mrf.mxu0  ;;  %v4073_v1 = vpop.f32.mrf.mxu1 }
 0x1c6   : > { %v5906_v34 = vadd.f32 %v2267_v48, %v2111_v46  ;;  %v2482_v2 = vadd.f32 %v2452_v30, %v1951_v6  ;;  %v6614_v48 = vld [vmem:[#allocation34_spill] sm:$0xff] }
 0x1c7   : > { %v4056_v8 = vpop.f32.mrf.mxu0  ;;  %v2336_v54 = vpop.f32.mrf.mxu1 }
 0x1c8   : > { %2512 = vst.msk [vmem:[%s5491_s7 + $0x10] sm:$0xff] %vm1737_vm11, %v2482_v2  ;;  %v2453_v22 = vadd.f32 %v2336_v54, %v5751_v45 }
 0x1c9   : > { %v2272_v35 = vpop.f32.mrf.mxu0  ;;  %4282 = vmatmul.mubr.msk.bf16.gmra.mxu0 %vm767_vm3, %v5050_v14  ;;  %v4074_v62 = vpop.f32.mrf.mxu1 }
 0x1ca   : > { %v5914_v53 = vadd.f32 %v2272_v35, %v2116_v52  ;;  %v2483_v46 = vadd.f32 %v2453_v22, %v1952_v61  ;;  %4285 = vmatprep.mubr.msk.bf16.mxu0 %vm4417_vm8, %v6517_v25  ;;  %v1953_v52 = vld [vmem:[%s5491_s7 + $0x20] sm:$0xff] }
 0x1cb   : > { %v4059_v5 = vpop.f32.mrf.mxu0  ;;  %v2341_v11 = vpop.f32.mrf.mxu1  ;;  %4236 = vmatmul.mubr.msk.bf16.gmra.mxu1 %vm767_vm3, %v6613_v38 }
 0x1cc   : > { %2513 = vst.msk [vmem:[%s5491_s7 + $0x18] sm:$0xff] %vm1737_vm11, %v2483_v46  ;;  %v2454_v45 = vadd.f32 %v2341_v11, %v5756_v3  ;;  %4239 = vmatprep.mubr.msk.bf16.mxu1 %vm4417_vm8, %v6517_v25  ;;  %v1954_v3 = vld [vmem:[%s5491_s7 + $0x28] sm:$0xff]  ;;  %v6615_v11 = vld [vmem:[#allocation36_spill] sm:$0xff] }
 0x1cd   : > { %v2275_v14 = vpop.f32.mrf.mxu0  ;;  %v4077_v29 = vpop.f32.mrf.mxu1 }
 0x1ce   : > { %v5927_v20 = vadd.f32 %v2275_v14, %v5860_v7  ;;  %v2484_v47 = vadd.f32 %v2454_v45, %v1953_v52 }
 0x1cf   : > { %v4060_v19 = vpop.f32.mrf.mxu0  ;;  %v2344_v26 = vpop.f32.mrf.mxu1 }
 0x1d0   : > { %2514 = vst.msk [vmem:[%s5491_s7 + $0x20] sm:$0xff] %vm1737_vm11, %v2484_v47  ;;  %v2455_v33 = vadd.f32 %v2344_v26, %v5765_v36  ;;  %v5977_v19 = vld [vmem:[%s4686_s8 + $0xc] sm:$0xff]  }
 0x1d1   : > { %v2280_v41 = vpop.f32.mrf.mxu0  ;;  %4286 = vmatmul.mubr.msk.bf16.gmra.mxu0 %vm767_vm3, %v5099_v10  ;;  %v4078_v27 = vpop.f32.mrf.mxu1  ;;  %v1958_v26 = vld [vmem:[%s5491_s7 + $0x48] sm:$0xff] }
 0x1d2   : > { %v5936_v13 = vadd.f32 %v2280_v41, %v5868_v44  ;;  %v2485_v7 = vadd.f32 %v2455_v33, %v1954_v3  ;;  %4289 = vmatprep.mubr.msk.bf16.mxu0 %vm4417_vm8, %v6517_v25  ;;  %v1955_v44 = vld [vmem:[%s5491_s7 + $0x30] sm:$0xff]  ;;  %v6616_v27 = vld [vmem:[#allocation39_spill] sm:$0xff] }
 0x1d3   : > { %v4063_v42 = vpop.f32.mrf.mxu0  ;;  %v2349_v30 = vpop.f32.mrf.mxu1  ;;  %4240 = vmatmul.mubr.msk.bf16.gmra.mxu1 %vm767_vm3, %v6614_v48 }
 0x1d4   : > { %2515 = vst.msk [vmem:[%s5491_s7 + $0x28] sm:$0xff] %vm1737_vm11, %v2485_v7  ;;  %v2456_v10 = vadd.f32 %v2349_v30, %v5774_v55  ;;  %4243 = vmatprep.mubr.msk.bf16.mxu1 %vm4417_vm8, %v6517_v25  ;;  %v1956_v55 = vld [vmem:[%s5491_s7 + $0x38] sm:$0xff]  ;;  %v3155_v7 = vshll.u32 %v5977_v19, 16  ;;  %v1959_v30 = vld [vmem:[%s5491_s7 + $0x50] sm:$0xff] }
 0x1d5   : > { %v2283_v36 = vpop.f32.mrf.mxu0  ;;  %v4081_v6 = vpop.f32.mrf.mxu1 }
 0x1d6   : > { %v5949_v1 = vadd.f32 %v2283_v36, %v5876_v17  ;;  %v2486_v2 = vadd.f32 %v2456_v10, %v1955_v44  ;;  %v3153_v6 = vshrl.u32 %v5977_v19, 16 }
 0x1d7   : > { %v4064_v8 = vpop.f32.mrf.mxu0  ;;  %v2352_v54 = vpop.f32.mrf.mxu1 }
 0x1d8   : > { %2516 = vst.msk [vmem:[%s5491_s7 + $0x30] sm:$0xff] %vm1737_vm11, %v2486_v2  ;;  %v2457_v22 = vadd.f32 %v2352_v54, %v5784_v57  ;;  %v3157_v2 = vrot.slane %v3155_v7, 1 }
 0x1d9   : > { %v2288_v35 = vpop.f32.mrf.mxu0  ;;  %4290 = vmatmul.mubr.msk.bf16.gmra.mxu0 %vm767_vm3, %v5127_v39  ;;  %v4082_v61 = vpop.f32.mrf.mxu1 }
 0x1da   : > { %v5958_v62 = vadd.f32 %v2288_v35, %v5884_v60  ;;  %v2487_v17 = vadd.f32 %v2457_v22, %v1956_v55  ;;  %4293 = vmatprep.mubr.msk.bf16.mxu0 %vm4417_vm8, %v6517_v25  ;;  %v1957_v60 = vld [vmem:[%s5491_s7 + $0x40] sm:$0xff]  ;;  %v1960_v22 = vld [vmem:[%s5491_s7 + $0x58] sm:$0xff] }
 0x1db   : > { %v4067_v46 = vpop.f32.mrf.mxu0  ;;  %v2357_v5 = vpop.f32.mrf.mxu1  ;;  %4244 = vmatmul.mubr.msk.bf16.gmra.mxu1 %vm767_vm3, %v6615_v11 }
 0x1dc   : > { %2517 = vst.msk [vmem:[%s5491_s7 + $0x38] sm:$0xff] %vm1737_vm11, %v2487_v17  ;;  %v2458_v39 = vadd.f32 %v2357_v5, %v5789_v15  ;;  %4247 = vmatprep.mubr.msk.bf16.mxu1 %vm4417_vm8, %v6517_v25  ;;  %v6617_v17 = vld [vmem:[#allocation41_spill] sm:$0xff] }
 0x1dd   : > { %v2291_v57 = vpop.f32.mrf.mxu0  ;;  %v4085_v38 = vpop.f32.mrf.mxu1 }
 0x1de   : > { %v5971_v45 = vadd.f32 %v2291_v57, %v5892_v50  ;;  %v2488_v14 = vadd.f32 %v2458_v39, %v1957_v60  ;;  %v1961_v39 = vld [vmem:[%s5491_s7 + $0x60] sm:$0xff]  ;;  %v3655_v38 = vld [vmem:[%s6390_s2 + $0xc] sm:$0x3] }
 0x1df   : > { %v4068_v52 = vpop.f32.mrf.mxu0  ;;  %v2360_v29 = vpop.f32.mrf.mxu1 }
 0x1e0   : > { %2518 = vst.msk [vmem:[%s5491_s7 + $0x40] sm:$0xff] %vm1737_vm11, %v2488_v14  ;;  %v2459_v47 = vadd.f32 %v2360_v29, %v5798_v24 }
 0x1e1   : > { %v5979_v15 = vpop.f32.mrf.mxu0  ;;  %4294 = vmatmul.mubr.msk.bf16.gmra.mxu0 %vm767_vm3, %v6570_v21  ;;  %v4086_v50 = vpop.f32.mrf.mxu1  ;;  %v5994_v21 = vld [vmem:[%s4686_s8 + $0x14] ss:$0 sps:$4 sm:$0x11]  }
 0x1e2   : > { %v2489_v33 = vadd.f32 %v2459_v47, %v1958_v26  ;;  %4297 = vmatprep.mubr.msk.bf16.mxu0 %vm4417_vm8, %v6517_v25  ;;  %v3160_v8 = vshll.u32 %v5994_v21, 16  ;;  %v1962_v26 = vld [vmem:[%s5491_s7 + $0x68] sm:$0xff] }
 0x1e3   : > { %v4135_v41 = vpop.f32.mrf.mxu0  ;;  %v2365_v3 = vpop.f32.mrf.mxu1  ;;  %4248 = vmatmul.mubr.msk.bf16.gmra.mxu1 %vm767_vm3, %v6616_v27 }
 0x1e4   : > { %2519 = vst.msk [vmem:[%s5491_s7 + $0x48] sm:$0xff] %vm1737_vm11, %v2489_v33  ;;  %v2460_v24 = vadd.f32 %v2365_v3, %v5802_v63  ;;  %4251 = vmatprep.mubr.msk.bf16.mxu1 %vm4417_vm8, %v6517_v25  ;;  %v3162_v5 = vrot.slane %v3160_v8, 1  ;;  %v3214_v33 = vsel %vm816_vm0, %v3655_v38, 0 }
 0x1e5   : > { %v5997_v42 = vpop.f32.mrf.mxu0  ;;  %v4089_v48 = vpop.f32.mrf.mxu1 }
 0x1e6   : > { %v2490_v10 = vadd.f32 %v2460_v24, %v1959_v30  ;;  %v1963_v24 = vld [vmem:[%s5491_s7 + $0x70] sm:$0xff] }
 0x1e7   : > { %v4136_v36 = vpop.f32.mrf.mxu0  ;;  %v2368_v44 = vpop.f32.mrf.mxu1  ;;  %v3661_v48 = vld [vmem:[%s6390_s2 + $0x10] sm:$0x3] }
 0x1e8   : > { %2520 = vst.msk [vmem:[%s5491_s7 + $0x50] sm:$0xff] %vm1737_vm11, %v2490_v10  ;;  %v2461_v63 = vadd.f32 %v2368_v44, %v5810_v23 }
 0x1e9   : > { %v6005_v54 = vpop.f32.mrf.mxu0  ;;  %4298 = vmatmul.mubr.msk.bf16.gmra.mxu0 %vm767_vm3, %v6578_v51  ;;  %v4090_v35 = vpop.f32.mrf.mxu1  ;;  %v3158_v51 = vor.u32 %v3157_v2, %v3153_v6  ;;  %v3265_v2 = vsel %vm816_vm0, %v3661_v48, 0 }
 0x1ea   : > { %v2491_v55 = vadd.f32 %v2461_v63, %v1960_v22  ;;  %4301 = vmatprep.mubr.msk.bf16.mxu0 %vm4417_vm8, %v6517_v25  ;;  %v1964_v63 = vld [vmem:[%s5491_s7 + $0x78] sm:$0xff] }
 0x1eb   : > { %v4139_v61 = vpop.f32.mrf.mxu0  ;;  %v2373_v23 = vpop.f32.mrf.mxu1  ;;  %4252 = vmatmul.mubr.msk.bf16.gmra.mxu1 %vm767_vm3, %v6617_v17  ;;  %v3163_v29 = vsel %vm1786_vm9, %v3158_v51, %v3162_v5 }
 0x1ec   : > { %2521 = vst.msk [vmem:[%s5491_s7 + $0x58] sm:$0xff] %vm1737_vm11, %v2491_v55  ;;  %v2462_v46 = vadd.f32 %v2373_v23, %v5814_v12  ;;  %4319 = vmatprep.mubr.msk.bf16.mxu1 %vm4417_vm8, %v6517_v25  ;;  %v3259_v55 = vrot.slane %v5994_v21, 1  ;;  %v1965_v23 = vld [vmem:[%s5491_s7 + $0x80] sm:$0xff] }
 0x1ed   : > { %v6019_v11 = vpop.f32.mrf.mxu0  ;;  %v4093_v57 = vpop.f32.mrf.mxu1 }
 0x1ee   : > { %v2492_v60 = vadd.f32 %v2462_v46, %v1961_v39 }
 0x1ef   : > { %v4140_v14 = vpop.f32.mrf.mxu0  ;;  %v2376_v52 = vpop.f32.mrf.mxu1 }
 0x1f0   : > { %2522 = vst.msk [vmem:[%s5491_s7 + $0x60] sm:$0xff] %vm1737_vm11, %v2492_v60  ;;  %v2463_v12 = vadd.f32 %v2376_v52, %v5822_v40 }
 0x1f1   : > { %v6029_v47 = vpop.f32.mrf.mxu0  ;;  %4302 = vmatmul.mubr.msk.bf16.gmra.mxu0 %vm767_vm3, %v6587_v18  ;;  %v4094_v50 = vpop.f32.mrf.mxu1 }
 0x1f2   : > { %v2493_v41 = vadd.f32 %v2463_v12, %v1962_v26  ;;  %4305 = vmatprep.mubr.msk.bf16.mxu0 %vm4417_vm8, %v6517_v25 }
 0x1f3   : > { %v4143_v3 = vpop.f32.mrf.mxu0  ;;  %v2381_v27 = vpop.f32.mrf.mxu1  ;;  %4320 = vmatmul.mubr.msk.bf16.vlgmr.msra.gmra.mxu1 %vm767_vm3, %v3163_v29 }
 0x1f4   : > { %2523 = vst.msk [vmem:[%s5491_s7 + $0x68] sm:$0xff] %vm1737_vm11, %v2493_v41  ;;  %v2464_v40 = vadd.f32 %v2381_v27, %v5826_v49  ;;  %4324 = vmatpush3.bf16.msra.mxu1 %v3214_v33  ;;  %4325 = vmatprep.mubr.msk.bf16.mxu1 %vm4417_vm8, %v6517_v25  ;;  %v6618_v41 = vld [vmem:[#allocation2_spill] sm:$0xff] }
 0x1f5   : > { %v6043_v18 = vpop.f32.mrf.mxu0  ;;  %v4097_v7 = vpop.f32.mrf.mxu1  ;;  %4329 = vmatprep.subr.bf16.mxu1 %v6517_v25 }
 0x1f6   : > { %v2494_v30 = vadd.f32 %v2464_v40, %v1963_v24 }
 0x1f7   : > { %v4144_v10 = vpop.f32.mrf.mxu0  ;;  %v2384_v36 = vpop.f32.mrf.mxu1 }
 0x1f8   : > { %2524 = vst.msk [vmem:[%s5491_s7 + $0x70] sm:$0xff] %vm1737_vm11, %v2494_v30  ;;  %v2465_v49 = vadd.f32 %v2384_v36, %v5834_v4 }
 0x1f9   : > { %v6053_v44 = vpop.f32.mrf.mxu0  ;;  %4306 = vmatmul.mubr.msk.bf16.gmra.mxu0 %vm767_vm3, %v6591_v59  ;;  %v4098_v6 = vpop.f32.mrf.mxu1  ;;  %v3258_v59 = vrot.slane %v5977_v19, 1 }
 0x1fa   : > { %v2495_v8 = vadd.f32 %v2465_v49, %v1964_v63  ;;  %4309 = vmatprep.mubr.msk.bf16.mxu0 %vm4417_vm8, %v6517_v25 }
 0x1fb   : > { %v4147_v22 = vpop.f32.mrf.mxu0  ;;  %v2389_v35 = vpop.f32.mrf.mxu1  ;;  %4326 = vmatmul.mubr.msk.bf16.vlgmr.msra.gmra.mxu1 %vm767_vm3, %v5977_v19  ;;  %v3260_v39 = vsel %vm1894_vm10, %v3258_v59, %v3259_v55  ;;  %v1966_v19 = vld [vmem:[%s5491_s7 + $0x88] sm:$0xff]  ;;  %v1971_v55 = vld [vmem:[%s5491_s7 + $0xb0] sm:$0xff] }
 0x1fc   : > { %2525 = vst.msk [vmem:[%s5491_s7 + $0x78] sm:$0xff] %vm1737_vm11, %v2495_v8  ;;  %v2466_v4 = vadd.f32 %v2389_v35, %v5838_v56  ;;  %4330 = vmatpush3.bf16.msra.mxu1 %v3265_v2  ;;  %4331 = vmatprep.mubr.msk.bf16.mxu1 %vm4417_vm8, %v6517_v25  ;;  %v1970_v2 = vld [vmem:[%s5491_s7 + $0xa8] sm:$0xff] }
 0x1fd   : > { %v6070_v61 = vpop.f32.mrf.mxu0  ;;  %v4101_v17 = vpop.f32.mrf.mxu1 }
 0x1fe   : > { %v2496_v46 = vadd.f32 %v2466_v4, %v1965_v23 }
 0x1ff   : > { %v4148_v51 = vpop.f32.mrf.mxu0  ;;  %v2392_v5 = vpop.f32.mrf.mxu1 }
 0x200   : > { %2526 = vst.msk [vmem:[%s5491_s7 + $0x80] sm:$0xff] %vm1737_vm11, %v2496_v46  ;;  %v2467_v56 = vadd.f32 %v2392_v5, %v5846_v16 }
 0x201   : > { %v6077_v57 = vpop.f32.mrf.mxu0  ;;  %4310 = vmatmul.mubr.msk.bf16.gmra.mxu0 %vm767_vm3, %v6593_v28  ;;  %v4102_v21 = vpop.f32.mrf.mxu1  ;;  %v1967_v28 = vld [vmem:[%s5491_s7 + $0x90] sm:$0xff] }
 0x202   : > { %v2497_v60 = vadd.f32 %v2467_v56, %v1966_v19  ;;  %4313 = vmatprep.mubr.msk.bf16.mxu0 %vm4417_vm8, %v6517_v25  ;;  %v1972_v56 = vld [vmem:[%s5491_s7 + $0xb8] sm:$0xff] }
 0x203   : > { %v4151_v38 = vpop.f32.mrf.mxu0  ;;  %v2397_v14 = vpop.f32.mrf.mxu1  ;;  %4332 = vmatmul.mubr.msk.bf16.vlgmr.msra.gmra.mxu1 %vm767_vm3, %v3260_v39 }
 0x204   : > { %2527 = vst.msk [vmem:[%s5491_s7 + $0x88] sm:$0xff] %vm1737_vm11, %v2497_v60  ;;  %v2468_v16 = vadd.f32 %v2397_v14, %v5850_v9  ;;  %v1968_v9 = vld [vmem:[%s5491_s7 + $0x98] sm:$0xff]  ;;  %v1973_v14 = vld [vmem:[%s5491_s7 + $0xc0] sm:$0xff] }
 0x205   : > { %v6088_v52 = vpop.f32.mrf.mxu0  ;;  %v4105_v12 = vpop.f32.mrf.mxu1 }
 0x206   : > { %v2498_v29 = vadd.f32 %v2468_v16, %v1967_v28 }
 0x207   : > { %v4152_v26 = vpop.f32.mrf.mxu0  ;;  %v2400_v50 = vpop.f32.mrf.mxu1 }
 0x208   : > { %2528 = vst.msk [vmem:[%s5491_s7 + $0x90] sm:$0xff] %vm1737_vm11, %v2498_v29  ;;  %v2469_v25 = vadd.f32 %v2400_v50, %v5858_v58  ;;  %v1969_v58 = vld [vmem:[%s5491_s7 + $0xa0] sm:$0xff]  ;;  %v1974_v50 = vld [vmem:[%s5491_s7 + $0xc8] sm:$0xff] }
 0x209   : > { %v6094_v33 = vpop.f32.mrf.mxu0  ;;  %4314 = vmatmul.mubr.msk.bf16.gmra.mxu0 %vm767_vm3, %v6618_v41  ;;  %v4106_v3 = vpop.f32.mrf.mxu1 }
 0x20a   : > { %v2499_v27 = vadd.f32 %v2469_v25, %v1968_v9 }
 0x20b   : > { %v4155_v40 = vpop.f32.mrf.mxu0  ;;  %v2405_v24 = vpop.f32.mrf.mxu1 }
 0x20c   : > { %2529 = vst.msk [vmem:[%s5491_s7 + $0x98] sm:$0xff] %vm1737_vm11, %v2499_v27  ;;  %v2470_v7 = vadd.f32 %v2405_v24, %v5864_v31  ;;  %v1975_v40 = vld [vmem:[%s5491_s7 + $0xd0] sm:$0xff] }
 0x20d   : > { %v6102_v30 = vpop.f32.mrf.mxu0  ;;  %v4109_v48 = vpop.f32.mrf.mxu1 }
 0x20e   : > { %v2500_v10 = vadd.f32 %v2470_v7, %v1969_v58 }
 0x20f   : > { %v4156_v36 = vpop.f32.mrf.mxu0  ;;  %v2408_v49 = vpop.f32.mrf.mxu1 }
 0x210   : > { %2530 = vst.msk [vmem:[%s5491_s7 + $0xa0] sm:$0xff] %vm1737_vm11, %v2500_v10  ;;  %v2471_v63 = vadd.f32 %v2408_v49, %v5874_v32  ;;  %v1976_v36 = vld [vmem:[%s5491_s7 + $0xd8] sm:$0xff] }
 0x211   : > { %v6108_v6 = vpop.f32.mrf.mxu0  ;;  %v4110_v8 = vpop.f32.mrf.mxu1 }
 0x212   : > { %v2501_v22 = vadd.f32 %v2471_v63, %v1970_v2 }
 0x213   : > { %v4159_v31 = vpop.f32.mrf.mxu0  ;;  %v2413_v35 = vpop.f32.mrf.mxu1 }
 0x214   : > { %2531 = vst.msk [vmem:[%s5491_s7 + $0xa8] sm:$0xff] %vm1737_vm11, %v2501_v22  ;;  %v2472_v4 = vadd.f32 %v2413_v35, %v5880_v37  ;;  %v1977_v31 = vld [vmem:[%s5491_s7 + $0xe0] sm:$0xff] }
 0x215   : > { %v6114_v59 = vpop.f32.mrf.mxu0  ;;  %v4113_v23 = vpop.f32.mrf.mxu1 }
 0x216   : > { %v2502_v17 = vadd.f32 %v2472_v4, %v1971_v55 }
 0x217   : > { %v4160_v32 = vpop.f32.mrf.mxu0  ;;  %v2416_v46 = vpop.f32.mrf.mxu1 }
 0x218   : > { %2532 = vst.msk [vmem:[%s5491_s7 + $0xb0] sm:$0xff] %vm1737_vm11, %v2502_v17  ;;  %v2473_v51 = vadd.f32 %v2416_v46, %v5890_v43  ;;  %v1978_v32 = vld [vmem:[%s5491_s7 + $0xe8] sm:$0xff] }
 0x219   : > { %v6120_v5 = vpop.f32.mrf.mxu0  ;;  %v4114_v39 = vpop.f32.mrf.mxu1 }
 0x21a   : > { %v2503_v19 = vadd.f32 %v2473_v51, %v1972_v56 }
 0x21b   : > { %v4163_v37 = vpop.f32.mrf.mxu0  ;;  %v2421_v21 = vpop.f32.mrf.mxu1 }
 0x21c   : > { %2533 = vst.msk [vmem:[%s5491_s7 + $0xb8] sm:$0xff] %vm1737_vm11, %v2503_v19  ;;  %v2474_v60 = vadd.f32 %v2421_v21, %v5896_v0  ;;  %v1979_v37 = vld [vmem:[%s5491_s7 + $0xf0] sm:$0xff] }
 0x21d   : > { %v6126_v38 = vpop.f32.mrf.mxu0  ;;  %v4117_v16 = vpop.f32.mrf.mxu1 }
 0x21e   : > { %v2504_v28 = vadd.f32 %v2474_v60, %v1973_v14 }
 0x21f   : > { %v4164_v43 = vpop.f32.mrf.mxu0  ;;  %v2424_v12 = vpop.f32.mrf.mxu1 }
 0x220   : > { %2534 = vst.msk [vmem:[%s5491_s7 + $0xc0] sm:$0xff] %vm1737_vm11, %v2504_v28  ;;  %v2475_v29 = vadd.f32 %v2424_v12, %v5906_v34  ;;  %v1980_v43 = vld [vmem:[%s5491_s7 + $0xf8] sm:$0xff] }
 0x221   : > { %v6132_v26 = vpop.f32.mrf.mxu0  ;;  %v4118_v25 = vpop.f32.mrf.mxu1 }
 0x222   : > { %v2505_v41 = vadd.f32 %v2475_v29, %v1974_v50 }
 0x223   : > { %v4167_v0 = vpop.f32.mrf.mxu0  ;;  %v2429_v9 = vpop.f32.mrf.mxu1 }
 0x224   : > { %2535 = vst.msk [vmem:[%s5491_s7 + $0xc8] sm:$0xff] %vm1737_vm11, %v2505_v41  ;;  %v2476_v3 = vadd.f32 %v2429_v9, %v5914_v53 }
 0x225   : > { %v6138_v27 = vpop.f32.mrf.mxu0  ;;  %v4121_v24 = vpop.f32.mrf.mxu1 }
 0x226   : > { %v2506_v7 = vadd.f32 %v2476_v3, %v1975_v40 }
 0x227   : > { %v4168_v34 = vpop.f32.mrf.mxu0  ;;  %v2432_v58 = vpop.f32.mrf.mxu1 }
 0x228   : > { %2536 = vst.msk [vmem:[%s5491_s7 + $0xd0] sm:$0xff] %vm1737_vm11, %v2506_v7  ;;  %v2477_v48 = vadd.f32 %v2432_v58, %v5927_v20 }
 0x229   : > { %v6144_v10 = vpop.f32.mrf.mxu0  ;;  %v4122_v49 = vpop.f32.mrf.mxu1 }
 0x22a   : > { %v2507_v63 = vadd.f32 %v2477_v48, %v1976_v36 }
 0x22b   : > { %v4171_v53 = vpop.f32.mrf.mxu0  ;;  %v2437_v2 = vpop.f32.mrf.mxu1 }
 0x22c   : > { %2537 = vst.msk [vmem:[%s5491_s7 + $0xd8] sm:$0xff] %vm1737_vm11, %v2507_v63  ;;  %v2478_v8 = vadd.f32 %v2437_v2, %v5936_v13 }
 0x22d   : > { %v6150_v22 = vpop.f32.mrf.mxu0  ;;  %v4125_v35 = vpop.f32.mrf.mxu1 }
 0x22e   : > { %v2508_v4 = vadd.f32 %v2478_v8, %v1977_v31 }
 0x22f   : > { %v4172_v20 = vpop.f32.mrf.mxu0  ;;  %v2440_v55 = vpop.f32.mrf.mxu1 }
 0x230   : > { %2538 = vst.msk [vmem:[%s5491_s7 + $0xe0] sm:$0xff] %vm1737_vm11, %v2508_v4  ;;  %v2479_v23 = vadd.f32 %v2440_v55, %v5949_v1 }
 0x231   : > { %v6156_v17 = vpop.f32.mrf.mxu0  ;;  %v4126_v46 = vpop.f32.mrf.mxu1 }
 0x232   : > { %v2509_v51 = vadd.f32 %v2479_v23, %v1978_v32 }
 0x233   : > { %v4175_v13 = vpop.f32.mrf.mxu0  ;;  %v2445_v56 = vpop.f32.mrf.mxu1 }
 0x234   : > { %2539 = vst.msk [vmem:[%s5491_s7 + $0xe8] sm:$0xff] %vm1737_vm11, %v2509_v51  ;;  %v2480_v39 = vadd.f32 %v2445_v56, %v5958_v62 }
 0x235   : > { %v6162_v19 = vpop.f32.mrf.mxu0  ;;  %v4129_v21 = vpop.f32.mrf.mxu1 }
 0x236   : > { %v2510_v60 = vadd.f32 %v2480_v39, %v1979_v37 }
 0x237   : > { %v4176_v14 = vpop.f32.mrf.mxu0  ;;  %v2448_v1 = vpop.f32.mrf.mxu1 }
 0x238   : > { %2540 = vst.msk [vmem:[%s5491_s7 + $0xf0] sm:$0xff] %vm1737_vm11, %v2510_v60  ;;  %v2481_v16 = vadd.f32 %v2448_v1, %v5971_v45  ;;  %v2542_v60 = vld [vmem:[%s5491_s7] sm:$0xff] }
 0x239   : > { %v6168_v28 = vpop.f32.mrf.mxu0  ;;  %v4130_v12 = vpop.f32.mrf.mxu1 }
 0x23a   : > { %v2511_v29 = vadd.f32 %v2481_v16, %v1980_v43 }
 0x23b   : > { %v4179_v50 = vpop.f32.mrf.mxu0  ;;  %v2769_v25 = vpop.f32.mrf.mxu1 }
 0x23c   : > { %2541 = vst.msk [vmem:[%s5491_s7 + $0xf8] sm:$0xff] %vm1737_vm11, %v2511_v29  ;;  %v2770_v56 = vadd.f32 %v2769_v25, %v5979_v15 }
 0x23d   : > { %v6173_v62 = vpop.f32.mrf.mxu0  ;;  %v4197_v41 = vpop.f32.mrf.mxu1 }
 0x23e   : > { %v2543_v41 = vld [vmem:[%s5491_s7 + $0x8] sm:$0xff] }
 0x23f   : > { %v4180_v0 = vpop.f32.mrf.mxu0  ;;  %v2772_v9 = vpop.f32.mrf.mxu1 }
 0x240   : > { %v2773_v16 = vadd.f32 %v2772_v9, %v5997_v42  ;;  %v2544_v9 = vld [vmem:[%s5491_s7 + $0x10] sm:$0xff] }
 0x241   : > { %v6175_v3 = vpop.f32.mrf.mxu0  ;;  %v4198_v40 = vpop.f32.mrf.mxu1 }
 0x243   : > { %v4183_v24 = vpop.f32.mrf.mxu0  ;;  %v2777_v7 = vpop.f32.mrf.mxu1 }
 0x244   : > { %v2778_v0 = vadd.f32 %v2777_v7, %v6005_v54  ;;  %v2545_v7 = vld [vmem:[%s5491_s7 + $0x18] sm:$0xff] }
 0x245   : > { %v6177_v45 = vpop.f32.mrf.mxu0  ;;  %v4201_v34 = vpop.f32.mrf.mxu1 }
 0x247   : > { %v4184_v58 = vpop.f32.mrf.mxu0  ;;  %v2780_v48 = vpop.f32.mrf.mxu1 }
 0x249   : > { %v6179_v36 = vpop.f32.mrf.mxu0  ;;  %v4202_v49 = vpop.f32.mrf.mxu1 }
 0x24b   : > { %v4187_v63 = vpop.f32.mrf.mxu0  ;;  %v2785_v53 = vpop.f32.mrf.mxu1 }
 0x24c   : > { %v2781_v63 = vadd.f32 %v2780_v48, %v6019_v11  ;;  %v2546_v48 = vld [vmem:[%s5491_s7 + $0x20] sm:$0xff] }
 0x24d   : > { %v6181_v2 = vpop.f32.mrf.mxu0  ;;  %v4205_v8 = vpop.f32.mrf.mxu1 }
 0x24f   : > { %v4188_v31 = vpop.f32.mrf.mxu0  ;;  %v2788_v35 = vpop.f32.mrf.mxu1 }
 0x251   : > { %v6183_v4 = vpop.f32.mrf.mxu0  ;;  %v4206_v20 = vpop.f32.mrf.mxu1 }
 0x253   : > { %v4191_v55 = vpop.f32.mrf.mxu0  ;;  %v2793_v23 = vpop.f32.mrf.mxu1 }
 0x255   : > { %v6185_v32 = vpop.f32.mrf.mxu0  ;;  %v4209_v46 = vpop.f32.mrf.mxu1 }
 0x257   : > { %v4192_v51 = vpop.f32.mrf.mxu0  ;;  %v2796_v13 = vpop.f32.mrf.mxu1 }
 0x258   : > { %v2786_v51 = vadd.f32 %v2785_v53, %v6029_v47  ;;  %v2547_v53 = vld [vmem:[%s5491_s7 + $0x28] sm:$0xff] }
 0x259   : > { %v2927_v39 = vpop.f32.mrf.mxu0  ;;  %v4210_v37 = vpop.f32.mrf.mxu1 }
 0x25a   : > { %v3046_v21 = vadd.f32 %v2927_v39, %v2770_v56 }
 0x25b   : > { %v4259_v14 = vpop.f32.mrf.mxu0  ;;  %v6189_v1 = vpop.f32.mrf.mxu1 }
 0x25c   : > { %v3076_v43 = vadd.f32 %v3046_v21, %v2542_v60  ;;  %v2789_v14 = vadd.f32 %v2788_v35, %v6043_v18  ;;  %v2548_v35 = vld [vmem:[%s5491_s7 + $0x30] sm:$0xff] }
 0x25d   : > { %v2930_v12 = vpop.f32.mrf.mxu0  ;;  %v4213_v29 = vpop.f32.mrf.mxu1 }
 0x25e   : > { %3106 = vst.msk [vmem:[%s5491_s7] sm:$0xff] %vm1737_vm11, %v3076_v43  ;;  %v3047_v50 = vadd.f32 %v2930_v12, %v2773_v16 }
 0x25f   : > { %v4260_v15 = vpop.f32.mrf.mxu0  ;;  %v6195_v25 = vpop.f32.mrf.mxu1 }
 0x260   : > { %v3077_v40 = vadd.f32 %v3047_v50, %v2543_v41  ;;  %v2794_v41 = vadd.f32 %v2793_v23, %v6053_v44  ;;  %v2549_v23 = vld [vmem:[%s5491_s7 + $0x38] sm:$0xff] }
 0x261   : > { %v2935_v24 = vpop.f32.mrf.mxu0  ;;  %v4214_v34 = vpop.f32.mrf.mxu1 }
 0x262   : > { %3107 = vst.msk [vmem:[%s5491_s7 + $0x8] sm:$0xff] %vm1737_vm11, %v3077_v40  ;;  %v3048_v42 = vadd.f32 %v2935_v24, %v2778_v0 }
 0x263   : > { %v4263_v58 = vpop.f32.mrf.mxu0  ;;  %v6201_v49 = vpop.f32.mrf.mxu1 }
 0x264   : > { %v3078_v8 = vadd.f32 %v3048_v42, %v2544_v9  ;;  %v2797_v42 = vadd.f32 %v2796_v13, %v6070_v61  ;;  %v2550_v13 = vld [vmem:[%s5491_s7 + $0x40] sm:$0xff] }
 0x265   : > { %v2938_v31 = vpop.f32.mrf.mxu0  ;;  %v4217_v20 = vpop.f32.mrf.mxu1 }
 0x266   : > { %3108 = vst.msk [vmem:[%s5491_s7 + $0x10] sm:$0xff] %vm1737_vm11, %v3078_v8  ;;  %v3049_v54 = vadd.f32 %v2938_v31, %v2781_v63  ;;  %v2802_v20 = vadd.f32 %v6189_v1, %v6077_v57  ;;  %v2551_v1 = vld [vmem:[%s5491_s7 + $0x48] sm:$0xff] }
 0x267   : > { %v4264_v55 = vpop.f32.mrf.mxu0  ;;  %v6207_v46 = vpop.f32.mrf.mxu1 }
 0x268   : > { %v3079_v56 = vadd.f32 %v3049_v54, %v2545_v7 }
 0x269   : > { %v2943_v39 = vpop.f32.mrf.mxu0  ;;  %v4218_v37 = vpop.f32.mrf.mxu1 }
 0x26a   : > { %3109 = vst.msk [vmem:[%s5491_s7 + $0x18] sm:$0xff] %vm1737_vm11, %v3079_v56  ;;  %v3050_v11 = vadd.f32 %v2943_v39, %v2786_v51  ;;  %v2805_v39 = vadd.f32 %v6195_v25, %v6088_v52  ;;  %v2552_v25 = vld [vmem:[%s5491_s7 + $0x50] sm:$0xff] }
 0x26b   : > { %v4267_v21 = vpop.f32.mrf.mxu0  ;;  %v6213_v60 = vpop.f32.mrf.mxu1 }
 0x26c   : > { %v3080_v16 = vadd.f32 %v3050_v11, %v2546_v48 }
 0x26d   : > { %v2946_v43 = vpop.f32.mrf.mxu0  ;;  %v4221_v12 = vpop.f32.mrf.mxu1 }
 0x26e   : > { %3110 = vst.msk [vmem:[%s5491_s7 + $0x20] sm:$0xff] %vm1737_vm11, %v3080_v16  ;;  %v3051_v47 = vadd.f32 %v2946_v43, %v2789_v14  ;;  %v2810_v16 = vadd.f32 %v6201_v49, %v6094_v33  ;;  %v2553_v49 = vld [vmem:[%s5491_s7 + $0x58] sm:$0xff] }
 0x26f   : > { %v4268_v29 = vpop.f32.mrf.mxu0  ;;  %v6219_v50 = vpop.f32.mrf.mxu1 }
 0x270   : > { %v3081_v15 = vadd.f32 %v3051_v47, %v2547_v53 }
 0x271   : > { %v2951_v0 = vpop.f32.mrf.mxu0  ;;  %v4222_v40 = vpop.f32.mrf.mxu1 }
 0x272   : > { %3111 = vst.msk [vmem:[%s5491_s7 + $0x28] sm:$0xff] %vm1737_vm11, %v3081_v15  ;;  %v3052_v18 = vadd.f32 %v2951_v0, %v2794_v41  ;;  %v2813_v41 = vadd.f32 %v6207_v46, %v6102_v30  ;;  %v2554_v46 = vld [vmem:[%s5491_s7 + $0x60] sm:$0xff] }
 0x273   : > { %v4271_v24 = vpop.f32.mrf.mxu0  ;;  %v6225_v34 = vpop.f32.mrf.mxu1 }
 0x274   : > { %v3082_v9 = vadd.f32 %v3052_v18, %v2548_v35  ;;  %v2818_v24 = vadd.f32 %v6213_v60, %v6108_v6  ;;  %v2555_v60 = vld [vmem:[%s5491_s7 + $0x68] sm:$0xff] }
 0x275   : > { %v2954_v58 = vpop.f32.mrf.mxu0  ;;  %v4225_v63 = vpop.f32.mrf.mxu1 }
 0x276   : > { %3112 = vst.msk [vmem:[%s5491_s7 + $0x30] sm:$0xff] %vm1737_vm11, %v3082_v9  ;;  %v3053_v44 = vadd.f32 %v2954_v58, %v2797_v42 }
 0x277   : > { %v4272_v8 = vpop.f32.mrf.mxu0  ;;  %v6231_v31 = vpop.f32.mrf.mxu1 }
 0x278   : > { %v3083_v54 = vadd.f32 %v3053_v44, %v2549_v23  ;;  %v2821_v23 = vadd.f32 %v6219_v50, %v6114_v59  ;;  %v2556_v50 = vld [vmem:[%s5491_s7 + $0x70] sm:$0xff] }
 0x279   : > { %v2959_v7 = vpop.f32.mrf.mxu0  ;;  %v4226_v55 = vpop.f32.mrf.mxu1 }
 0x27a   : > { %3113 = vst.msk [vmem:[%s5491_s7 + $0x38] sm:$0xff] %vm1737_vm11, %v3083_v54  ;;  %v3054_v61 = vadd.f32 %v2959_v7, %v2802_v20 }
 0x27b   : > { %v4275_v51 = vpop.f32.mrf.mxu0  ;;  %v6238_v56 = vpop.f32.mrf.mxu1 }
 0x27c   : > { %v3084_v37 = vadd.f32 %v3054_v61, %v2550_v13  ;;  %v2826_v61 = vadd.f32 %v6225_v34, %v6120_v5  ;;  %v2557_v34 = vld [vmem:[%s5491_s7 + $0x78] sm:$0xff] }
 0x27d   : > { %v2962_v11 = vpop.f32.mrf.mxu0  ;;  %v4229_v48 = vpop.f32.mrf.mxu1 }
 0x27e   : > { %3114 = vst.msk [vmem:[%s5491_s7 + $0x40] sm:$0xff] %vm1737_vm11, %v3084_v37  ;;  %v3055_v57 = vadd.f32 %v2962_v11, %v2805_v39  ;;  %v2829_v48 = vadd.f32 %v6231_v31, %v6126_v38  ;;  %v2558_v31 = vld [vmem:[%s5491_s7 + $0x80] sm:$0xff] }
 0x27f   : > { %v4276_v21 = vpop.f32.mrf.mxu0  ;;  %v6245_v14 = vpop.f32.mrf.mxu1 }
 0x280   : > { %v3085_v43 = vadd.f32 %v3055_v57, %v2551_v1 }
 0x281   : > { %v2967_v12 = vpop.f32.mrf.mxu0  ;;  %v4230_v47 = vpop.f32.mrf.mxu1 }
 0x282   : > { %3115 = vst.msk [vmem:[%s5491_s7 + $0x48] sm:$0xff] %vm1737_vm11, %v3085_v43  ;;  %v3056_v52 = vadd.f32 %v2967_v12, %v2810_v16  ;;  %v2834_v12 = vadd.f32 %v6238_v56, %v6132_v26  ;;  %v2559_v56 = vld [vmem:[%s5491_s7 + $0x88] sm:$0xff] }
 0x283   : > { %v4279_v53 = vpop.f32.mrf.mxu0  ;;  %v6252_v29 = vpop.f32.mrf.mxu1 }
 0x284   : > { %v3086_v15 = vadd.f32 %v3056_v52, %v2552_v25 }
 0x285   : > { %v2970_v0 = vpop.f32.mrf.mxu0  ;;  %v4233_v40 = vpop.f32.mrf.mxu1 }
 0x286   : > { %3116 = vst.msk [vmem:[%s5491_s7 + $0x50] sm:$0xff] %vm1737_vm11, %v3086_v15  ;;  %v3057_v33 = vadd.f32 %v2970_v0, %v2813_v41  ;;  %v2837_v15 = vadd.f32 %v6245_v14, %v6138_v27  ;;  %v2560_v14 = vld [vmem:[%s5491_s7 + $0x90] sm:$0xff] }
 0x287   : > { %v4280_v18 = vpop.f32.mrf.mxu0  ;;  %v6259_v35 = vpop.f32.mrf.mxu1 }
 0x288   : > { %v3087_v42 = vadd.f32 %v3057_v33, %v2553_v49 }
 0x289   : > { %v2975_v9 = vpop.f32.mrf.mxu0  ;;  %v4234_v58 = vpop.f32.mrf.mxu1 }
 0x28a   : > { %3117 = vst.msk [vmem:[%s5491_s7 + $0x58] sm:$0xff] %vm1737_vm11, %v3087_v42  ;;  %v3058_v30 = vadd.f32 %v2975_v9, %v2818_v24  ;;  %v2842_v24 = vadd.f32 %v6252_v29, %v6144_v10  ;;  %v2561_v29 = vld [vmem:[%s5491_s7 + $0x98] sm:$0xff] }
 0x28b   : > { %v4283_v63 = vpop.f32.mrf.mxu0  ;;  %v6266_v44 = vpop.f32.mrf.mxu1 }
 0x28c   : > { %v3088_v8 = vadd.f32 %v3058_v30, %v2554_v46  ;;  %v2845_v63 = vadd.f32 %v6259_v35, %v6150_v22  ;;  %v2562_v35 = vld [vmem:[%s5491_s7 + $0xa0] sm:$0xff] }
 0x28d   : > { %v2978_v20 = vpop.f32.mrf.mxu0  ;;  %v4237_v54 = vpop.f32.mrf.mxu1 }
 0x28e   : > { %3118 = vst.msk [vmem:[%s5491_s7 + $0x60] sm:$0xff] %vm1737_vm11, %v3088_v8  ;;  %v3059_v6 = vadd.f32 %v2978_v20, %v2821_v23 }
 0x28f   : > { %v4284_v7 = vpop.f32.mrf.mxu0  ;;  %v6273_v55 = vpop.f32.mrf.mxu1 }
 0x290   : > { %v3089_v13 = vadd.f32 %v3059_v6, %v2555_v60  ;;  %v2850_v60 = vadd.f32 %v6266_v44, %v6156_v17  ;;  %v2563_v44 = vld [vmem:[%s5491_s7 + $0xa8] sm:$0xff] }
 0x291   : > { %v2983_v51 = vpop.f32.mrf.mxu0  ;;  %v4238_v39 = vpop.f32.mrf.mxu1 }
 0x292   : > { %3119 = vst.msk [vmem:[%s5491_s7 + $0x68] sm:$0xff] %vm1737_vm11, %v3089_v13  ;;  %v3060_v59 = vadd.f32 %v2983_v51, %v2826_v61 }
 0x293   : > { %v4287_v37 = vpop.f32.mrf.mxu0  ;;  %v6280_v11 = vpop.f32.mrf.mxu1 }
 0x294   : > { %v3090_v57 = vadd.f32 %v3060_v59, %v2556_v50  ;;  %v2853_v59 = vadd.f32 %v6273_v55, %v6162_v19  ;;  %v2564_v55 = vld [vmem:[%s5491_s7 + $0xb0] sm:$0xff] }
 0x295   : > { %v2986_v1 = vpop.f32.mrf.mxu0  ;;  %v4241_v21 = vpop.f32.mrf.mxu1 }
 0x296   : > { %3120 = vst.msk [vmem:[%s5491_s7 + $0x70] sm:$0xff] %vm1737_vm11, %v3090_v57  ;;  %v3061_v5 = vadd.f32 %v2986_v1, %v2829_v48  ;;  %v2858_v21 = vadd.f32 %v6280_v11, %v6168_v28  ;;  %v2565_v11 = vld [vmem:[%s5491_s7 + $0xb8] sm:$0xff] }
 0x297   : > { %v4288_v16 = vpop.f32.mrf.mxu0  ;;  %v6287_v43 = vpop.f32.mrf.mxu1 }
 0x298   : > { %v3091_v47 = vadd.f32 %v3061_v5, %v2557_v34 }
 0x299   : > { %v2991_v52 = vpop.f32.mrf.mxu0  ;;  %v4242_v25 = vpop.f32.mrf.mxu1 }
 0x29a   : > { %3121 = vst.msk [vmem:[%s5491_s7 + $0x78] sm:$0xff] %vm1737_vm11, %v3091_v47  ;;  %v3062_v38 = vadd.f32 %v2991_v52, %v2834_v12  ;;  %v2861_v52 = vadd.f32 %v6287_v43, %v6173_v62  ;;  %v2566_v43 = vld [vmem:[%s5491_s7 + $0xc0] sm:$0xff] }
 0x29b   : > { %v4291_v53 = vpop.f32.mrf.mxu0  ;;  %v6294_v41 = vpop.f32.mrf.mxu1 }
 0x29c   : > { %v3092_v0 = vadd.f32 %v3062_v38, %v2558_v31 }
 0x29d   : > { %v2994_v40 = vpop.f32.mrf.mxu0  ;;  %v4245_v33 = vpop.f32.mrf.mxu1 }
 0x29e   : > { %3122 = vst.msk [vmem:[%s5491_s7 + $0x80] sm:$0xff] %vm1737_vm11, %v3092_v0  ;;  %v3063_v26 = vadd.f32 %v2994_v40, %v2837_v15  ;;  %v2866_v0 = vadd.f32 %v6294_v41, %v6175_v3  ;;  %v2567_v41 = vld [vmem:[%s5491_s7 + $0xc8] sm:$0xff] }
 0x29f   : > { %v4292_v49 = vpop.f32.mrf.mxu0  ;;  %v6301_v18 = vpop.f32.mrf.mxu1 }
 0x2a0   : > { %v3093_v42 = vadd.f32 %v3063_v26, %v2559_v56 }
 0x2a1   : > { %v2999_v9 = vpop.f32.mrf.mxu0  ;;  %v4246_v58 = vpop.f32.mrf.mxu1 }
 0x2a2   : > { %3123 = vst.msk [vmem:[%s5491_s7 + $0x88] sm:$0xff] %vm1737_vm11, %v3093_v42  ;;  %v3064_v27 = vadd.f32 %v2999_v9, %v2842_v24  ;;  %v2869_v24 = vadd.f32 %v6301_v18, %v6177_v45 }
 0x2a3   : > { %v4295_v30 = vpop.f32.mrf.mxu0  ;;  %v6308_v46 = vpop.f32.mrf.mxu1 }
 0x2a4   : > { %v3094_v23 = vadd.f32 %v3064_v27, %v2560_v14  ;;  %v2874_v30 = vadd.f32 %v6308_v46, %v6179_v36  ;;  %v3136_v46 = vld [vmem:[%s5491_s7 + $0xf0] sm:$0xff] }
 0x2a5   : > { %v3002_v8 = vpop.f32.mrf.mxu0  ;;  %v4249_v20 = vpop.f32.mrf.mxu1 }
 0x2a6   : > { %3124 = vst.msk [vmem:[%s5491_s7 + $0x90] sm:$0xff] %vm1737_vm11, %v3094_v23  ;;  %v3065_v10 = vadd.f32 %v3002_v8, %v2845_v63  ;;  %v2568_v20 = vld [vmem:[%s5491_s7 + $0xd0] sm:$0xff] }
 0x2a7   : > { %v4296_v54 = vpop.f32.mrf.mxu0  ;;  %v6315_v6 = vpop.f32.mrf.mxu1 }
 0x2a8   : > { %v3095_v7 = vadd.f32 %v3065_v10, %v2561_v29  ;;  %v2877_v54 = vadd.f32 %v6315_v6, %v6181_v2 }
 0x2a9   : > { %v3007_v61 = vpop.f32.mrf.mxu0  ;;  %v4250_v13 = vpop.f32.mrf.mxu1 }
 0x2aa   : > { %3125 = vst.msk [vmem:[%s5491_s7 + $0x98] sm:$0xff] %vm1737_vm11, %v3095_v7  ;;  %v3066_v22 = vadd.f32 %v3007_v61, %v2850_v60 }
 0x2ab   : > { %v4299_v51 = vpop.f32.mrf.mxu0  ;;  %v6322_v39 = vpop.f32.mrf.mxu1 }
 0x2ac   : > { %v3096_v50 = vadd.f32 %v3066_v22, %v2562_v35  ;;  %v2569_v51 = vld [vmem:[%s5491_s7 + $0xd8] sm:$0xff]  ;;  %v2882_v2 = vadd.f32 %v6322_v39, %v6183_v4 }
 0x2ad   : > { %v3010_v37 = vpop.f32.mrf.mxu0  ;;  %v4253_v48 = vpop.f32.mrf.mxu1 }
 0x2ae   : > { %3126 = vst.msk [vmem:[%s5491_s7 + $0xa0] sm:$0xff] %vm1737_vm11, %v3096_v50  ;;  %v3067_v17 = vadd.f32 %v3010_v37, %v2853_v59 }
 0x2af   : > { %v4300_v57 = vpop.f32.mrf.mxu0  ;;  %v6329_v1 = vpop.f32.mrf.mxu1 }
 0x2b0   : > { %v3097_v5 = vadd.f32 %v3067_v17, %v2563_v44  ;;  %v3137_v17 = vld [vmem:[%s5491_s7 + $0xf8] sm:$0xff] }
 0x2b1   : > { %v3015_v34 = vpop.f32.mrf.mxu0  ;;  %v4254_v16 = vpop.f32.mrf.mxu1 }
 0x2b2   : > { %3127 = vst.msk [vmem:[%s5491_s7 + $0xa8] sm:$0xff] %vm1737_vm11, %v3097_v5  ;;  %v3068_v19 = vadd.f32 %v3015_v34, %v2858_v21  ;;  %v2570_v5 = vld [vmem:[%s5491_s7 + $0xe0] sm:$0xff]  ;;  %v2885_v16 = vadd.f32 %v6329_v1, %v6185_v32 }
 0x2b3   : > { %v4303_v12 = vpop.f32.mrf.mxu0  ;;  %v3204_v47 = vpop.f32.mrf.mxu1 }
 0x2b4   : > { %v3098_v25 = vadd.f32 %v3068_v19, %v2564_v55  ;;  %v2571_v55 = vld [vmem:[%s5491_s7 + $0xe8] sm:$0xff] }
 0x2b5   : > { %v3018_v38 = vpop.f32.mrf.mxu0  ;;  %v4321_v31 = vpop.f32.mrf.mxu1 }
 0x2b6   : > { %3128 = vst.msk [vmem:[%s5491_s7 + $0xb0] sm:$0xff] %vm1737_vm11, %v3098_v25  ;;  %v3069_v28 = vadd.f32 %v3018_v38, %v2861_v52 }
 0x2b7   : > { %v4304_v53 = vpop.f32.mrf.mxu0  ;;  %v3207_v15 = vpop.f32.mrf.mxu1 }
 0x2b8   : > { %v3099_v40 = vadd.f32 %v3069_v28, %v2565_v11 }
 0x2b9   : > { %v3023_v33 = vpop.f32.mrf.mxu0  ;;  %v4322_v26 = vpop.f32.mrf.mxu1 }
 0x2ba   : > { %3129 = vst.msk [vmem:[%s5491_s7 + $0xb8] sm:$0xff] %vm1737_vm11, %v3099_v40  ;;  %v3070_v62 = vadd.f32 %v3023_v33, %v2866_v0 }
 0x2bb   : > { %v4307_v56 = vpop.f32.mrf.mxu0  ;;  %v3250_v49 = vpop.f32.mrf.mxu1 }
 0x2bc   : > { %v3100_v42 = vadd.f32 %v3070_v62, %v2566_v43  ;;  %v3251_v18 = vadd.f32 %v3250_v49, %v3204_v47 }
 0x2bd   : > { %v3026_v9 = vpop.f32.mrf.mxu0  ;;  %v4327_v58 = vpop.f32.mrf.mxu1 }
 0x2be   : > { %3130 = vst.msk [vmem:[%s5491_s7 + $0xc0] sm:$0xff] %vm1737_vm11, %v3100_v42  ;;  %v3071_v3 = vadd.f32 %v3026_v9, %v2869_v24 }
 0x2bf   : > { %v4308_v27 = vpop.f32.mrf.mxu0  ;;  %v3253_v14 = vpop.f32.mrf.mxu1 }
 0x2c0   : > { %v3101_v63 = vadd.f32 %v3071_v3, %v2567_v41  ;;  %v3254_v22 = vadd.f32 %v3253_v14, %v3207_v15 }
 0x2c1   : > { %v3031_v23 = vpop.f32.mrf.mxu0  ;;  %v4328_v8 = vpop.f32.mrf.mxu1 }
 0x2c2   : > { %3131 = vst.msk [vmem:[%s5491_s7 + $0xc8] sm:$0xff] %vm1737_vm11, %v3101_v63  ;;  %v3072_v45 = vadd.f32 %v3031_v23, %v2874_v30 }
 0x2c3   : > { %v4311_v10 = vpop.f32.mrf.mxu0  ;;  %v3301_v29 = vpop.f32.mrf.mxu1 }
 0x2c4   : > { %v3102_v60 = vadd.f32 %v3072_v45, %v2568_v20  ;;  %v3308_v7 = vadd.f32 %v3301_v29, %v3251_v18 }
 0x2c5   : > { %v3034_v36 = vpop.f32.mrf.mxu0  ;;  %v4333_v61 = vpop.f32.mrf.mxu1 }
 0x2c6   : > { %3132 = vst.msk [vmem:[%s5491_s7 + $0xd0] sm:$0xff] %vm1737_vm11, %v3102_v60  ;;  %v3073_v13 = vadd.f32 %v3034_v36, %v2877_v54  ;;  %v3310_v35 = vadd.f32 %v3308_v7, %v3136_v46 }
 0x2c7   : > { %v4312_v59 = vpop.f32.mrf.mxu0  ;;  %v3304_v50 = vpop.f32.mrf.mxu1 }
 0x2c8   : > { %v3103_v6 = vadd.f32 %v3073_v13, %v2569_v51  ;;  %3312 = vst.msk [vmem:[%s5491_s7 + $0xf0] sm:$0xff] %vm1737_vm11, %v3310_v35  ;;  %v3309_v37 = vadd.f32 %v3304_v50, %v3254_v22 }
 0x2c9   : > { %v3039_v48 = vpop.f32.mrf.mxu0  ;;  %v4334_v44 = vpop.f32.mrf.mxu1 }
 0x2ca   : > { %3133 = vst.msk [vmem:[%s5491_s7 + $0xd8] sm:$0xff] %vm1737_vm11, %v3103_v6  ;;  %v3074_v57 = vadd.f32 %v3039_v48, %v2882_v2  ;;  %v3311_v21 = vadd.f32 %v3309_v37, %v3137_v17 }
 0x2cb   : > { %v4315_v34 = vpop.f32.mrf.mxu0 }
 0x2cc   : > { %v3104_v4 = vadd.f32 %v3074_v57, %v2570_v5  ;;  %3313 = vst.msk [vmem:[%s5491_s7 + $0xf8] sm:$0xff] %vm1737_vm11, %v3311_v21 }
 0x2cd   : > { %v3042_v39 = vpop.f32.mrf.mxu0 }
 0x2ce   : > { %3134 = vst.msk [vmem:[%s5491_s7 + $0xe0] sm:$0xff] %vm1737_vm11, %v3104_v4  ;;  %v3075_v19 = vadd.f32 %v3042_v39, %v2885_v16 }
 0x2cf   : > { %v4316_v12 = vpop.f32.mrf.mxu0 }
 0x2d0   : > { %v3105_v47 = vadd.f32 %v3075_v19, %v2571_v55 }
 0x2d2   : > { %3135 = vst.msk [vmem:[%s5491_s7 + $0xe8] sm:$0xff] %vm1737_vm11, %v3105_v47 }
 0x2d3 PF: > { %s14_s17 = sadd.s32 1, %s4414_s17   ;;  %s6619_s15 = smov %s4410_s16 }
 0x2d4   : > { %p11_p5 = scmp.ge.s32.totalorder %s14_s17, 4   ;;  %s6620_s16 = smov %s6622_s18 }
 0x2d6   :  { %13 = sbr.rel (!%p11_p5) target bundleno = 2 (0x2), region = 78 }

</bundles_post_ra>
